<compile_context>
chip_gen: v7x
topology: tpu7x:2x2x1
jax: 0.10.0
libtpu: 0.0.40
codegen_flags: <defaults>
</compile_context>

<pallas_src>
import functools

import numpy as np
import jax
import jax.numpy as jnp
from jax.experimental import pallas as pl
from jax.experimental.pallas import tpu as pltpu

VMEM_LIMIT = 32 * 1024 * 1024   # modest explicit budget; safe on v5e/v6e/v7x


def _round_up(x, m):
    return ((x + m - 1) // m) * m


# ----------------------------------------------------------------------------
# The megakernel: whole CNNCifar forward for one batch chunk.
#   x_ref : (32, TB, 96)   image chunk, layout (H, batch, W*C), TB % 8 == 0
#   m1    : (5, 96, 256)   conv1 band matrices (one per kernel row ky)
#   m2    : (5, 84, 256)   conv2 band matrices
#   mf1   : (5, 80, 128)   fc1 band matrices (one per pooled row h)
#   o_ref : (TB, 128)      logits (first num_classes lanes valid)
# ----------------------------------------------------------------------------
def _cnn_megakernel(x_ref, m1_ref, b1_ref, m2_ref, b2_ref,
                    mf1_ref, bf1_ref, wf2_ref, bf2_ref, wf3_ref, bf3_ref,
                    o_ref):
    TB = x_ref.shape[1]
    x = x_ref[...]                                        # (32, TB, 96)

    # ---- conv1 (valid 5x5, 3->6) + bias + ReLU: 5 shifted banded matmuls ----
    acc1 = jnp.dot(x[0:28].reshape(28 * TB, 96), m1_ref[0],
                   preferred_element_type=jnp.float32)
    for ky in range(1, 5):
        acc1 = acc1 + jnp.dot(x[ky:ky + 28].reshape(28 * TB, 96), m1_ref[ky],
                              preferred_element_type=jnp.float32)
    t1 = jnp.maximum(acc1 + b1_ref[...], 0.0).reshape(28, TB, 256)

    # ---- 2x2 maxpool: rows via shifted leading slices; columns via the
    # parity-split lane halves (even w in lanes 0:84, odd w in 128:212) ----
    h1 = jnp.maximum(t1[0:27], t1[1:28])                  # valid at even rows
    p1 = jnp.maximum(h1[:, :, 0:84], h1[:, :, 128:212])   # (27, TB, 84)

    # ---- conv2 (valid 5x5, 6->16) + bias + ReLU ----
    acc2 = jnp.dot(p1[0:19].reshape(19 * TB, 84), m2_ref[0],
                   preferred_element_type=jnp.float32)
    for ky in range(1, 5):
        acc2 = acc2 + jnp.dot(p1[2 * ky:2 * ky + 19].reshape(19 * TB, 84),
                              m2_ref[ky], preferred_element_type=jnp.float32)
    t2 = jnp.maximum(acc2 + b2_ref[...], 0.0).reshape(19, TB, 256)

    # ---- 2x2 maxpool ----
    h2 = jnp.maximum(t2[0:17], t2[2:19])                  # valid rows 0,4,8,12,16
    p2 = jnp.maximum(h2[:, :, 0:80], h2[:, :, 128:208])   # (17, TB, 80)

    # ---- fc1 (+ the torch NCHW flatten, folded into mf1) + ReLU ----
    f = jnp.dot(p2[0], mf1_ref[0], preferred_element_type=jnp.float32)
    for h in range(1, 5):
        f = f + jnp.dot(p2[4 * h], mf1_ref[h], preferred_element_type=jnp.float32)
    f = jnp.maximum(f + bf1_ref[...], 0.0)                # (TB, 128)

    # ---- fc2 + ReLU, fc3 ----
    f = jnp.maximum(jnp.dot(f, wf2_ref[...], preferred_element_type=jnp.float32)
                    + bf2_ref[...], 0.0)
    o_ref[...] = jnp.dot(f, wf3_ref[...], preferred_element_type=jnp.float32) + bf3_ref[...]


# ----------------------------------------------------------------------------
# Forward wrapper (matches CNNCifar.forward)
# ----------------------------------------------------------------------------
def cnn_cifar_forward(prepped, x_nchw, num_classes):
    B, C, H, W = x_nchw.shape
    assert (C, H, W) == (3, 32, 32), "CIFAR geometry required by the 16*5*5 flatten"
    TB = 16 if B >= 32 else 8            # >=2 grid steps on realistic batches (v7x megacore)
    B_pad = _round_up(B, TB)

    # (B,3,32,32) -> (H, B, W, C) -> (32, B, 96); pad batch with zero images.
    xh = jnp.transpose(x_nchw, (2, 0, 3, 1)).reshape(32, B, 96)
    if B_pad != B:
        xh = jnp.pad(xh, ((0, 0), (0, B_pad - B), (0, 0)))

    out = pl.pallas_call(
        _cnn_megakernel,
        out_shape=jax.ShapeDtypeStruct((B_pad, 128), jnp.float32),
        grid=(B_pad // TB,),
        in_specs=[
            pl.BlockSpec((32, TB, 96), lambda i: (0, i, 0)),          # image chunk
            pl.BlockSpec(prepped["m1"].shape, lambda i: (0, 0, 0)),   # resident weights
            pl.BlockSpec(prepped["b1"].shape, lambda i: (0, 0)),
            pl.BlockSpec(prepped["m2"].shape, lambda i: (0, 0, 0)),
            pl.BlockSpec(prepped["b2"].shape, lambda i: (0, 0)),
            pl.BlockSpec(prepped["mf1"].shape, lambda i: (0, 0, 0)),
            pl.BlockSpec(prepped["bf1"].shape, lambda i: (0, 0)),
            pl.BlockSpec(prepped["wf2"].shape, lambda i: (0, 0)),
            pl.BlockSpec(prepped["bf2"].shape, lambda i: (0, 0)),
            pl.BlockSpec(prepped["wf3"].shape, lambda i: (0, 0)),
            pl.BlockSpec(prepped["bf3"].shape, lambda i: (0, 0)),
        ],
        out_specs=pl.BlockSpec((TB, 128), lambda i: (i, 0)),
        compiler_params=pltpu.CompilerParams(
            dimension_semantics=("parallel",),
            vmem_limit_bytes=VMEM_LIMIT),
    )(xh, prepped["m1"], prepped["b1"], prepped["m2"], prepped["b2"],
      prepped["mf1"], prepped["bf1"], prepped["wf2"], prepped["bf2"],
      prepped["wf3"], prepped["bf3"])
    return out[:B, :num_classes]


# ----------------------------------------------------------------------------
# One-time host-side weight preparation (banded conv matrices, folded flatten)
# ----------------------------------------------------------------------------
def prep_params(params, num_classes):
    w1 = np.asarray(params["conv1_w"], np.float32)   # (6, 3, 5, 5)
    b1 = np.asarray(params["conv1_b"], np.float32)
    w2 = np.asarray(params["conv2_w"], np.float32)   # (16, 6, 5, 5)
    b2 = np.asarray(params["conv2_b"], np.float32)
    f1w = np.asarray(params["fc1_w"], np.float32)    # (120, 400)
    f1b = np.asarray(params["fc1_b"], np.float32)
    f2w = np.asarray(params["fc2_w"], np.float32)    # (84, 120)
    f2b = np.asarray(params["fc2_b"], np.float32)
    f3w = np.asarray(params["fc3_w"], np.float32)    # (nc, 84)
    f3b = np.asarray(params["fc3_b"], np.float32)
    nc = f3w.shape[0]

    # conv1: input lane = w*3 + ci; output lane = parity(wo)*128 + (wo//2)*6 + co
    m1 = np.zeros((5, 96, 256), np.float32)
    b1v = np.zeros((1, 256), np.float32)
    for ky in range(5):
        for kx in range(5):
            wk = w1[:, :, ky, kx].T                       # (ci=3, co=6)
            for wo in range(28):
                base = (wo % 2) * 128 + (wo // 2) * 6
                m1[ky, (wo + kx) * 3:(wo + kx) * 3 + 3, base:base + 6] = wk
    for wo in range(28):
        base = (wo % 2) * 128 + (wo // 2) * 6
        b1v[0, base:base + 6] = b1

    # conv2: input lane = wp*6 + ci (pooled); output lane = parity(wo2)*128 + (wo2//2)*16 + co
    m2 = np.zeros((5, 84, 256), np.float32)
    b2v = np.zeros((1, 256), np.float32)
    for ky in range(5):
        for kx in range(5):
            wk = w2[:, :, ky, kx].T                       # (ci=6, co=16)
            for wo in range(10):
                base = (wo % 2) * 128 + (wo // 2) * 16
                m2[ky, (wo + kx) * 6:(wo + kx) * 6 + 6, base:base + 16] = wk
    for wo in range(10):
        base = (wo % 2) * 128 + (wo // 2) * 16
        b2v[0, base:base + 16] = b2

    # fc1: torch flattens NCHW -> column c*25 + h*5 + w; our pooled lane = 16*w + c.
    mf1 = np.zeros((5, 80, 128), np.float32)
    for h in range(5):
        for w in range(5):
            for c in range(16):
                mf1[h, 16 * w + c, :120] = f1w[:, c * 25 + h * 5 + w]
    bf1 = np.zeros((1, 128), np.float32); bf1[0, :120] = f1b

    wf2 = np.zeros((128, 128), np.float32); wf2[:120, :84] = f2w.T
    bf2 = np.zeros((1, 128), np.float32); bf2[0, :84] = f2b
    wf3 = np.zeros((128, 128), np.float32); wf3[:84, :nc] = f3w.T
    bf3 = np.zeros((1, 128), np.float32); bf3[0, :nc] = f3b

    host = dict(m1=m1, b1=b1v, m2=m2, b2=b2v, mf1=mf1, bf1=bf1,
                wf2=wf2, bf2=bf2, wf3=wf3, bf3=bf3)
    return {k: jnp.asarray(v) for k, v in host.items()}


# ----------------------------------------------------------------------------
# Pure-JAX reference (for the correctness check)
# ----------------------------------------------------------------------------
def cnn_cifar_forward_ref(params, x):
    dn = ("NCHW", "OIHW", "NCHW")

    def conv(x, w, b):
        y = jax.lax.conv_general_dilated(x, w, (1, 1), "VALID", dimension_numbers=dn)
        return jax.nn.relu(y + b[None, :, None, None])

    def pool(x):
        return jax.lax.reduce_window(x, -jnp.inf, jax.lax.max,
                                     (1, 1, 2, 2), (1, 1, 2, 2), "VALID")

    x = pool(conv(x, params["conv1_w"], params["conv1_b"]))
    x = pool(conv(x, params["conv2_w"], params["conv2_b"]))
    x = x.reshape(x.shape[0], 16 * 5 * 5)
    x = jax.nn.relu(x @ params["fc1_w"].T + params["fc1_b"])
    x = jax.nn.relu(x @ params["fc2_w"].T + params["fc2_b"])
    return x @ params["fc3_w"].T + params["fc3_b"]


# ----------------------------------------------------------------------------
# Deterministic parameter init (PyTorch default-like uniform, shapes from __init__)
# ----------------------------------------------------------------------------
def init_params(key, num_classes):
    ks = jax.random.split(key, 10)

    def u(k, shape, fan_in):
        bound = 1.0 / (fan_in ** 0.5)
        return jax.random.uniform(k, shape, jnp.float32, -bound, bound)

    return {
        "conv1_w": u(ks[0], (6, 3, 5, 5), 3 * 5 * 5),
        "conv1_b": u(ks[1], (6,), 3 * 5 * 5),
        "conv2_w": u(ks[2], (16, 6, 5, 5), 6 * 5 * 5),
        "conv2_b": u(ks[3], (16,), 6 * 5 * 5),
        "fc1_w":   u(ks[4], (120, 400), 400),
        "fc1_b":   u(ks[5], (120,), 400),
        "fc2_w":   u(ks[6], (84, 120), 120),
        "fc2_b":   u(ks[7], (84,), 120),
        "fc3_w":   u(ks[8], (num_classes, 84), 84),
        "fc3_b":   u(ks[9], (num_classes,), 84),
    }


if __name__ == "__main__":
    num_classes = 10
    key = jax.random.PRNGKey(0)
    k_param, k_x = jax.random.split(key)
    params = init_params(k_param, num_classes)
    prepped = prep_params(params, num_classes)

    # CIFAR geometry is required by the 16*5*5 flatten: (B, 3, 32, 32)
    x = jax.random.normal(k_x, (2, 3, 32, 32), jnp.float32)

    fwd = jax.jit(functools.partial(cnn_cifar_forward, num_classes=num_classes))
    out = jax.block_until_ready(fwd(prepped, x))
    assert out.shape == (2, num_classes), out.shape

    ref = jax.block_until_ready(jax.jit(cnn_cifar_forward_ref)(params, x))
    assert jnp.allclose(out, ref, atol=1e-3, rtol=1e-3), (
        float(jnp.max(jnp.abs(out - ref))))

    print("KERNEL_OK")
</pallas_src>

<mosaic_0001>
module attributes {stable_mosaic.version = 11 : i64} {
  func.func @_cnn_megakernel(%arg0: i32, %arg1: memref<32x8x96xf32, #tpu.memory_space<vmem>>, %arg2: memref<5x96x256xf32, #tpu.memory_space<vmem>>, %arg3: memref<1x256xf32, #tpu.memory_space<vmem>>, %arg4: memref<5x84x256xf32, #tpu.memory_space<vmem>>, %arg5: memref<1x256xf32, #tpu.memory_space<vmem>>, %arg6: memref<5x80x128xf32, #tpu.memory_space<vmem>>, %arg7: memref<1x128xf32, #tpu.memory_space<vmem>>, %arg8: memref<128x128xf32, #tpu.memory_space<vmem>>, %arg9: memref<1x128xf32, #tpu.memory_space<vmem>>, %arg10: memref<128x128xf32, #tpu.memory_space<vmem>>, %arg11: memref<1x128xf32, #tpu.memory_space<vmem>>, %arg12: memref<8x128xf32, #tpu.memory_space<vmem>>) attributes {dimension_semantics = [#tpu.dimension_semantics<parallel>], iteration_bounds = array<i64: 1>, scalar_prefetch = 0 : i64, scratch_operands = 0 : i64, tpu.core_type = #tpu.core_type<tc>, window_params = [{transform_indices = @transform_0, window_bounds = array<i64: 32, 8, 96>}, {pipeline_mode = #tpu.pipeline_mode<synchronous>, transform_indices = @transform_1, window_bounds = array<i64: 5, 96, 256>}, {pipeline_mode = #tpu.pipeline_mode<synchronous>, transform_indices = @transform_2, window_bounds = array<i64: 1, 256>}, {pipeline_mode = #tpu.pipeline_mode<synchronous>, transform_indices = @transform_3, window_bounds = array<i64: 5, 84, 256>}, {pipeline_mode = #tpu.pipeline_mode<synchronous>, transform_indices = @transform_4, window_bounds = array<i64: 1, 256>}, {pipeline_mode = #tpu.pipeline_mode<synchronous>, transform_indices = @transform_5, window_bounds = array<i64: 5, 80, 128>}, {pipeline_mode = #tpu.pipeline_mode<synchronous>, transform_indices = @transform_6, window_bounds = array<i64: 1, 128>}, {pipeline_mode = #tpu.pipeline_mode<synchronous>, transform_indices = @transform_7, window_bounds = array<i64: 128, 128>}, {pipeline_mode = #tpu.pipeline_mode<synchronous>, transform_indices = @transform_8, window_bounds = array<i64: 1, 128>}, {pipeline_mode = #tpu.pipeline_mode<synchronous>, transform_indices = @transform_9, window_bounds = array<i64: 128, 128>}, {pipeline_mode = #tpu.pipeline_mode<synchronous>, transform_indices = @transform_10, window_bounds = array<i64: 1, 128>}, {transform_indices = @transform_11, window_bounds = array<i64: 8, 128>}]} {
    %c0 = arith.constant 0 : index
    %c0_0 = arith.constant 0 : index
    %c0_1 = arith.constant 0 : index
    %0 = vector.load %arg1[%c0, %c0_0, %c0_1] : memref<32x8x96xf32, #tpu.memory_space<vmem>>, vector<32x8x96xf32>
    %1 = vector.extract_strided_slice %0 {offsets = [0, 0, 0], sizes = [28, 8, 96], strides = [1, 1, 1]} : vector<32x8x96xf32> to vector<28x8x96xf32>
    %2 = vector.shape_cast %1 : vector<28x8x96xf32> to vector<224x96xf32>
    %c0_2 = arith.constant 0 : index
    %c0_3 = arith.constant 0 : index
    %c0_4 = arith.constant 0 : index
    %3 = vector.load %arg2[%c0_2, %c0_3, %c0_4] : memref<5x96x256xf32, #tpu.memory_space<vmem>>, vector<1x96x256xf32>
    %4 = vector.shape_cast %3 : vector<1x96x256xf32> to vector<96x256xf32>
    %cst = arith.constant dense<0.000000e+00> : vector<224x256xf32>
    %5 = tpu.matmul %2, %4, %cst {dimension_numbers = #tpu.dot_dimension_numbers<[1], [0], [0], [1], [0, 0, 1, 1], [], []>} : vector<224x96xf32>, vector<96x256xf32>, vector<224x256xf32> -> vector<224x256xf32>
    %6 = vector.extract_strided_slice %0 {offsets = [1, 0, 0], sizes = [28, 8, 96], strides = [1, 1, 1]} : vector<32x8x96xf32> to vector<28x8x96xf32>
    %7 = vector.shape_cast %6 : vector<28x8x96xf32> to vector<224x96xf32>
    %c1 = arith.constant 1 : index
    %c0_5 = arith.constant 0 : index
    %c0_6 = arith.constant 0 : index
    %8 = vector.load %arg2[%c1, %c0_5, %c0_6] : memref<5x96x256xf32, #tpu.memory_space<vmem>>, vector<1x96x256xf32>
    %9 = vector.shape_cast %8 : vector<1x96x256xf32> to vector<96x256xf32>
    %cst_7 = arith.constant dense<0.000000e+00> : vector<224x256xf32>
    %10 = tpu.matmul %7, %9, %cst_7 {dimension_numbers = #tpu.dot_dimension_numbers<[1], [0], [0], [1], [0, 0, 1, 1], [], []>} : vector<224x96xf32>, vector<96x256xf32>, vector<224x256xf32> -> vector<224x256xf32>
    %11 = arith.addf %5, %10 : vector<224x256xf32>
    %12 = vector.extract_strided_slice %0 {offsets = [2, 0, 0], sizes = [28, 8, 96], strides = [1, 1, 1]} : vector<32x8x96xf32> to vector<28x8x96xf32>
    %13 = vector.shape_cast %12 : vector<28x8x96xf32> to vector<224x96xf32>
    %c2 = arith.constant 2 : index
    %c0_8 = arith.constant 0 : index
    %c0_9 = arith.constant 0 : index
    %14 = vector.load %arg2[%c2, %c0_8, %c0_9] : memref<5x96x256xf32, #tpu.memory_space<vmem>>, vector<1x96x256xf32>
    %15 = vector.shape_cast %14 : vector<1x96x256xf32> to vector<96x256xf32>
    %cst_10 = arith.constant dense<0.000000e+00> : vector<224x256xf32>
    %16 = tpu.matmul %13, %15, %cst_10 {dimension_numbers = #tpu.dot_dimension_numbers<[1], [0], [0], [1], [0, 0, 1, 1], [], []>} : vector<224x96xf32>, vector<96x256xf32>, vector<224x256xf32> -> vector<224x256xf32>
    %17 = arith.addf %11, %16 : vector<224x256xf32>
    %18 = vector.extract_strided_slice %0 {offsets = [3, 0, 0], sizes = [28, 8, 96], strides = [1, 1, 1]} : vector<32x8x96xf32> to vector<28x8x96xf32>
    %19 = vector.shape_cast %18 : vector<28x8x96xf32> to vector<224x96xf32>
    %c3 = arith.constant 3 : index
    %c0_11 = arith.constant 0 : index
    %c0_12 = arith.constant 0 : index
    %20 = vector.load %arg2[%c3, %c0_11, %c0_12] : memref<5x96x256xf32, #tpu.memory_space<vmem>>, vector<1x96x256xf32>
    %21 = vector.shape_cast %20 : vector<1x96x256xf32> to vector<96x256xf32>
    %cst_13 = arith.constant dense<0.000000e+00> : vector<224x256xf32>
    %22 = tpu.matmul %19, %21, %cst_13 {dimension_numbers = #tpu.dot_dimension_numbers<[1], [0], [0], [1], [0, 0, 1, 1], [], []>} : vector<224x96xf32>, vector<96x256xf32>, vector<224x256xf32> -> vector<224x256xf32>
    %23 = arith.addf %17, %22 : vector<224x256xf32>
    %24 = vector.extract_strided_slice %0 {offsets = [4, 0, 0], sizes = [28, 8, 96], strides = [1, 1, 1]} : vector<32x8x96xf32> to vector<28x8x96xf32>
    %25 = vector.shape_cast %24 : vector<28x8x96xf32> to vector<224x96xf32>
    %c4 = arith.constant 4 : index
    %c0_14 = arith.constant 0 : index
    %c0_15 = arith.constant 0 : index
    %26 = vector.load %arg2[%c4, %c0_14, %c0_15] : memref<5x96x256xf32, #tpu.memory_space<vmem>>, vector<1x96x256xf32>
    %27 = vector.shape_cast %26 : vector<1x96x256xf32> to vector<96x256xf32>
    %cst_16 = arith.constant dense<0.000000e+00> : vector<224x256xf32>
    %28 = tpu.matmul %25, %27, %cst_16 {dimension_numbers = #tpu.dot_dimension_numbers<[1], [0], [0], [1], [0, 0, 1, 1], [], []>} : vector<224x96xf32>, vector<96x256xf32>, vector<224x256xf32> -> vector<224x256xf32>
    %29 = arith.addf %23, %28 : vector<224x256xf32>
    %c0_17 = arith.constant 0 : index
    %c0_18 = arith.constant 0 : index
    %30 = vector.load %arg3[%c0_17, %c0_18] : memref<1x256xf32, #tpu.memory_space<vmem>>, vector<1x256xf32>
    %31 = vector.broadcast %30 : vector<1x256xf32> to vector<224x256xf32>
    %32 = arith.addf %29, %31 : vector<224x256xf32>
    %cst_19 = arith.constant 0.000000e+00 : f32
    %33 = vector.broadcast %cst_19 : f32 to vector<224x256xf32>
    %34 = arith.maximumf %32, %33 : vector<224x256xf32>
    %35 = vector.shape_cast %34 : vector<224x256xf32> to vector<28x8x256xf32>
    %36 = vector.extract_strided_slice %35 {offsets = [0, 0, 0], sizes = [27, 8, 256], strides = [1, 1, 1]} : vector<28x8x256xf32> to vector<27x8x256xf32>
    %37 = vector.extract_strided_slice %35 {offsets = [1, 0, 0], sizes = [27, 8, 256], strides = [1, 1, 1]} : vector<28x8x256xf32> to vector<27x8x256xf32>
    %38 = arith.maximumf %36, %37 : vector<27x8x256xf32>
    %39 = vector.extract_strided_slice %38 {offsets = [0, 0, 0], sizes = [27, 8, 84], strides = [1, 1, 1]} : vector<27x8x256xf32> to vector<27x8x84xf32>
    %40 = vector.extract_strided_slice %38 {offsets = [0, 0, 128], sizes = [27, 8, 84], strides = [1, 1, 1]} : vector<27x8x256xf32> to vector<27x8x84xf32>
    %41 = arith.maximumf %39, %40 : vector<27x8x84xf32>
    %42 = vector.extract_strided_slice %41 {offsets = [0, 0, 0], sizes = [19, 8, 84], strides = [1, 1, 1]} : vector<27x8x84xf32> to vector<19x8x84xf32>
    %43 = vector.shape_cast %42 : vector<19x8x84xf32> to vector<152x84xf32>
    %c0_20 = arith.constant 0 : index
    %c0_21 = arith.constant 0 : index
    %c0_22 = arith.constant 0 : index
    %44 = vector.load %arg4[%c0_20, %c0_21, %c0_22] : memref<5x84x256xf32, #tpu.memory_space<vmem>>, vector<1x84x256xf32>
    %45 = vector.shape_cast %44 : vector<1x84x256xf32> to vector<84x256xf32>
    %cst_23 = arith.constant dense<0.000000e+00> : vector<152x256xf32>
    %46 = tpu.matmul %43, %45, %cst_23 {dimension_numbers = #tpu.dot_dimension_numbers<[1], [0], [0], [1], [0, 0, 1, 1], [], []>} : vector<152x84xf32>, vector<84x256xf32>, vector<152x256xf32> -> vector<152x256xf32>
    %47 = vector.extract_strided_slice %41 {offsets = [2, 0, 0], sizes = [19, 8, 84], strides = [1, 1, 1]} : vector<27x8x84xf32> to vector<19x8x84xf32>
    %48 = vector.shape_cast %47 : vector<19x8x84xf32> to vector<152x84xf32>
    %c1_24 = arith.constant 1 : index
    %c0_25 = arith.constant 0 : index
    %c0_26 = arith.constant 0 : index
    %49 = vector.load %arg4[%c1_24, %c0_25, %c0_26] : memref<5x84x256xf32, #tpu.memory_space<vmem>>, vector<1x84x256xf32>
    %50 = vector.shape_cast %49 : vector<1x84x256xf32> to vector<84x256xf32>
    %cst_27 = arith.constant dense<0.000000e+00> : vector<152x256xf32>
    %51 = tpu.matmul %48, %50, %cst_27 {dimension_numbers = #tpu.dot_dimension_numbers<[1], [0], [0], [1], [0, 0, 1, 1], [], []>} : vector<152x84xf32>, vector<84x256xf32>, vector<152x256xf32> -> vector<152x256xf32>
    %52 = arith.addf %46, %51 : vector<152x256xf32>
    %53 = vector.extract_strided_slice %41 {offsets = [4, 0, 0], sizes = [19, 8, 84], strides = [1, 1, 1]} : vector<27x8x84xf32> to vector<19x8x84xf32>
    %54 = vector.shape_cast %53 : vector<19x8x84xf32> to vector<152x84xf32>
    %c2_28 = arith.constant 2 : index
    %c0_29 = arith.constant 0 : index
    %c0_30 = arith.constant 0 : index
    %55 = vector.load %arg4[%c2_28, %c0_29, %c0_30] : memref<5x84x256xf32, #tpu.memory_space<vmem>>, vector<1x84x256xf32>
    %56 = vector.shape_cast %55 : vector<1x84x256xf32> to vector<84x256xf32>
    %cst_31 = arith.constant dense<0.000000e+00> : vector<152x256xf32>
    %57 = tpu.matmul %54, %56, %cst_31 {dimension_numbers = #tpu.dot_dimension_numbers<[1], [0], [0], [1], [0, 0, 1, 1], [], []>} : vector<152x84xf32>, vector<84x256xf32>, vector<152x256xf32> -> vector<152x256xf32>
    %58 = arith.addf %52, %57 : vector<152x256xf32>
    %59 = vector.extract_strided_slice %41 {offsets = [6, 0, 0], sizes = [19, 8, 84], strides = [1, 1, 1]} : vector<27x8x84xf32> to vector<19x8x84xf32>
    %60 = vector.shape_cast %59 : vector<19x8x84xf32> to vector<152x84xf32>
    %c3_32 = arith.constant 3 : index
    %c0_33 = arith.constant 0 : index
    %c0_34 = arith.constant 0 : index
    %61 = vector.load %arg4[%c3_32, %c0_33, %c0_34] : memref<5x84x256xf32, #tpu.memory_space<vmem>>, vector<1x84x256xf32>
    %62 = vector.shape_cast %61 : vector<1x84x256xf32> to vector<84x256xf32>
    %cst_35 = arith.constant dense<0.000000e+00> : vector<152x256xf32>
    %63 = tpu.matmul %60, %62, %cst_35 {dimension_numbers = #tpu.dot_dimension_numbers<[1], [0], [0], [1], [0, 0, 1, 1], [], []>} : vector<152x84xf32>, vector<84x256xf32>, vector<152x256xf32> -> vector<152x256xf32>
    %64 = arith.addf %58, %63 : vector<152x256xf32>
    %65 = vector.extract_strided_slice %41 {offsets = [8, 0, 0], sizes = [19, 8, 84], strides = [1, 1, 1]} : vector<27x8x84xf32> to vector<19x8x84xf32>
    %66 = vector.shape_cast %65 : vector<19x8x84xf32> to vector<152x84xf32>
    %c4_36 = arith.constant 4 : index
    %c0_37 = arith.constant 0 : index
    %c0_38 = arith.constant 0 : index
    %67 = vector.load %arg4[%c4_36, %c0_37, %c0_38] : memref<5x84x256xf32, #tpu.memory_space<vmem>>, vector<1x84x256xf32>
    %68 = vector.shape_cast %67 : vector<1x84x256xf32> to vector<84x256xf32>
    %cst_39 = arith.constant dense<0.000000e+00> : vector<152x256xf32>
    %69 = tpu.matmul %66, %68, %cst_39 {dimension_numbers = #tpu.dot_dimension_numbers<[1], [0], [0], [1], [0, 0, 1, 1], [], []>} : vector<152x84xf32>, vector<84x256xf32>, vector<152x256xf32> -> vector<152x256xf32>
    %70 = arith.addf %64, %69 : vector<152x256xf32>
    %c0_40 = arith.constant 0 : index
    %c0_41 = arith.constant 0 : index
    %71 = vector.load %arg5[%c0_40, %c0_41] : memref<1x256xf32, #tpu.memory_space<vmem>>, vector<1x256xf32>
    %72 = vector.broadcast %71 : vector<1x256xf32> to vector<152x256xf32>
    %73 = arith.addf %70, %72 : vector<152x256xf32>
    %cst_42 = arith.constant 0.000000e+00 : f32
    %74 = vector.broadcast %cst_42 : f32 to vector<152x256xf32>
    %75 = arith.maximumf %73, %74 : vector<152x256xf32>
    %76 = vector.shape_cast %75 : vector<152x256xf32> to vector<19x8x256xf32>
    %77 = vector.extract_strided_slice %76 {offsets = [0, 0, 0], sizes = [17, 8, 256], strides = [1, 1, 1]} : vector<19x8x256xf32> to vector<17x8x256xf32>
    %78 = vector.extract_strided_slice %76 {offsets = [2, 0, 0], sizes = [17, 8, 256], strides = [1, 1, 1]} : vector<19x8x256xf32> to vector<17x8x256xf32>
    %79 = arith.maximumf %77, %78 : vector<17x8x256xf32>
    %80 = vector.extract_strided_slice %79 {offsets = [0, 0, 0], sizes = [17, 8, 80], strides = [1, 1, 1]} : vector<17x8x256xf32> to vector<17x8x80xf32>
    %81 = vector.extract_strided_slice %79 {offsets = [0, 0, 128], sizes = [17, 8, 80], strides = [1, 1, 1]} : vector<17x8x256xf32> to vector<17x8x80xf32>
    %82 = arith.maximumf %80, %81 : vector<17x8x80xf32>
    %83 = vector.extract_strided_slice %82 {offsets = [0, 0, 0], sizes = [1, 8, 80], strides = [1, 1, 1]} : vector<17x8x80xf32> to vector<1x8x80xf32>
    %84 = vector.shape_cast %83 : vector<1x8x80xf32> to vector<8x80xf32>
    %c0_43 = arith.constant 0 : index
    %c0_44 = arith.constant 0 : index
    %c0_45 = arith.constant 0 : index
    %85 = vector.load %arg6[%c0_43, %c0_44, %c0_45] : memref<5x80x128xf32, #tpu.memory_space<vmem>>, vector<1x80x128xf32>
    %86 = vector.shape_cast %85 : vector<1x80x128xf32> to vector<80x128xf32>
    %cst_46 = arith.constant dense<0.000000e+00> : vector<8x128xf32>
    %87 = tpu.matmul %84, %86, %cst_46 {dimension_numbers = #tpu.dot_dimension_numbers<[1], [0], [0], [1], [0, 0, 1, 1], [], []>} : vector<8x80xf32>, vector<80x128xf32>, vector<8x128xf32> -> vector<8x128xf32>
    %88 = vector.extract_strided_slice %82 {offsets = [4, 0, 0], sizes = [1, 8, 80], strides = [1, 1, 1]} : vector<17x8x80xf32> to vector<1x8x80xf32>
    %89 = vector.shape_cast %88 : vector<1x8x80xf32> to vector<8x80xf32>
    %c1_47 = arith.constant 1 : index
    %c0_48 = arith.constant 0 : index
    %c0_49 = arith.constant 0 : index
    %90 = vector.load %arg6[%c1_47, %c0_48, %c0_49] : memref<5x80x128xf32, #tpu.memory_space<vmem>>, vector<1x80x128xf32>
    %91 = vector.shape_cast %90 : vector<1x80x128xf32> to vector<80x128xf32>
    %cst_50 = arith.constant dense<0.000000e+00> : vector<8x128xf32>
    %92 = tpu.matmul %89, %91, %cst_50 {dimension_numbers = #tpu.dot_dimension_numbers<[1], [0], [0], [1], [0, 0, 1, 1], [], []>} : vector<8x80xf32>, vector<80x128xf32>, vector<8x128xf32> -> vector<8x128xf32>
    %93 = arith.addf %87, %92 : vector<8x128xf32>
    %94 = vector.extract_strided_slice %82 {offsets = [8, 0, 0], sizes = [1, 8, 80], strides = [1, 1, 1]} : vector<17x8x80xf32> to vector<1x8x80xf32>
    %95 = vector.shape_cast %94 : vector<1x8x80xf32> to vector<8x80xf32>
    %c2_51 = arith.constant 2 : index
    %c0_52 = arith.constant 0 : index
    %c0_53 = arith.constant 0 : index
    %96 = vector.load %arg6[%c2_51, %c0_52, %c0_53] : memref<5x80x128xf32, #tpu.memory_space<vmem>>, vector<1x80x128xf32>
    %97 = vector.shape_cast %96 : vector<1x80x128xf32> to vector<80x128xf32>
    %cst_54 = arith.constant dense<0.000000e+00> : vector<8x128xf32>
    %98 = tpu.matmul %95, %97, %cst_54 {dimension_numbers = #tpu.dot_dimension_numbers<[1], [0], [0], [1], [0, 0, 1, 1], [], []>} : vector<8x80xf32>, vector<80x128xf32>, vector<8x128xf32> -> vector<8x128xf32>
    %99 = arith.addf %93, %98 : vector<8x128xf32>
    %100 = vector.extract_strided_slice %82 {offsets = [12, 0, 0], sizes = [1, 8, 80], strides = [1, 1, 1]} : vector<17x8x80xf32> to vector<1x8x80xf32>
    %101 = vector.shape_cast %100 : vector<1x8x80xf32> to vector<8x80xf32>
    %c3_55 = arith.constant 3 : index
    %c0_56 = arith.constant 0 : index
    %c0_57 = arith.constant 0 : index
    %102 = vector.load %arg6[%c3_55, %c0_56, %c0_57] : memref<5x80x128xf32, #tpu.memory_space<vmem>>, vector<1x80x128xf32>
    %103 = vector.shape_cast %102 : vector<1x80x128xf32> to vector<80x128xf32>
    %cst_58 = arith.constant dense<0.000000e+00> : vector<8x128xf32>
    %104 = tpu.matmul %101, %103, %cst_58 {dimension_numbers = #tpu.dot_dimension_numbers<[1], [0], [0], [1], [0, 0, 1, 1], [], []>} : vector<8x80xf32>, vector<80x128xf32>, vector<8x128xf32> -> vector<8x128xf32>
    %105 = arith.addf %99, %104 : vector<8x128xf32>
    %106 = vector.extract_strided_slice %82 {offsets = [16, 0, 0], sizes = [1, 8, 80], strides = [1, 1, 1]} : vector<17x8x80xf32> to vector<1x8x80xf32>
    %107 = vector.shape_cast %106 : vector<1x8x80xf32> to vector<8x80xf32>
    %c4_59 = arith.constant 4 : index
    %c0_60 = arith.constant 0 : index
    %c0_61 = arith.constant 0 : index
    %108 = vector.load %arg6[%c4_59, %c0_60, %c0_61] : memref<5x80x128xf32, #tpu.memory_space<vmem>>, vector<1x80x128xf32>
    %109 = vector.shape_cast %108 : vector<1x80x128xf32> to vector<80x128xf32>
    %cst_62 = arith.constant dense<0.000000e+00> : vector<8x128xf32>
    %110 = tpu.matmul %107, %109, %cst_62 {dimension_numbers = #tpu.dot_dimension_numbers<[1], [0], [0], [1], [0, 0, 1, 1], [], []>} : vector<8x80xf32>, vector<80x128xf32>, vector<8x128xf32> -> vector<8x128xf32>
    %111 = arith.addf %105, %110 : vector<8x128xf32>
    %c0_63 = arith.constant 0 : index
    %c0_64 = arith.constant 0 : index
    %112 = vector.load %arg7[%c0_63, %c0_64] : memref<1x128xf32, #tpu.memory_space<vmem>>, vector<1x128xf32>
    %113 = vector.broadcast %112 : vector<1x128xf32> to vector<8x128xf32>
    %114 = arith.addf %111, %113 : vector<8x128xf32>
    %cst_65 = arith.constant 0.000000e+00 : f32
    %115 = vector.broadcast %cst_65 : f32 to vector<8x128xf32>
    %116 = arith.maximumf %114, %115 : vector<8x128xf32>
    %c0_66 = arith.constant 0 : index
    %c0_67 = arith.constant 0 : index
    %117 = vector.load %arg8[%c0_66, %c0_67] : memref<128x128xf32, #tpu.memory_space<vmem>>, vector<128x128xf32>
    %cst_68 = arith.constant dense<0.000000e+00> : vector<8x128xf32>
    %118 = tpu.matmul %116, %117, %cst_68 {dimension_numbers = #tpu.dot_dimension_numbers<[1], [0], [0], [1], [0, 0, 1, 1], [], []>} : vector<8x128xf32>, vector<128x128xf32>, vector<8x128xf32> -> vector<8x128xf32>
    %c0_69 = arith.constant 0 : index
    %c0_70 = arith.constant 0 : index
    %119 = vector.load %arg9[%c0_69, %c0_70] : memref<1x128xf32, #tpu.memory_space<vmem>>, vector<1x128xf32>
    %120 = vector.broadcast %119 : vector<1x128xf32> to vector<8x128xf32>
    %121 = arith.addf %118, %120 : vector<8x128xf32>
    %cst_71 = arith.constant 0.000000e+00 : f32
    %122 = vector.broadcast %cst_71 : f32 to vector<8x128xf32>
    %123 = arith.maximumf %121, %122 : vector<8x128xf32>
    %c0_72 = arith.constant 0 : index
    %c0_73 = arith.constant 0 : index
    %124 = vector.load %arg10[%c0_72, %c0_73] : memref<128x128xf32, #tpu.memory_space<vmem>>, vector<128x128xf32>
    %cst_74 = arith.constant dense<0.000000e+00> : vector<8x128xf32>
    %125 = tpu.matmul %123, %124, %cst_74 {dimension_numbers = #tpu.dot_dimension_numbers<[1], [0], [0], [1], [0, 0, 1, 1], [], []>} : vector<8x128xf32>, vector<128x128xf32>, vector<8x128xf32> -> vector<8x128xf32>
    %c0_75 = arith.constant 0 : index
    %c0_76 = arith.constant 0 : index
    %126 = vector.load %arg11[%c0_75, %c0_76] : memref<1x128xf32, #tpu.memory_space<vmem>>, vector<1x128xf32>
    %127 = vector.broadcast %126 : vector<1x128xf32> to vector<8x128xf32>
    %128 = arith.addf %125, %127 : vector<8x128xf32>
    %c0_77 = arith.constant 0 : index
    %c0_78 = arith.constant 0 : index
    %129 = vector.load %arg12[%c0_77, %c0_78] : memref<8x128xf32, #tpu.memory_space<vmem>>, vector<8x128xf32>
    tpu.vector_store %arg12[%c0_77, %c0_78], %128 {strides = array<i32>} : memref<8x128xf32, #tpu.memory_space<vmem>>, vector<8x128xf32>,
    return
  }
  func.func @transform_0(%arg0: i32) -> (i32, i32, i32) {
    %c0_i32 = arith.constant 0 : i32
    %c0_i32_0 = arith.constant 0 : i32
    %c0_i32_1 = arith.constant 0 : i32
    return %c0_i32, %arg0, %c0_i32_0 : i32, i32, i32
  }
  func.func @transform_1(%arg0: i32) -> (i32, i32, i32) {
    %c0_i32 = arith.constant 0 : i32
    %c0_i32_0 = arith.constant 0 : i32
    %c0_i32_1 = arith.constant 0 : i32
    %c0_i32_2 = arith.constant 0 : i32
    return %c0_i32, %c0_i32_0, %c0_i32_1 : i32, i32, i32
  }
  func.func @transform_2(%arg0: i32) -> (i32, i32) {
    %c0_i32 = arith.constant 0 : i32
    %c0_i32_0 = arith.constant 0 : i32
    %c0_i32_1 = arith.constant 0 : i32
    return %c0_i32, %c0_i32_0 : i32, i32
  }
  func.func @transform_3(%arg0: i32) -> (i32, i32, i32) {
    %c0_i32 = arith.constant 0 : i32
    %c0_i32_0 = arith.constant 0 : i32
    %c0_i32_1 = arith.constant 0 : i32
    %c0_i32_2 = arith.constant 0 : i32
    return %c0_i32, %c0_i32_0, %c0_i32_1 : i32, i32, i32
  }
  func.func @transform_4(%arg0: i32) -> (i32, i32) {
    %c0_i32 = arith.constant 0 : i32
    %c0_i32_0 = arith.constant 0 : i32
    %c0_i32_1 = arith.constant 0 : i32
    return %c0_i32, %c0_i32_0 : i32, i32
  }
  func.func @transform_5(%arg0: i32) -> (i32, i32, i32) {
    %c0_i32 = arith.constant 0 : i32
    %c0_i32_0 = arith.constant 0 : i32
    %c0_i32_1 = arith.constant 0 : i32
    %c0_i32_2 = arith.constant 0 : i32
    return %c0_i32, %c0_i32_0, %c0_i32_1 : i32, i32, i32
  }
  func.func @transform_6(%arg0: i32) -> (i32, i32) {
    %c0_i32 = arith.constant 0 : i32
    %c0_i32_0 = arith.constant 0 : i32
    %c0_i32_1 = arith.constant 0 : i32
    return %c0_i32, %c0_i32_0 : i32, i32
  }
  func.func @transform_7(%arg0: i32) -> (i32, i32) {
    %c0_i32 = arith.constant 0 : i32
    %c0_i32_0 = arith.constant 0 : i32
    %c0_i32_1 = arith.constant 0 : i32
    return %c0_i32, %c0_i32_0 : i32, i32
  }
  func.func @transform_8(%arg0: i32) -> (i32, i32) {
    %c0_i32 = arith.constant 0 : i32
    %c0_i32_0 = arith.constant 0 : i32
    %c0_i32_1 = arith.constant 0 : i32
    return %c0_i32, %c0_i32_0 : i32, i32
  }
  func.func @transform_9(%arg0: i32) -> (i32, i32) {
    %c0_i32 = arith.constant 0 : i32
    %c0_i32_0 = arith.constant 0 : i32
    %c0_i32_1 = arith.constant 0 : i32
    return %c0_i32, %c0_i32_0 : i32, i32
  }
  func.func @transform_10(%arg0: i32) -> (i32, i32) {
    %c0_i32 = arith.constant 0 : i32
    %c0_i32_0 = arith.constant 0 : i32
    %c0_i32_1 = arith.constant 0 : i32
    return %c0_i32, %c0_i32_0 : i32, i32
  }
  func.func @transform_11(%arg0: i32) -> (i32, i32) {
    %c0_i32 = arith.constant 0 : i32
    %c0_i32_0 = arith.constant 0 : i32
    return %arg0, %c0_i32 : i32, i32
  }
}

</mosaic_0001>

<bundles_post_ra>
// kernel: cnn_cifar_forward.1
= control target key start
LH: loop header
LB: loop body
LE: loop exit
PB: predicated region body
PF: predicated region fallthrough
CT: control target
= control target key end

     0   :  { %16 = vsyncpa [#allocation3], 0  ;;  %s6682_s0 = inlined_call_operand.vmem [shape: f32[32,8,96], index: 0, kind: input, shape index: {}]   ;;  %s6683_s1 = inlined_call_operand.vmem [shape: f32[5,96,256], index: 1, kind: input, shape index: {}]   ;;  %s6684_s2 = inlined_call_operand.vmem [shape: f32[1,256], index: 2, kind: input, shape index: {}]   ;;  %s6685_s3 = inlined_call_operand.hbm [shape: f32[5,84,256], index: 3, kind: input, shape index: {}]   ;;  %s6686_s4 = inlined_call_operand.vmem [shape: f32[1,256], index: 4, kind: input, shape index: {}]   ;;  %s6687_s5 = inlined_call_operand.hbm [shape: f32[5,80,128], index: 5, kind: input, shape index: {}]   ;;  %s6688_s6 = inlined_call_operand.vmem [shape: f32[1,128], index: 6, kind: input, shape index: {}]   ;;  %s6689_s7 = inlined_call_operand.hbm [shape: f32[128,128], index: 7, kind: input, shape index: {}]   ;;  %s6690_s8 = inlined_call_operand.vmem [shape: f32[1,128], index: 8, kind: input, shape index: {}]   ;;  %s6691_s9 = inlined_call_operand.hbm [shape: f32[128,128], index: 9, kind: input, shape index: {}]   ;;  %s6692_s10 = inlined_call_operand.vmem [shape: f32[1,128], index: 10, kind: input, shape index: {}]   ;;  %s6693_s11 = inlined_call_operand.vmem [shape: f32[8,128], index: 11, kind: output, shape index: {}]  }
   0x1   :  { %17 = vsyncpa [#allocation5], 0 }
   0x2   :  { %18 = vsyncpa [#allocation8], 0  ;;  %s5045_s17 = smov [#allocation4]   ;;  %s4951_s21 = scalar_lea.hbm %s6687_s5, 6400 }
   0x3   :  { %s44_s18 = sshll.u32 %s5045_s17, 4  ;;  %p4952_p0 = scmp.ne.s32.totalorder %s6687_s5, %s4951_s21  ;;  %s45_s18 = int_to_ptr.vmem [resolvable:$true] %s44_s18 }
   0x4   :  { %p4955_p1 = scmp.lt.u32.totalorder %s4951_s21, %s6687_s5 }
   0x6   :  { %p4957_p2 = pnand %p4955_p1, %p4952_p0 }
   0x8   :  { %4960 = shalt.err (!%p4957_p2)
}
   0x9   :  { %s4961_s26 = scalar_lea.vmem %s45_s18, 6400  ;;  %p4966_p4 = scmp.lt.s32.totalorder %s45_s18, %s45_s18 }
   0xa   :  { %p4962_p3 = scmp.ne.s32.totalorder %s45_s18, %s4961_s26  ;;  %p4967_p5 = scmp.lt.s32.totalorder %s4961_s26, %s4961_s26 }
   0xc   :  { %p4968_p6 = por %p4967_p5, %p4966_p4 }
   0xe   :  { %p4969_p7 = pnand %p4968_p6, %p4962_p3 }
  0x10   :  { %4972 = shalt.err (!%p4969_p7)
}
  0x11   :  { %s5046_s27 = smov 128   ;;  %s5047_s28 = smov 8  }
  0x12   :  { %50 = dma.hbm_to_vmem [thread:$0]  %s6687_s5, 6400, %s45_s18, [#allocation5], %s5046_s27, %s5046_s27, %s5047_s28  }
  0x13   :  { %s5048_s12 = smov [#allocation2]   ;;  %s4973_s16 = scalar_lea.hbm %s6685_s3, 14080 }
  0x14   :  { %s30_s13 = sshll.u32 %s5048_s12, 4  ;;  %p4974_p8 = scmp.ne.s32.totalorder %s6685_s3, %s4973_s16  ;;  %s31_s13 = int_to_ptr.vmem [resolvable:$true] %s30_s13 }
  0x15   :  { %p4977_p9 = scmp.lt.u32.totalorder %s4973_s16, %s6685_s3 }
  0x17   :  { %p4979_p10 = pnand %p4977_p9, %p4974_p8 }
  0x19   :  { %4982 = shalt.err (!%p4979_p10)
}
  0x1a   :  { %s4983_s22 = scalar_lea.vmem %s31_s13, 14080  ;;  %p4988_p12 = scmp.lt.s32.totalorder %s31_s13, %s31_s13 }
  0x1b   :  { %p4984_p11 = scmp.ne.s32.totalorder %s31_s13, %s4983_s22  ;;  %p4989_p13 = scmp.lt.s32.totalorder %s4983_s22, %s4983_s22 }
  0x1d   :  { %p4990_p0 = por %p4989_p13, %p4988_p12 }
  0x1f   :  { %p4991_p1 = pnand %p4990_p0, %p4984_p11 }
  0x21   :  { %4994 = shalt.err (!%p4991_p1)
}
  0x22   :  { %s5049_s5 = smov 256   ;;  %s5050_s18 = smov 16  }
  0x23   :  { %36 = dma.hbm_to_vmem [thread:$0]  %s6685_s3, 14080, %s31_s13, [#allocation3], %s5049_s5, %s5049_s5, %s5050_s18  }
  0x24   :  { %s5051_s25 = smov [#allocation6]   ;;  %s5052_s29 = smov [#allocation7]  }
  0x25   :  { %s58_s26 = sshll.u32 %s5051_s25, 4  ;;  %s72_s30 = sshll.u32 %s5052_s29, 4  ;;  %s59_s26 = int_to_ptr.vmem [resolvable:$true] %s58_s26  ;;  %s5143_s30 = int_to_ptr.vmem [resolvable:$true] %s72_s30 }
  0x26   :  { %s4995_s15 = scalar_lea.hbm %s6689_s7, 2048 }
  0x27   :  { %p4996_p2 = scmp.ne.s32.totalorder %s6689_s7, %s4995_s15  ;;  %p4999_p3 = scmp.lt.u32.totalorder %s4995_s15, %s6689_s7 }
  0x29   :  { %p5001_p4 = pnand %p4999_p3, %p4996_p2 }
  0x2b   :  { %5004 = shalt.err (!%p5001_p4)
}
  0x2c   :  { %s5005_s3 = scalar_lea.vmem %s59_s26, 2048  ;;  %p5010_p6 = scmp.lt.s32.totalorder %s59_s26, %s59_s26 }
  0x2d   :  { %p5006_p5 = scmp.ne.s32.totalorder %s59_s26, %s5005_s3  ;;  %p5011_p7 = scmp.lt.s32.totalorder %s5005_s3, %s5005_s3 }
  0x2f   :  { %p5012_p8 = por %p5011_p7, %p5010_p6 }
  0x31   :  { %p5013_p9 = pnand %p5012_p8, %p5006_p5 }
  0x33   :  { %5016 = shalt.err (!%p5013_p9)
}
  0x34   :  { %64 = dma.hbm_to_vmem [thread:$0]  %s6689_s7, 2048, %s59_s26, [#allocation5], %s5046_s27, %s5046_s27, %s5047_s28  }
  0x35   :  { %s5017_s18 = scalar_lea.hbm %s6691_s9, 2048 }
  0x36   :  { %p5018_p10 = scmp.ne.s32.totalorder %s6691_s9, %s5017_s18  ;;  %p5021_p11 = scmp.lt.u32.totalorder %s5017_s18, %s6691_s9 }
  0x38   :  { %p5023_p12 = pnand %p5021_p11, %p5018_p10 }
  0x3a   :  { %5026 = shalt.err (!%p5023_p12)
}
  0x3b   :  { %s5027_s12 = scalar_lea.vmem %s5143_s30, 2048  ;;  %p5032_p0 = scmp.lt.s32.totalorder %s5143_s30, %s5143_s30 }
  0x3c   :  { %p5028_p13 = scmp.ne.s32.totalorder %s5143_s30, %s5027_s12  ;;  %p5033_p1 = scmp.lt.s32.totalorder %s5027_s12, %s5027_s12 }
  0x3e   :  { %p5034_p2 = por %p5033_p1, %p5032_p0 }
  0x40   :  { %p5035_p3 = pnand %p5034_p2, %p5028_p13 }
  0x42   :  { %5038 = shalt.err (!%p5035_p3)
}
  0x43   :  { %78 = dma.hbm_to_vmem [thread:$0]  %s6691_s9, 2048, %s5143_s30, [#allocation8], %s5046_s27, %s5046_s27, %s5047_s28  }
  0x44   :  { %5039 = dma.done.wait [#allocation3], 14080  }
  0x45   :  { %5040 = vsyncadd [#allocation3], 4294953216 }
  0x46   :  { %5041 = dma.done.wait [#allocation5], 8448  }
  0x47   :  { %5042 = vsyncadd [#allocation5], 4294958848 }
  0x48   :  { %5043 = dma.done.wait [#allocation8], 2048  }
  0x49   :  { %5044 = vsyncadd [#allocation8], 4294965248  ;;  %v5053_v0 = vmov 0.0   ;;  %v3671_v1 = vld [vmem:[%s6683_s1 + $0xc8] sm:$0xff]  ;;  %v3673_v2 = vld [vmem:[%s6683_s1 + $0xd8] sm:$0xff]  ;;  %vm174_vm0 = vcmask 785408  }
  0x4a   :  { %323 = vmatprep.mubr.f32.mxu0 %v5053_v0  ;;  %2058 = vmatprep.mubr.f32.mxu1 %v5053_v0  ;;  %v3670_v3 = vld [vmem:[%s6683_s1 + $0xc0] sm:$0xff]  ;;  %v4293_v4 = vpack.c.bf16 %v3673_v2, %v3671_v1  ;;  %v3672_v5 = vld [vmem:[%s6683_s1 + $0xd0] sm:$0xff]  ;;  %v3675_v6 = vld [vmem:[%s6683_s1 + $0xe8] sm:$0xff]  ;;  %vm1987_vm1 = vcmask 1043456   ;;  %vm1929_vm2 = vcmask 687104   ;;  %vm5055_vm3 = vmmov 0  }
  0x4b   :  { %v3677_v7 = vld [vmem:[%s6683_s1 + $0xf8] sm:$0xff]  ;;  %v4295_v8 = vpack.c.bf16 %v3672_v5, %v3670_v3  ;;  %v3674_v10 = vld [vmem:[%s6683_s1 + $0xe0] sm:$0xff]  ;;  %v3676_v11 = vld [vmem:[%s6683_s1 + $0xf0] sm:$0xff]  ;;  %vm3064_vm4 = vcmask 654336  }
  0x4c   :  { %v4297_v9 = vpack.c.bf16 %v3677_v7, %v3675_v6  ;;  %v3679_v12 = vld [vmem:[%s6683_s1 + $0x108] sm:$0xff]  ;;  %4294 = vmatprep.subr.bf16.mxu0 %v4293_v4  ;;  %v3681_v13 = vld [vmem:[%s6683_s1 + $0x118] sm:$0xff]  ;;  %v4299_v14 = vpack.c.bf16 %v3676_v11, %v3674_v10  ;;  %v3678_v16 = vld [vmem:[%s6683_s1 + $0x100] sm:$0xff] }
  0x4d   :  { %4296 = vmatpush1.bf16.msra.mxu0 %v4295_v8  ;;  %v4301_v15 = vpack.c.bf16 %v3681_v13, %v3679_v12  ;;  %v3680_v17 = vld [vmem:[%s6683_s1 + $0x110] sm:$0xff]  ;;  %v3683_v18 = vld [vmem:[%s6683_s1 + $0x128] sm:$0xff]  ;;  %v3685_v19 = vld [vmem:[%s6683_s1 + $0x138] sm:$0xff] }
  0x4e   :  { %4298 = vmatprep.subr.bf16.mxu0 %v4297_v9  ;;  %v4303_v20 = vpack.c.bf16 %v3680_v17, %v3678_v16  ;;  %v4305_v21 = vpack.c.bf16 %v3685_v19, %v3683_v18  ;;  %v3682_v22 = vld [vmem:[%s6683_s1 + $0x120] sm:$0xff]  ;;  %v3684_v23 = vld [vmem:[%s6683_s1 + $0x130] sm:$0xff]  ;;  %v3687_v24 = vld [vmem:[%s6683_s1 + $0x148] sm:$0xff] }
  0x4f   :  { %v3689_v25 = vld [vmem:[%s6683_s1 + $0x158] sm:$0xff]  ;;  %v4307_v26 = vpack.c.bf16 %v3684_v23, %v3682_v22  ;;  %v3686_v28 = vld [vmem:[%s6683_s1 + $0x140] sm:$0xff]  ;;  %v3688_v29 = vld [vmem:[%s6683_s1 + $0x150] sm:$0xff] }
  0x50   :  { %v4309_v27 = vpack.c.bf16 %v3689_v25, %v3687_v24  ;;  %v3691_v30 = vld [vmem:[%s6683_s1 + $0x168] sm:$0xff]  ;;  %v3693_v31 = vld [vmem:[%s6683_s1 + $0x178] sm:$0xff]  ;;  %v4311_v32 = vpack.c.bf16 %v3688_v29, %v3686_v28  ;;  %v3690_v34 = vld [vmem:[%s6683_s1 + $0x160] sm:$0xff] }
  0x51   :  { %4300 = vmatpush1.bf16.msra.mxu0 %v4299_v14  ;;  %v4313_v33 = vpack.c.bf16 %v3693_v31, %v3691_v30  ;;  %v3692_v35 = vld [vmem:[%s6683_s1 + $0x170] sm:$0xff]  ;;  %v126_v36 = vld [vmem:[%s6683_s1 + $0x8] sm:$0xff]  ;;  %v128_v37 = vld [vmem:[%s6683_s1 + $0x18] sm:$0xff] }
  0x52   :  { %4302 = vmatprep.subr.bf16.mxu0 %v4301_v15  ;;  %v4315_v38 = vpack.c.bf16 %v3692_v35, %v3690_v34  ;;  %v4317_v39 = vpack.c.bf16 %v128_v37, %v126_v36  ;;  %v125_v40 = vld [vmem:[%s6683_s1] sm:$0xff]  ;;  %v127_v41 = vld [vmem:[%s6683_s1 + $0x10] sm:$0xff]  ;;  %v130_v42 = vld [vmem:[%s6683_s1 + $0x28] sm:$0xff] }
  0x53   :  { %v132_v43 = vld [vmem:[%s6683_s1 + $0x38] sm:$0xff]  ;;  %v5275_v44 = vld [vmem:[%s6682_s0 + $0x8] sm:$0xff]  ;;  %v4319_v45 = vpack.c.bf16 %v127_v41, %v125_v40  ;;  %v129_v47 = vld [vmem:[%s6683_s1 + $0x20] sm:$0xff] }
  0x54   :  { %v4321_v46 = vpack.c.bf16 %v132_v43, %v130_v42  ;;  %v131_v48 = vld [vmem:[%s6683_s1 + $0x30] sm:$0xff]  ;;  %v134_v49 = vld [vmem:[%s6683_s1 + $0x48] sm:$0xff]  ;;  %v136_v50 = vld [vmem:[%s6683_s1 + $0x58] sm:$0xff] }
  0x55   :  { %4304 = vmatpush1.bf16.msra.mxu0 %v4303_v20  ;;  %v5295_v51 = vld [vmem:[%s6682_s0 + $0x10] sm:$0xff]  ;;  %v4323_v52 = vpack.c.bf16 %v131_v48, %v129_v47  ;;  %v4325_v53 = vpack.c.bf16 %v136_v50, %v134_v49  ;;  %v133_v54 = vld [vmem:[%s6683_s1 + $0x40] sm:$0xff]  ;;  %v138_v56 = vld [vmem:[%s6683_s1 + $0x68] sm:$0xff] }
  0x56   :  { %4306 = vmatprep.subr.bf16.mxu0 %v4305_v21  ;;  %v135_v55 = vld [vmem:[%s6683_s1 + $0x50] sm:$0xff]  ;;  %v140_v57 = vld [vmem:[%s6683_s1 + $0x78] sm:$0xff]  ;;  %v137_v61 = vld [vmem:[%s6683_s1 + $0x60] sm:$0xff] }
  0x57   :  { %v5315_v58 = vld [vmem:[%s6682_s0 + $0x18] sm:$0xff]  ;;  %v4327_v59 = vpack.c.bf16 %v135_v55, %v133_v54  ;;  %v4329_v60 = vpack.c.bf16 %v140_v57, %v138_v56  ;;  %v139_v62 = vld [vmem:[%s6683_s1 + $0x70] sm:$0xff]  ;;  %v142_v63 = vld [vmem:[%s6683_s1 + $0x88] sm:$0xff] }
  0x58   :  { %v144_v1 = vld [vmem:[%s6683_s1 + $0x98] sm:$0xff]  ;;  %v5335_v2 = vld [vmem:[%s6682_s0 + $0x20] sm:$0xff]  ;;  %v4331_v3 = vpack.c.bf16 %v139_v62, %v137_v61  ;;  %v143_v6 = vld [vmem:[%s6683_s1 + $0x90] sm:$0xff] }
  0x59   :  { %4308 = vmatpush1.bf16.msra.mxu0 %v4307_v26  ;;  %v4333_v4 = vpack.c.bf16 %v144_v1, %v142_v63  ;;  %v141_v5 = vld [vmem:[%s6683_s1 + $0x80] sm:$0xff]  ;;  %v146_v7 = vld [vmem:[%s6683_s1 + $0xa8] sm:$0xff]  ;;  %v148_v8 = vld [vmem:[%s6683_s1 + $0xb8] sm:$0xff] }
  0x5a   :  { %4310 = vmatprep.subr.bf16.mxu0 %v4309_v27  ;;  %v5355_v9 = vld [vmem:[%s6682_s0 + $0x28] sm:$0xff]  ;;  %v4335_v10 = vpack.c.bf16 %v143_v6, %v141_v5  ;;  %v4337_v11 = vpack.c.bf16 %v148_v8, %v146_v7  ;;  %v145_v12 = vld [vmem:[%s6683_s1 + $0xa0] sm:$0xff]  ;;  %v147_v13 = vld [vmem:[%s6683_s1 + $0xb0] sm:$0xff] }
  0x5b   :  { %v3751_v14 = vld [vmem:[%s6683_s1 + $0x188] sm:$0xff]  ;;  %v3753_v15 = vld [vmem:[%s6683_s1 + $0x198] sm:$0xff]  ;;  %v5375_v16 = vld [vmem:[%s6682_s0 + $0x30] sm:$0xff]  ;;  %v4339_v17 = vpack.c.bf16 %v147_v13, %v145_v12 }
  0x5c   :  { %v4341_v18 = vpack.c.bf16 %v3753_v15, %v3751_v14  ;;  %v5383_v19 = vld [vmem:[%s6682_s0 + $0x38] sm:$0xff]  ;;  %v5391_v20 = vld [vmem:[%s6682_s0 + $0x40] sm:$0xff]  ;;  %v5399_v21 = vld [vmem:[%s6682_s0 + $0x48] sm:$0xff] }
  0x5d   :  { %4312 = vmatpush1.bf16.msra.mxu0 %v4311_v32  ;;  %v5407_v22 = vld [vmem:[%s6682_s0 + $0x50] sm:$0xff]  ;;  %v5415_v23 = vld [vmem:[%s6682_s0 + $0x58] sm:$0xff]  ;;  %v5423_v24 = vld [vmem:[%s6682_s0 + $0x60] sm:$0xff] }
  0x5e   :  { %4314 = vmatprep.subr.bf16.mxu0 %v4313_v33  ;;  %v5431_v25 = vld [vmem:[%s6682_s0 + $0x68] sm:$0xff]  ;;  %v5439_v26 = vld [vmem:[%s6682_s0 + $0x70] sm:$0xff]  ;;  %v5447_v27 = vld [vmem:[%s6682_s0 + $0x78] sm:$0xff] }
  0x5f   :  { %v5455_v28 = vld [vmem:[%s6682_s0 + $0x80] sm:$0xff]  ;;  %v5463_v29 = vld [vmem:[%s6682_s0 + $0x88] sm:$0xff]  ;;  %v5471_v30 = vld [vmem:[%s6682_s0 + $0x90] sm:$0xff] }
  0x60   :  { %v5479_v31 = vld [vmem:[%s6682_s0 + $0x98] sm:$0xff]  ;;  %v5487_v32 = vld [vmem:[%s6682_s0 + $0xa0] sm:$0xff]  ;;  %v5495_v33 = vld [vmem:[%s6682_s0 + $0xa8] sm:$0xff] }
  0x61   :  { %4316 = vmatpush1.bf16.msra.mxu0 %v4315_v38  ;;  %v5503_v34 = vld [vmem:[%s6682_s0 + $0xb0] sm:$0xff]  ;;  %v5511_v35 = vld [vmem:[%s6682_s0 + $0xb8] sm:$0xff]  ;;  %v5519_v36 = vld [vmem:[%s6682_s0 + $0xc0] sm:$0xff] }
  0x62   :  { %4318 = vmatprep.subr.bf16.mxu0 %v4317_v39  ;;  %v5527_v37 = vld [vmem:[%s6682_s0 + $0xc8] sm:$0xff]  ;;  %v5535_v38 = vld [vmem:[%s6682_s0 + $0xd0] sm:$0xff]  ;;  %v5543_v39 = vld [vmem:[%s6682_s0 + $0xd8] sm:$0xff] }
  0x63   :  { %v5551_v40 = vld [vmem:[%s6682_s0 + $0xe0] sm:$0xff]  ;;  %v3752_v42 = vld [vmem:[%s6683_s1 + $0x190] sm:$0xff]  ;;  %v3755_v43 = vld [vmem:[%s6683_s1 + $0x1a8] sm:$0xff] }
  0x64   :  { %3694 = vmatmul.mubr.msk.f32.vlgmr.msra.gmra.mrb[0].mxu0 %vm174_vm0, %v5275_v44  ;;  %v3750_v41 = vld [vmem:[%s6683_s1 + $0x180] sm:$0xff]  ;;  %v3756_v50 = vld [vmem:[%s6683_s1 + $0x1b0] sm:$0xff]  ;;  %v3771_v8 = vld [vmem:[%s6683_s1 + $0x228] sm:$0xff] }
  0x65   :  { %4320 = vmatpush1.bf16.msra.mxu0 %v4319_v45  ;;  %329 = vmatprep.mubr.f32.mxu0 %v5053_v0  ;;  %v3757_v45 = vld [vmem:[%s6683_s1 + $0x1b8] sm:$0xff]  ;;  %v4343_v47 = vpack.c.bf16 %v3752_v42, %v3750_v41  ;;  %v3754_v49 = vld [vmem:[%s6683_s1 + $0x1a0] sm:$0xff]  ;;  %v3760_v57 = vld [vmem:[%s6683_s1 + $0x1d0] sm:$0xff] }
  0x66   :  { %4322 = vmatprep.subr.bf16.mxu0 %v4321_v46  ;;  %v93_v46 = vld [vmem:[%s6682_s0] sm:$0xff]  ;;  %v4345_v48 = vpack.c.bf16 %v3757_v45, %v3755_v43  ;;  %v4347_v54 = vpack.c.bf16 %v3756_v50, %v3754_v49  ;;  %v3764_v1 = vld [vmem:[%s6683_s1 + $0x1f0] sm:$0xff]  ;;  %v3803_v15 = vld [vmem:[%s6683_s1 + $0x248] sm:$0xff] }
  0x67   :  { %v3758_v56 = vld [vmem:[%s6683_s1 + $0x1c0] sm:$0xff]  ;;  %v3768_v7 = vld [vmem:[%s6683_s1 + $0x210] sm:$0xff]  ;;  %v3807_v45 = vld [vmem:[%s6683_s1 + $0x268] sm:$0xff] }
  0x68   :  { %3695 = vmatmul.mubr.msk.f32.gmra.mrb[2].mxu0 %vm174_vm0, %v5295_v51  ;;  %v4351_v61 = vpack.c.bf16 %v3760_v57, %v3758_v56  ;;  %v3762_v63 = vld [vmem:[%s6683_s1 + $0x1e0] sm:$0xff]  ;;  %v3772_v14 = vld [vmem:[%s6683_s1 + $0x230] sm:$0xff] }
  0x69   :  { %335 = vmatprep.mubr.f32.mxu0 %v5053_v0  ;;  %4324 = vmatpush1.bf16.msra.mxu0 %v4323_v52  ;;  %v3759_v52 = vld [vmem:[%s6683_s1 + $0x1c8] sm:$0xff]  ;;  %v3766_v6 = vld [vmem:[%s6683_s1 + $0x200] sm:$0xff]  ;;  %v3804_v43 = vld [vmem:[%s6683_s1 + $0x250] sm:$0xff] }
  0x6a   :  { %4326 = vmatprep.subr.bf16.mxu0 %v4325_v53  ;;  %v3761_v53 = vld [vmem:[%s6683_s1 + $0x1d8] sm:$0xff]  ;;  %v3770_v13 = vld [vmem:[%s6683_s1 + $0x220] sm:$0xff]  ;;  %v3808_v50 = vld [vmem:[%s6683_s1 + $0x270] sm:$0xff] }
  0x6b   :  { %v4349_v55 = vpack.c.bf16 %v3761_v53, %v3759_v52  ;;  %v3802_v42 = vld [vmem:[%s6683_s1 + $0x240] sm:$0xff]  ;;  %v3811_v52 = vld [vmem:[%s6683_s1 + $0x288] sm:$0xff]  ;;  %v3813_v53 = vld [vmem:[%s6683_s1 + $0x298] sm:$0xff] }
  0x6c   :  { %3696 = vmatmul.mubr.msk.f32.gmra.mrb[4].mxu0 %vm174_vm0, %v5315_v58  ;;  %v3806_v49 = vld [vmem:[%s6683_s1 + $0x260] sm:$0xff]  ;;  %v3812_v57 = vld [vmem:[%s6683_s1 + $0x290] sm:$0xff] }
  0x6d   :  { %341 = vmatprep.mubr.f32.mxu0 %v5053_v0  ;;  %4328 = vmatpush1.bf16.msra.mxu0 %v4327_v59  ;;  %v3763_v59 = vld [vmem:[%s6683_s1 + $0x1e8] sm:$0xff]  ;;  %v3810_v56 = vld [vmem:[%s6683_s1 + $0x280] sm:$0xff] }
  0x6e   :  { %4330 = vmatprep.subr.bf16.mxu0 %v4329_v60  ;;  %v3765_v60 = vld [vmem:[%s6683_s1 + $0x1f8] sm:$0xff] }
  0x6f   :  { %v4353_v62 = vpack.c.bf16 %v3765_v60, %v3763_v59  ;;  %v3815_v59 = vld [vmem:[%s6683_s1 + $0x2a8] sm:$0xff]  ;;  %v4375_v60 = vpack.c.bf16 %v3812_v57, %v3810_v56  ;;  %v3862_v56 = vld [vmem:[%s6683_s1 + $0x340] sm:$0xff]  ;;  %v3864_v57 = vld [vmem:[%s6683_s1 + $0x350] sm:$0xff] }
  0x70   :  { %3697 = vmatmul.mubr.msk.f32.gmra.mrb[6].mxu0 %vm174_vm0, %v5335_v2 }
  0x71   :  { %347 = vmatprep.mubr.f32.mxu0 %v5053_v0  ;;  %4332 = vmatpush1.bf16.msra.mxu0 %v4331_v3  ;;  %v3767_v3 = vld [vmem:[%s6683_s1 + $0x208] sm:$0xff] }
  0x72   :  { %4334 = vmatprep.subr.bf16.mxu0 %v4333_v4  ;;  %v4355_v4 = vpack.c.bf16 %v3764_v1, %v3762_v63  ;;  %v3816_v63 = vld [vmem:[%s6683_s1 + $0x2b0] sm:$0xff]  ;;  %v3819_v1 = vld [vmem:[%s6683_s1 + $0x2c8] sm:$0xff] }
  0x74   :  { %3698 = vmatmul.mubr.msk.f32.gmra.mrb[8].mxu0 %vm174_vm0, %v5355_v9 }
  0x75   :  { %353 = vmatprep.mubr.f32.mxu0 %v5053_v0  ;;  %4336 = vmatpush1.bf16.msra.mxu0 %v4335_v10  ;;  %v3773_v10 = vld [vmem:[%s6683_s1 + $0x238] sm:$0xff] }
  0x76   :  { %4338 = vmatprep.subr.bf16.mxu0 %v4337_v11  ;;  %v4359_v11 = vpack.c.bf16 %v3768_v7, %v3766_v6  ;;  %v4361_v12 = vpack.c.bf16 %v3773_v10, %v3771_v8  ;;  %v3820_v6 = vld [vmem:[%s6683_s1 + $0x2d0] sm:$0xff]  ;;  %v3823_v7 = vld [vmem:[%s6683_s1 + $0x2e8] sm:$0xff]  ;;  %v3825_v8 = vld [vmem:[%s6683_s1 + $0x2f8] sm:$0xff] }
  0x78   :  { %3699 = vmatmul.mubr.msk.f32.gmra.mrb[10].mxu0 %vm174_vm0, %v5375_v16 }
  0x79   :  { %359 = vmatprep.mubr.f32.mxu0 %v5053_v0  ;;  %4340 = vmatpush1.bf16.msra.mxu0 %v4339_v17  ;;  %v3805_v17 = vld [vmem:[%s6683_s1 + $0x258] sm:$0xff] }
  0x7a   :  { %4342 = vmatprep.subr.bf16.mxu0 %v4341_v18  ;;  %v4363_v18 = vpack.c.bf16 %v3772_v14, %v3770_v13  ;;  %v4365_v41 = vpack.c.bf16 %v3805_v17, %v3803_v15  ;;  %v3824_v13 = vld [vmem:[%s6683_s1 + $0x2f0] sm:$0xff]  ;;  %v3855_v14 = vld [vmem:[%s6683_s1 + $0x308] sm:$0xff]  ;;  %v3857_v15 = vld [vmem:[%s6683_s1 + $0x318] sm:$0xff] }
  0x7c   :  { %3700 = vmatmul.mubr.msk.f32.gmra.mrb[12].mxu0 %vm174_vm0, %v5383_v19 }
  0x7d   :  { %365 = vmatprep.mubr.f32.mxu0 %v5053_v0 }
  0x80   :  { %3701 = vmatmul.mubr.msk.f32.gmra.mrb[14].mxu0 %vm174_vm0, %v5391_v20 }
  0x81   :  { %371 = vmatprep.mubr.f32.mxu0 %v5053_v0 }
  0x84   :  { %3702 = vmatmul.mubr.msk.f32.gmra.mrb[16].mxu0 %vm174_vm0, %v5399_v21 }
  0x85   :  { %377 = vmatprep.mubr.f32.mxu0 %v5053_v0 }
  0x88   :  { %3703 = vmatmul.mubr.msk.f32.gmra.mrb[18].mxu0 %vm174_vm0, %v5407_v22 }
  0x89   :  { %383 = vmatprep.mubr.f32.mxu0 %v5053_v0 }
  0x8c   :  { %3704 = vmatmul.mubr.msk.f32.gmra.mrb[20].mxu0 %vm174_vm0, %v5415_v23 }
  0x8d   :  { %389 = vmatprep.mubr.f32.mxu0 %v5053_v0 }
  0x90   :  { %3705 = vmatmul.mubr.msk.f32.gmra.mrb[22].mxu0 %vm174_vm0, %v5423_v24 }
  0x91   :  { %395 = vmatprep.mubr.f32.mxu0 %v5053_v0 }
  0x94   :  { %3706 = vmatmul.mubr.msk.f32.gmra.mrb[24].mxu0 %vm174_vm0, %v5431_v25 }
  0x95   :  { %401 = vmatprep.mubr.f32.mxu0 %v5053_v0 }
  0x98   :  { %3707 = vmatmul.mubr.msk.f32.gmra.mrb[26].mxu0 %vm174_vm0, %v5439_v26 }
  0x99   :  { %407 = vmatprep.mubr.f32.mxu0 %v5053_v0 }
  0x9c   :  { %3708 = vmatmul.mubr.msk.f32.gmra.mrb[28].mxu0 %vm174_vm0, %v5447_v27 }
  0x9d   :  { %413 = vmatprep.mubr.f32.mxu0 %v5053_v0 }
  0xa0   :  { %3709 = vmatmul.mubr.msk.f32.gmra.mrb[30].mxu0 %vm174_vm0, %v5455_v28 }
  0xa1   :  { %419 = vmatprep.mubr.f32.mxu0 %v5053_v0 }
  0xa4   :  { %3710 = vmatmul.mubr.msk.f32.gmra.mrb[32].mxu0 %vm174_vm0, %v5463_v29 }
  0xa5   :  { %425 = vmatprep.mubr.f32.mxu0 %v5053_v0 }
  0xa8   :  { %3711 = vmatmul.mubr.msk.f32.gmra.mrb[34].mxu0 %vm174_vm0, %v5471_v30 }
  0xa9   :  { %431 = vmatprep.mubr.f32.mxu0 %v5053_v0 }
  0xac   :  { %3712 = vmatmul.mubr.msk.f32.gmra.mrb[36].mxu0 %vm174_vm0, %v5479_v31 }
  0xad   :  { %437 = vmatprep.mubr.f32.mxu0 %v5053_v0 }
  0xb0   :  { %3713 = vmatmul.mubr.msk.f32.gmra.mrb[38].mxu0 %vm174_vm0, %v5487_v32 }
  0xb1   :  { %443 = vmatprep.mubr.f32.mxu0 %v5053_v0 }
  0xb4   :  { %3714 = vmatmul.mubr.msk.f32.gmra.mrb[40].mxu0 %vm174_vm0, %v5495_v33 }
  0xb5   :  { %449 = vmatprep.mubr.f32.mxu0 %v5053_v0 }
  0xb8   :  { %3715 = vmatmul.mubr.msk.f32.gmra.mrb[42].mxu0 %vm174_vm0, %v5503_v34 }
  0xb9   :  { %455 = vmatprep.mubr.f32.mxu0 %v5053_v0 }
  0xbc   :  { %3716 = vmatmul.mubr.msk.f32.gmra.mrb[44].mxu0 %vm174_vm0, %v5511_v35 }
  0xbd   :  { %461 = vmatprep.mubr.f32.mxu0 %v5053_v0 }
  0xc0   :  { %3717 = vmatmul.mubr.msk.f32.gmra.mrb[46].mxu0 %vm174_vm0, %v5519_v36 }
  0xc1   :  { %467 = vmatprep.mubr.f32.mxu0 %v5053_v0 }
  0xc4   :  { %3718 = vmatmul.mubr.msk.f32.gmra.mrb[48].mxu0 %vm174_vm0, %v5527_v37 }
  0xc5   :  { %473 = vmatprep.mubr.f32.mxu0 %v5053_v0 }
  0xc8   :  { %3719 = vmatmul.mubr.msk.f32.gmra.mrb[50].mxu0 %vm174_vm0, %v5535_v38 }
  0xc9   :  { %479 = vmatprep.mubr.f32.mxu0 %v5053_v0 }
  0xcc   :  { %3720 = vmatmul.mubr.msk.f32.gmra.mrb[52].mxu0 %vm174_vm0, %v5543_v39 }
  0xcd   :  { %485 = vmatprep.mubr.f32.mxu0 %v5053_v0 }
  0xd0   :  { %3721 = vmatmul.mubr.msk.f32.gmra.mrb[54].mxu0 %vm174_vm0, %v5551_v40 }
  0xd1   :  { %559 = vmatprep.mubr.f32.mxu0 %v5053_v0 }
  0xd4   :  { %3722 = vmatmul.mubr.msk.f32.vlgmr.msra.gmra.mrb[0].mxu0 %vm174_vm0, %v93_v46  ;;  %v3809_v46 = vld [vmem:[%s6683_s1 + $0x278] sm:$0xff] }
  0xd5   :  { %4344 = vmatpush1.bf16.msra.mxu0 %v4343_v47  ;;  %565 = vmatprep.mubr.f32.mxu0 %v5053_v0  ;;  %v4367_v47 = vpack.c.bf16 %v3804_v43, %v3802_v42  ;;  %v3854_v42 = vld [vmem:[%s6683_s1 + $0x300] sm:$0xff]  ;;  %v3856_v43 = vld [vmem:[%s6683_s1 + $0x310] sm:$0xff] }
  0xd6   :  { %4346 = vmatprep.subr.bf16.mxu0 %v4345_v48  ;;  %v4369_v48 = vpack.c.bf16 %v3809_v46, %v3807_v45  ;;  %v3859_v45 = vld [vmem:[%s6683_s1 + $0x328] sm:$0xff]  ;;  %v3861_v46 = vld [vmem:[%s6683_s1 + $0x338] sm:$0xff] }
  0xd8   :  { %3723 = vmatmul.mubr.msk.f32.gmra.mrb[2].mxu0 %vm174_vm0, %v5275_v44  ;;  %v3769_v44 = vld [vmem:[%s6683_s1 + $0x218] sm:$0xff] }
  0xd9   :  { %571 = vmatprep.mubr.f32.mxu0 %v5053_v0  ;;  %4348 = vmatpush1.bf16.msra.mxu0 %v4347_v54  ;;  %v4357_v5 = vpack.c.bf16 %v3769_v44, %v3767_v3  ;;  %v4371_v54 = vpack.c.bf16 %v3808_v50, %v3806_v49  ;;  %v3821_v3 = vld [vmem:[%s6683_s1 + $0x2d8] sm:$0xff]  ;;  %v3858_v49 = vld [vmem:[%s6683_s1 + $0x320] sm:$0xff]  ;;  %v3860_v50 = vld [vmem:[%s6683_s1 + $0x330] sm:$0xff] }
  0xda   :  { %4350 = vmatprep.subr.bf16.mxu0 %v4349_v55  ;;  %v4373_v55 = vpack.c.bf16 %v3813_v53, %v3811_v52  ;;  %v3863_v52 = vld [vmem:[%s6683_s1 + $0x348] sm:$0xff]  ;;  %v3865_v53 = vld [vmem:[%s6683_s1 + $0x358] sm:$0xff] }
  0xdc   :  { %3724 = vmatmul.mubr.msk.f32.gmra.mrb[4].mxu0 %vm174_vm0, %v5295_v51 }
  0xdd   :  { %577 = vmatprep.mubr.f32.mxu0 %v5053_v0  ;;  %4352 = vmatpush1.bf16.msra.mxu0 %v4351_v61 }
  0xde   :  { %4354 = vmatprep.subr.bf16.mxu0 %v4353_v62  ;;  %v3814_v62 = vld [vmem:[%s6683_s1 + $0x2a0] sm:$0xff] }
  0xdf   :  { %v4379_v44 = vpack.c.bf16 %v3816_v63, %v3814_v62  ;;  %v3868_v62 = vld [vmem:[%s6683_s1 + $0x370] sm:$0xff]  ;;  %v3871_v63 = vld [vmem:[%s6683_s1 + $0x388] sm:$0xff] }
  0xe0   :  { %3725 = vmatmul.mubr.msk.f32.gmra.mrb[6].mxu0 %vm174_vm0, %v5315_v58 }
  0xe1   :  { %583 = vmatprep.mubr.f32.mxu0 %v5053_v0  ;;  %4356 = vmatpush1.bf16.msra.mxu0 %v4355_v4  ;;  %v4381_v4 = vpack.c.bf16 %v3821_v3, %v3819_v1  ;;  %v3873_v1 = vld [vmem:[%s6683_s1 + $0x398] sm:$0xff] }
  0xe2   :  { %4358 = vmatprep.subr.bf16.mxu0 %v4357_v5  ;;  %v3818_v5 = vld [vmem:[%s6683_s1 + $0x2c0] sm:$0xff] }
  0xe3   :  { %v4383_v10 = vpack.c.bf16 %v3820_v6, %v3818_v5  ;;  %v3872_v5 = vld [vmem:[%s6683_s1 + $0x390] sm:$0xff]  ;;  %v3875_v6 = vld [vmem:[%s6683_s1 + $0x3a8] sm:$0xff] }
  0xe4   :  { %3726 = vmatmul.mubr.msk.f32.gmra.mrb[8].mxu0 %vm174_vm0, %v5335_v2 }
  0xe5   :  { %589 = vmatprep.mubr.f32.mxu0 %v5053_v0  ;;  %4360 = vmatpush1.bf16.msra.mxu0 %v4359_v11  ;;  %v4385_v11 = vpack.c.bf16 %v3825_v8, %v3823_v7  ;;  %v3877_v7 = vld [vmem:[%s6683_s1 + $0x3b8] sm:$0xff] }
  0xe6   :  { %4362 = vmatprep.subr.bf16.mxu0 %v4361_v12  ;;  %v3822_v12 = vld [vmem:[%s6683_s1 + $0x2e0] sm:$0xff] }
  0xe7   :  { %v4387_v17 = vpack.c.bf16 %v3824_v13, %v3822_v12  ;;  %v3876_v12 = vld [vmem:[%s6683_s1 + $0x3b0] sm:$0xff] }
  0xe8   :  { %3727 = vmatmul.mubr.msk.f32.gmra.mrb[10].mxu0 %vm174_vm0, %v5355_v9 }
  0xe9   :  { %595 = vmatprep.mubr.f32.mxu0 %v5053_v0  ;;  %4364 = vmatpush1.bf16.msra.mxu0 %v4363_v18  ;;  %v4389_v18 = vpack.c.bf16 %v3857_v15, %v3855_v14  ;;  %v6025_v14 = vld [vmem:[%s6682_s0 + $0xf0] sm:$0xff] }
  0xea   :  { %4366 = vmatprep.subr.bf16.mxu0 %v4365_v41  ;;  %v5870_v41 = vld [vmem:[%s6682_s0 + $0xe8] sm:$0xff] }
  0xec   :  { %3728 = vmatmul.mubr.msk.f32.gmra.mrb[12].mxu0 %vm174_vm0, %v5375_v16 }
  0xed   :  { %601 = vmatprep.mubr.f32.mxu0 %v5053_v0 }
  0xf0   :  { %3729 = vmatmul.mubr.msk.f32.gmra.mrb[14].mxu0 %vm174_vm0, %v5383_v19 }
  0xf1   :  { %607 = vmatprep.mubr.f32.mxu0 %v5053_v0 }
  0xf4   :  { %3730 = vmatmul.mubr.msk.f32.gmra.mrb[16].mxu0 %vm174_vm0, %v5391_v20 }
  0xf5   :  { %613 = vmatprep.mubr.f32.mxu0 %v5053_v0 }
  0xf8   :  { %3731 = vmatmul.mubr.msk.f32.gmra.mrb[18].mxu0 %vm174_vm0, %v5399_v21 }
  0xf9   :  { %619 = vmatprep.mubr.f32.mxu0 %v5053_v0 }
  0xfc   :  { %3732 = vmatmul.mubr.msk.f32.gmra.mrb[20].mxu0 %vm174_vm0, %v5407_v22 }
  0xfd   :  { %625 = vmatprep.mubr.f32.mxu0 %v5053_v0 }
 0x100   :  { %3733 = vmatmul.mubr.msk.f32.gmra.mrb[22].mxu0 %vm174_vm0, %v5415_v23 }
 0x101   :  { %631 = vmatprep.mubr.f32.mxu0 %v5053_v0 }
 0x104   :  { %3734 = vmatmul.mubr.msk.f32.gmra.mrb[24].mxu0 %vm174_vm0, %v5423_v24 }
 0x105   :  { %637 = vmatprep.mubr.f32.mxu0 %v5053_v0 }
 0x108   :  { %3735 = vmatmul.mubr.msk.f32.gmra.mrb[26].mxu0 %vm174_vm0, %v5431_v25 }
 0x109   :  { %643 = vmatprep.mubr.f32.mxu0 %v5053_v0 }
 0x10c   :  { %3736 = vmatmul.mubr.msk.f32.gmra.mrb[28].mxu0 %vm174_vm0, %v5439_v26 }
 0x10d   :  { %649 = vmatprep.mubr.f32.mxu0 %v5053_v0 }
 0x110   :  { %3737 = vmatmul.mubr.msk.f32.gmra.mrb[30].mxu0 %vm174_vm0, %v5447_v27 }
 0x111   :  { %655 = vmatprep.mubr.f32.mxu0 %v5053_v0 }
 0x114   :  { %3738 = vmatmul.mubr.msk.f32.gmra.mrb[32].mxu0 %vm174_vm0, %v5455_v28 }
 0x115   :  { %661 = vmatprep.mubr.f32.mxu0 %v5053_v0 }
 0x118   :  { %3739 = vmatmul.mubr.msk.f32.gmra.mrb[34].mxu0 %vm174_vm0, %v5463_v29 }
 0x119   :  { %667 = vmatprep.mubr.f32.mxu0 %v5053_v0 }
 0x11c   :  { %3740 = vmatmul.mubr.msk.f32.gmra.mrb[36].mxu0 %vm174_vm0, %v5471_v30 }
 0x11d   :  { %673 = vmatprep.mubr.f32.mxu0 %v5053_v0 }
 0x120   :  { %3741 = vmatmul.mubr.msk.f32.gmra.mrb[38].mxu0 %vm174_vm0, %v5479_v31 }
 0x121   :  { %679 = vmatprep.mubr.f32.mxu0 %v5053_v0 }
 0x124   :  { %3742 = vmatmul.mubr.msk.f32.gmra.mrb[40].mxu0 %vm174_vm0, %v5487_v32 }
 0x125   :  { %685 = vmatprep.mubr.f32.mxu0 %v5053_v0 }
 0x128   :  { %3743 = vmatmul.mubr.msk.f32.gmra.mrb[42].mxu0 %vm174_vm0, %v5495_v33 }
 0x129   :  { %691 = vmatprep.mubr.f32.mxu0 %v5053_v0 }
 0x12c   :  { %3744 = vmatmul.mubr.msk.f32.gmra.mrb[44].mxu0 %vm174_vm0, %v5503_v34 }
 0x12d   :  { %697 = vmatprep.mubr.f32.mxu0 %v5053_v0 }
 0x130   :  { %3745 = vmatmul.mubr.msk.f32.gmra.mrb[46].mxu0 %vm174_vm0, %v5511_v35 }
 0x131   :  { %703 = vmatprep.mubr.f32.mxu0 %v5053_v0 }
 0x134   :  { %3746 = vmatmul.mubr.msk.f32.gmra.mrb[48].mxu0 %vm174_vm0, %v5519_v36 }
 0x135   :  { %709 = vmatprep.mubr.f32.mxu0 %v5053_v0 }
 0x138   :  { %3747 = vmatmul.mubr.msk.f32.gmra.mrb[50].mxu0 %vm174_vm0, %v5527_v37 }
 0x139   :  { %715 = vmatprep.mubr.f32.mxu0 %v5053_v0 }
 0x13c   :  { %3748 = vmatmul.mubr.msk.f32.gmra.mrb[52].mxu0 %vm174_vm0, %v5535_v38 }
 0x13d   :  { %721 = vmatprep.mubr.f32.mxu0 %v5053_v0 }
 0x140   :  { %3749 = vmatmul.mubr.msk.f32.gmra.mrb[54].mxu0 %vm174_vm0, %v5543_v39 }
 0x141   :  { %820 = vmatprep.mubr.f32.mxu0 %v5053_v0 }
 0x144   :  { %3774 = vmatmul.mubr.msk.f32.vlgmr.msra.gmra.mrb[0].mxu0 %vm174_vm0, %v5295_v51  ;;  %v3817_v51 = vld [vmem:[%s6683_s1 + $0x2b8] sm:$0xff] }
 0x145   :  { %4368 = vmatpush1.bf16.msra.mxu0 %v4367_v47  ;;  %826 = vmatprep.mubr.f32.mxu0 %v5053_v0  ;;  %v4377_v61 = vpack.c.bf16 %v3817_v51, %v3815_v59  ;;  %v4391_v47 = vpack.c.bf16 %v3856_v43, %v3854_v42  ;;  %v3867_v59 = vld [vmem:[%s6683_s1 + $0x368] sm:$0xff]  ;;  %v4399_v51 = vpack.c.bf16 %v3864_v57, %v3862_v56  ;;  %v1925_v43 = vld [vmem:[#allocation2 + $0x140] sm:$0xff] }
 0x146   :  { %4370 = vmatprep.subr.bf16.mxu0 %v4369_v48  ;;  %v4393_v48 = vpack.c.bf16 %v3861_v46, %v3859_v45  ;;  %v1928_v46 = vld [vmem:[#allocation2 + $0x158] sm:$0xf] }
 0x148   :  { %3775 = vmatmul.mubr.msk.f32.gmra.mrb[2].mxu0 %vm174_vm0, %v5315_v58 }
 0x149   :  { %832 = vmatprep.mubr.f32.mxu0 %v5053_v0  ;;  %4372 = vmatpush1.bf16.msra.mxu0 %v4371_v54  ;;  %v4395_v54 = vpack.c.bf16 %v3860_v50, %v3858_v49  ;;  %v1681_v50 = vlaneseq }
 0x14a   :  { %4374 = vmatprep.subr.bf16.mxu0 %v4373_v55  ;;  %v4397_v55 = vpack.c.bf16 %v3865_v53, %v3863_v52 }
 0x14b   :  { %v6117_v52 = vshrl.u32 %v1681_v50, 7 }
 0x14c   :  { %3776 = vmatmul.mubr.msk.f32.gmra.mrb[4].mxu0 %vm174_vm0, %v5335_v2 }
 0x14d   :  { %838 = vmatprep.mubr.f32.mxu0 %v5053_v0  ;;  %4376 = vmatpush1.bf16.msra.mxu0 %v4375_v60  ;;  %v1683_v53 = vsub.s32 0, %v6117_v52 }
 0x14e   :  { %4378 = vmatprep.subr.bf16.mxu0 %v4377_v61  ;;  %v3866_v61 = vld [vmem:[%s6683_s1 + $0x360] sm:$0xff] }
 0x14f   :  { %v4403_v3 = vpack.c.bf16 %v3868_v62, %v3866_v61 }
 0x150   :  { %3777 = vmatmul.mubr.msk.f32.gmra.mrb[6].mxu0 %vm174_vm0, %v5355_v9 }
 0x151   :  { %844 = vmatprep.mubr.f32.mxu0 %v5053_v0  ;;  %4380 = vmatpush1.bf16.msra.mxu0 %v4379_v44  ;;  %v4405_v44 = vpack.c.bf16 %v3873_v1, %v3871_v63 }
 0x152   :  { %4382 = vmatprep.subr.bf16.mxu0 %v4381_v4  ;;  %v3870_v4 = vld [vmem:[%s6683_s1 + $0x380] sm:$0xff] }
 0x153   :  { %v4407_v8 = vpack.c.bf16 %v3872_v5, %v3870_v4 }
 0x154   :  { %3778 = vmatmul.mubr.msk.f32.gmra.mrb[8].mxu0 %vm174_vm0, %v5375_v16 }
 0x155   :  { %850 = vmatprep.mubr.f32.mxu0 %v5053_v0  ;;  %4384 = vmatpush1.bf16.msra.mxu0 %v4383_v10  ;;  %v4409_v10 = vpack.c.bf16 %v3877_v7, %v3875_v6 }
 0x156   :  { %4386 = vmatprep.subr.bf16.mxu0 %v4385_v11  ;;  %v3874_v11 = vld [vmem:[%s6683_s1 + $0x3a0] sm:$0xff] }
 0x157   :  { %v4411_v13 = vpack.c.bf16 %v3876_v12, %v3874_v11 }
 0x158   :  { %3779 = vmatmul.mubr.msk.f32.gmra.mrb[10].mxu0 %vm174_vm0, %v5383_v19 }
 0x159   :  { %856 = vmatprep.mubr.f32.mxu0 %v5053_v0  ;;  %4388 = vmatpush1.bf16.msra.mxu0 %v4387_v17  ;;  %v1924_v17 = vld [vmem:[#allocation2 + $0x138] sm:$0xff] }
 0x15a   :  { %4390 = vmatprep.subr.bf16.mxu0 %v4389_v18  ;;  %v1926_v18 = vld [vmem:[#allocation2 + $0x148] sm:$0xff] }
 0x15b   :  { %v4429_v42 = vpack.c.bf16 %v1926_v18, %v1924_v17 }
 0x15c   :  { %3780 = vmatmul.mubr.msk.f32.gmra.mrb[12].mxu0 %vm174_vm0, %v5391_v20 }
 0x15d   :  { %862 = vmatprep.mubr.f32.mxu0 %v5053_v0 }
 0x160   :  { %3781 = vmatmul.mubr.msk.f32.gmra.mrb[14].mxu0 %vm174_vm0, %v5399_v21 }
 0x161   :  { %868 = vmatprep.mubr.f32.mxu0 %v5053_v0 }
 0x164   :  { %3782 = vmatmul.mubr.msk.f32.gmra.mrb[16].mxu0 %vm174_vm0, %v5407_v22 }
 0x165   :  { %874 = vmatprep.mubr.f32.mxu0 %v5053_v0 }
 0x168   :  { %3783 = vmatmul.mubr.msk.f32.gmra.mrb[18].mxu0 %vm174_vm0, %v5415_v23 }
 0x169   :  { %880 = vmatprep.mubr.f32.mxu0 %v5053_v0 }
 0x16c   :  { %3784 = vmatmul.mubr.msk.f32.gmra.mrb[20].mxu0 %vm174_vm0, %v5423_v24 }
 0x16d   :  { %886 = vmatprep.mubr.f32.mxu0 %v5053_v0 }
 0x170   :  { %3785 = vmatmul.mubr.msk.f32.gmra.mrb[22].mxu0 %vm174_vm0, %v5431_v25 }
 0x171   :  { %892 = vmatprep.mubr.f32.mxu0 %v5053_v0 }
 0x174   :  { %3786 = vmatmul.mubr.msk.f32.gmra.mrb[24].mxu0 %vm174_vm0, %v5439_v26 }
 0x175   :  { %898 = vmatprep.mubr.f32.mxu0 %v5053_v0 }
 0x178   :  { %3787 = vmatmul.mubr.msk.f32.gmra.mrb[26].mxu0 %vm174_vm0, %v5447_v27 }
 0x179   :  { %904 = vmatprep.mubr.f32.mxu0 %v5053_v0 }
 0x17c   :  { %3788 = vmatmul.mubr.msk.f32.gmra.mrb[28].mxu0 %vm174_vm0, %v5455_v28 }
 0x17d   :  { %910 = vmatprep.mubr.f32.mxu0 %v5053_v0 }
 0x180   :  { %3789 = vmatmul.mubr.msk.f32.gmra.mrb[30].mxu0 %vm174_vm0, %v5463_v29 }
 0x181   :  { %916 = vmatprep.mubr.f32.mxu0 %v5053_v0 }
 0x184   :  { %3790 = vmatmul.mubr.msk.f32.gmra.mrb[32].mxu0 %vm174_vm0, %v5471_v30 }
 0x185   :  { %922 = vmatprep.mubr.f32.mxu0 %v5053_v0 }
 0x188   :  { %3791 = vmatmul.mubr.msk.f32.gmra.mrb[34].mxu0 %vm174_vm0, %v5479_v31 }
 0x189   :  { %928 = vmatprep.mubr.f32.mxu0 %v5053_v0 }
 0x18c   :  { %3792 = vmatmul.mubr.msk.f32.gmra.mrb[36].mxu0 %vm174_vm0, %v5487_v32 }
 0x18d   :  { %934 = vmatprep.mubr.f32.mxu0 %v5053_v0 }
 0x190   :  { %3793 = vmatmul.mubr.msk.f32.gmra.mrb[38].mxu0 %vm174_vm0, %v5495_v33 }
 0x191   :  { %940 = vmatprep.mubr.f32.mxu0 %v5053_v0 }
 0x194   :  { %3794 = vmatmul.mubr.msk.f32.gmra.mrb[40].mxu0 %vm174_vm0, %v5503_v34 }
 0x195   :  { %946 = vmatprep.mubr.f32.mxu0 %v5053_v0 }
 0x198   :  { %3795 = vmatmul.mubr.msk.f32.gmra.mrb[42].mxu0 %vm174_vm0, %v5511_v35 }
 0x199   :  { %952 = vmatprep.mubr.f32.mxu0 %v5053_v0 }
 0x19c   :  { %3796 = vmatmul.mubr.msk.f32.gmra.mrb[44].mxu0 %vm174_vm0, %v5519_v36 }
 0x19d   :  { %958 = vmatprep.mubr.f32.mxu0 %v5053_v0 }
 0x1a0   :  { %3797 = vmatmul.mubr.msk.f32.gmra.mrb[46].mxu0 %vm174_vm0, %v5527_v37 }
 0x1a1   :  { %964 = vmatprep.mubr.f32.mxu0 %v5053_v0 }
 0x1a4   :  { %3798 = vmatmul.mubr.msk.f32.gmra.mrb[48].mxu0 %vm174_vm0, %v5535_v38 }
 0x1a5   :  { %970 = vmatprep.mubr.f32.mxu0 %v5053_v0 }
 0x1a8   :  { %3799 = vmatmul.mubr.msk.f32.gmra.mrb[50].mxu0 %vm174_vm0, %v5543_v39 }
 0x1a9   :  { %976 = vmatprep.mubr.f32.mxu0 %v5053_v0 }
 0x1ac   :  { %3800 = vmatmul.mubr.msk.f32.gmra.mrb[52].mxu0 %vm174_vm0, %v5551_v40 }
 0x1ad   :  { %982 = vmatprep.mubr.f32.mxu0 %v5053_v0 }
 0x1b0   :  { %3801 = vmatmul.mubr.msk.f32.gmra.mrb[54].mxu0 %vm174_vm0, %v5870_v41 }
 0x1b1   :  { %1137 = vmatprep.mubr.f32.mxu0 %v5053_v0 }
 0x1b4   :  { %3826 = vmatmul.mubr.msk.f32.vlgmr.msra.gmra.mrb[0].mxu0 %vm174_vm0, %v5315_v58  ;;  %v3869_v58 = vld [vmem:[%s6683_s1 + $0x378] sm:$0xff] }
 0x1b5   :  { %4392 = vmatpush1.bf16.msra.mxu0 %v4391_v47  ;;  %1143 = vmatprep.mubr.f32.mxu0 %v5053_v0  ;;  %v4401_v60 = vpack.c.bf16 %v3869_v58, %v3867_v59  ;;  %v124_v47 = vld [vmem:[%s6682_s0 + $0xf8] sm:$0xff] }
 0x1b6   :  { %4394 = vmatprep.subr.bf16.mxu0 %v4393_v48  ;;  %v1887_v48 = vld [vmem:[#allocation2 + $0x18] sm:$0xff] }
 0x1b8   :  { %3827 = vmatmul.mubr.msk.f32.gmra.mrb[2].mxu0 %vm174_vm0, %v5335_v2 }
 0x1b9   :  { %1149 = vmatprep.mubr.f32.mxu0 %v5053_v0  ;;  %4396 = vmatpush1.bf16.msra.mxu0 %v4395_v54  ;;  %v1679_v54 = vld [vmem:[%s6684_s2] sm:$0x3] }
 0x1ba   :  { %4398 = vmatprep.subr.bf16.mxu0 %v4397_v55  ;;  %v1687_v55 = vsub.s32 1, %v6117_v52  ;;  %v6126_v56 = vrot.slane %v1679_v54, %v1683_v53 }
 0x1bc   :  { %3828 = vmatmul.mubr.msk.f32.gmra.mrb[4].mxu0 %vm174_vm0, %v5355_v9  ;;  %v6130_v59 = vrot.slane %v1679_v54, %v1687_v55 }
 0x1bd   :  { %1155 = vmatprep.mubr.f32.mxu0 %v5053_v0  ;;  %4400 = vmatpush1.bf16.msra.mxu0 %v4399_v51 }
 0x1be   :  { %4402 = vmatprep.subr.bf16.mxu0 %v4401_v60 }
 0x1c0   :  { %3829 = vmatmul.mubr.msk.f32.gmra.mrb[6].mxu0 %vm174_vm0, %v5375_v16 }
 0x1c1   :  { %1161 = vmatprep.mubr.f32.mxu0 %v5053_v0  ;;  %4404 = vmatpush1.bf16.msra.mxu0 %v4403_v3 }
 0x1c2   :  { %4406 = vmatprep.subr.bf16.mxu0 %v4405_v44 }
 0x1c4   :  { %3830 = vmatmul.mubr.msk.f32.gmra.mrb[8].mxu0 %vm174_vm0, %v5383_v19 }
 0x1c5   :  { %1167 = vmatprep.mubr.f32.mxu0 %v5053_v0  ;;  %4408 = vmatpush1.bf16.msra.mxu0 %v4407_v8 }
 0x1c6   :  { %4410 = vmatprep.subr.bf16.mxu0 %v4409_v10 }
 0x1c8   :  { %3831 = vmatmul.mubr.msk.f32.gmra.mrb[10].mxu0 %vm174_vm0, %v5391_v20 }
 0x1c9   :  { %1173 = vmatprep.mubr.f32.mxu0 %v5053_v0  ;;  %4412 = vmatpush1.bf16.msra.mxu0 %v4411_v13 }
 0x1cc   :  { %3832 = vmatmul.mubr.msk.f32.gmra.mrb[12].mxu0 %vm174_vm0, %v5399_v21 }
 0x1cd   :  { %1179 = vmatprep.mubr.f32.mxu0 %v5053_v0 }
 0x1d0   :  { %3833 = vmatmul.mubr.msk.f32.gmra.mrb[14].mxu0 %vm174_vm0, %v5407_v22 }
 0x1d1   :  { %1185 = vmatprep.mubr.f32.mxu0 %v5053_v0 }
 0x1d4   :  { %3834 = vmatmul.mubr.msk.f32.gmra.mrb[16].mxu0 %vm174_vm0, %v5415_v23 }
 0x1d5   :  { %1191 = vmatprep.mubr.f32.mxu0 %v5053_v0 }
 0x1d8   :  { %3835 = vmatmul.mubr.msk.f32.gmra.mrb[18].mxu0 %vm174_vm0, %v5423_v24 }
 0x1d9   :  { %1197 = vmatprep.mubr.f32.mxu0 %v5053_v0 }
 0x1dc   :  { %3836 = vmatmul.mubr.msk.f32.gmra.mrb[20].mxu0 %vm174_vm0, %v5431_v25 }
 0x1dd   :  { %1203 = vmatprep.mubr.f32.mxu0 %v5053_v0 }
 0x1e0   :  { %3837 = vmatmul.mubr.msk.f32.gmra.mrb[22].mxu0 %vm174_vm0, %v5439_v26 }
 0x1e1   :  { %1209 = vmatprep.mubr.f32.mxu0 %v5053_v0 }
 0x1e4   :  { %3838 = vmatmul.mubr.msk.f32.gmra.mrb[24].mxu0 %vm174_vm0, %v5447_v27 }
 0x1e5   :  { %1215 = vmatprep.mubr.f32.mxu0 %v5053_v0 }
 0x1e8   :  { %3839 = vmatmul.mubr.msk.f32.gmra.mrb[26].mxu0 %vm174_vm0, %v5455_v28 }
 0x1e9   :  { %1221 = vmatprep.mubr.f32.mxu0 %v5053_v0 }
 0x1ec   :  { %3840 = vmatmul.mubr.msk.f32.gmra.mrb[28].mxu0 %vm174_vm0, %v5463_v29 }
 0x1ed   :  { %1227 = vmatprep.mubr.f32.mxu0 %v5053_v0 }
 0x1f0   :  { %3841 = vmatmul.mubr.msk.f32.gmra.mrb[30].mxu0 %vm174_vm0, %v5471_v30 }
 0x1f1   :  { %1233 = vmatprep.mubr.f32.mxu0 %v5053_v0 }
 0x1f4   :  { %3842 = vmatmul.mubr.msk.f32.gmra.mrb[32].mxu0 %vm174_vm0, %v5479_v31 }
 0x1f5   :  { %1239 = vmatprep.mubr.f32.mxu0 %v5053_v0 }
 0x1f8   :  { %3843 = vmatmul.mubr.msk.f32.gmra.mrb[34].mxu0 %vm174_vm0, %v5487_v32 }
 0x1f9   :  { %1245 = vmatprep.mubr.f32.mxu0 %v5053_v0 }
 0x1fc   :  { %3844 = vmatmul.mubr.msk.f32.gmra.mrb[36].mxu0 %vm174_vm0, %v5495_v33 }
 0x1fd   :  { %1251 = vmatprep.mubr.f32.mxu0 %v5053_v0 }
 0x200   :  { %3845 = vmatmul.mubr.msk.f32.gmra.mrb[38].mxu0 %vm174_vm0, %v5503_v34 }
 0x201   :  { %1257 = vmatprep.mubr.f32.mxu0 %v5053_v0 }
 0x204   :  { %3846 = vmatmul.mubr.msk.f32.gmra.mrb[40].mxu0 %vm174_vm0, %v5511_v35 }
 0x205   :  { %1263 = vmatprep.mubr.f32.mxu0 %v5053_v0 }
 0x208   :  { %3847 = vmatmul.mubr.msk.f32.gmra.mrb[42].mxu0 %vm174_vm0, %v5519_v36 }
 0x209   :  { %1269 = vmatprep.mubr.f32.mxu0 %v5053_v0 }
 0x20c   :  { %3848 = vmatmul.mubr.msk.f32.gmra.mrb[44].mxu0 %vm174_vm0, %v5527_v37 }
 0x20d   :  { %1275 = vmatprep.mubr.f32.mxu0 %v5053_v0 }
 0x210   :  { %3849 = vmatmul.mubr.msk.f32.gmra.mrb[46].mxu0 %vm174_vm0, %v5535_v38 }
 0x211   :  { %1281 = vmatprep.mubr.f32.mxu0 %v5053_v0 }
 0x214   :  { %3850 = vmatmul.mubr.msk.f32.gmra.mrb[48].mxu0 %vm174_vm0, %v5543_v39 }
 0x215   :  { %1287 = vmatprep.mubr.f32.mxu0 %v5053_v0 }
 0x218   :  { %3851 = vmatmul.mubr.msk.f32.gmra.mrb[50].mxu0 %vm174_vm0, %v5551_v40 }
 0x219   :  { %1293 = vmatprep.mubr.f32.mxu0 %v5053_v0 }
 0x21c   :  { %3852 = vmatmul.mubr.msk.f32.gmra.mrb[52].mxu0 %vm174_vm0, %v5870_v41 }
 0x21d   :  { %1299 = vmatprep.mubr.f32.mxu0 %v5053_v0 }
 0x220   :  { %3853 = vmatmul.mubr.msk.f32.gmra.mrb[54].mxu0 %vm174_vm0, %v6025_v14 }
 0x221   :  { %1454 = vmatprep.mubr.f32.mxu0 %v5053_v0 }
 0x224   :  { %3878 = vmatmul.mubr.msk.f32.vlgmr.msra.gmra.mrb[0].mxu0 %vm174_vm0, %v5335_v2  ;;  %v1908_v2 = vld [vmem:[#allocation2 + $0xb8] sm:$0xff] }
 0x225   :  { %1460 = vmatprep.mubr.f32.mxu0 %v5053_v0 }
 0x228   :  { %3879 = vmatmul.mubr.msk.f32.gmra.mrb[2].mxu0 %vm174_vm0, %v5355_v9  ;;  %v1910_v9 = vld [vmem:[#allocation2 + $0xc8] sm:$0xff] }
 0x229   :  { %1466 = vmatprep.mubr.f32.mxu0 %v5053_v0 }
 0x22c   :  { %3880 = vmatmul.mubr.msk.f32.gmra.mrb[4].mxu0 %vm174_vm0, %v5375_v16  ;;  %v4413_v16 = vpack.c.bf16 %v1910_v9, %v1908_v2 }
 0x22d   :  { %1472 = vmatprep.mubr.f32.mxu0 %v5053_v0 }
 0x22e   :  { %4414 = vmatprep.subr.bf16.mxu1 %v4413_v16 }
 0x230   :  { %3881 = vmatmul.mubr.msk.f32.gmra.mrb[6].mxu0 %vm174_vm0, %v5383_v19  ;;  %v1907_v19 = vld [vmem:[#allocation2 + $0xb0] sm:$0xff] }
 0x231   :  { %1478 = vmatprep.mubr.f32.mxu0 %v5053_v0 }
 0x234   :  { %3882 = vmatmul.mubr.msk.f32.gmra.mrb[8].mxu0 %vm174_vm0, %v5391_v20  ;;  %v1909_v20 = vld [vmem:[#allocation2 + $0xc0] sm:$0xff] }
 0x235   :  { %1484 = vmatprep.mubr.f32.mxu0 %v5053_v0 }
 0x238   :  { %3883 = vmatmul.mubr.msk.f32.gmra.mrb[10].mxu0 %vm174_vm0, %v5399_v21  ;;  %v4415_v21 = vpack.c.bf16 %v1909_v20, %v1907_v19 }
 0x239   :  { %1490 = vmatprep.mubr.f32.mxu0 %v5053_v0 }
 0x23a   :  { %4416 = vmatpush1.bf16.msra.mxu1 %v4415_v21 }
 0x23c   :  { %3884 = vmatmul.mubr.msk.f32.gmra.mrb[12].mxu0 %vm174_vm0, %v5407_v22  ;;  %v1912_v22 = vld [vmem:[#allocation2 + $0xd8] sm:$0xff] }
 0x23d   :  { %1496 = vmatprep.mubr.f32.mxu0 %v5053_v0 }
 0x240   :  { %3885 = vmatmul.mubr.msk.f32.gmra.mrb[14].mxu0 %vm174_vm0, %v5415_v23  ;;  %v1914_v23 = vld [vmem:[#allocation2 + $0xe8] sm:$0xff] }
 0x241   :  { %1502 = vmatprep.mubr.f32.mxu0 %v5053_v0 }
 0x244   :  { %3886 = vmatmul.mubr.msk.f32.gmra.mrb[16].mxu0 %vm174_vm0, %v5423_v24  ;;  %v4417_v24 = vpack.c.bf16 %v1914_v23, %v1912_v22 }
 0x245   :  { %1508 = vmatprep.mubr.f32.mxu0 %v5053_v0 }
 0x246   :  { %4418 = vmatprep.subr.bf16.mxu1 %v4417_v24 }
 0x248   :  { %3887 = vmatmul.mubr.msk.f32.gmra.mrb[18].mxu0 %vm174_vm0, %v5431_v25  ;;  %v1911_v25 = vld [vmem:[#allocation2 + $0xd0] sm:$0xff] }
 0x249   :  { %1514 = vmatprep.mubr.f32.mxu0 %v5053_v0 }
 0x24c   :  { %3888 = vmatmul.mubr.msk.f32.gmra.mrb[20].mxu0 %vm174_vm0, %v5439_v26  ;;  %v1913_v26 = vld [vmem:[#allocation2 + $0xe0] sm:$0xff] }
 0x24d   :  { %1520 = vmatprep.mubr.f32.mxu0 %v5053_v0 }
 0x250   :  { %3889 = vmatmul.mubr.msk.f32.gmra.mrb[22].mxu0 %vm174_vm0, %v5447_v27  ;;  %v4419_v27 = vpack.c.bf16 %v1913_v26, %v1911_v25 }
 0x251   :  { %1526 = vmatprep.mubr.f32.mxu0 %v5053_v0 }
 0x252   :  { %4420 = vmatpush1.bf16.msra.mxu1 %v4419_v27  ;;  %v1884_v27 = vld [vmem:[#allocation2] sm:$0xff] }
 0x254   :  { %3890 = vmatmul.mubr.msk.f32.gmra.mrb[24].mxu0 %vm174_vm0, %v5455_v28  ;;  %v1916_v28 = vld [vmem:[#allocation2 + $0xf8] sm:$0xff] }
 0x255   :  { %1532 = vmatprep.mubr.f32.mxu0 %v5053_v0 }
 0x258   :  { %3891 = vmatmul.mubr.msk.f32.gmra.mrb[26].mxu0 %vm174_vm0, %v5463_v29  ;;  %v1918_v29 = vld [vmem:[#allocation2 + $0x108] sm:$0xff] }
 0x259   :  { %1538 = vmatprep.mubr.f32.mxu0 %v5053_v0 }
 0x25c   :  { %3892 = vmatmul.mubr.msk.f32.gmra.mrb[28].mxu0 %vm174_vm0, %v5471_v30  ;;  %v4421_v30 = vpack.c.bf16 %v1918_v29, %v1916_v28  ;;  %v1886_v28 = vld [vmem:[#allocation2 + $0x10] sm:$0xff] }
 0x25d   :  { %1544 = vmatprep.mubr.f32.mxu0 %v5053_v0 }
 0x25e   :  { %4422 = vmatprep.subr.bf16.mxu1 %v4421_v30 }
 0x260   :  { %3893 = vmatmul.mubr.msk.f32.gmra.mrb[30].mxu0 %vm174_vm0, %v5479_v31  ;;  %v1915_v31 = vld [vmem:[#allocation2 + $0xf0] sm:$0xff] }
 0x261   :  { %1550 = vmatprep.mubr.f32.mxu0 %v5053_v0 }
 0x264   :  { %3894 = vmatmul.mubr.msk.f32.gmra.mrb[32].mxu0 %vm174_vm0, %v5487_v32  ;;  %v1917_v32 = vld [vmem:[#allocation2 + $0x100] sm:$0xff] }
 0x265   :  { %1556 = vmatprep.mubr.f32.mxu0 %v5053_v0 }
 0x268   :  { %3895 = vmatmul.mubr.msk.f32.gmra.mrb[34].mxu0 %vm174_vm0, %v5495_v33  ;;  %v4423_v33 = vpack.c.bf16 %v1917_v32, %v1915_v31  ;;  %v1889_v32 = vld [vmem:[#allocation2 + $0x28] sm:$0xff] }
 0x269   :  { %1562 = vmatprep.mubr.f32.mxu0 %v5053_v0 }
 0x26a   :  { %4424 = vmatpush1.bf16.msra.mxu1 %v4423_v33  ;;  %v1891_v33 = vld [vmem:[#allocation2 + $0x38] sm:$0xff] }
 0x26b   :  { %v4437_v18 = vpack.c.bf16 %v1891_v33, %v1889_v32 }
 0x26c   :  { %3896 = vmatmul.mubr.msk.f32.gmra.mrb[36].mxu0 %vm174_vm0, %v5503_v34  ;;  %v1920_v34 = vld [vmem:[#allocation2 + $0x118] sm:$0xff] }
 0x26d   :  { %1568 = vmatprep.mubr.f32.mxu0 %v5053_v0 }
 0x270   :  { %3897 = vmatmul.mubr.msk.f32.gmra.mrb[38].mxu0 %vm174_vm0, %v5511_v35  ;;  %v1922_v35 = vld [vmem:[#allocation2 + $0x128] sm:$0xff] }
 0x271   :  { %1574 = vmatprep.mubr.f32.mxu0 %v5053_v0 }
 0x274   :  { %3898 = vmatmul.mubr.msk.f32.gmra.mrb[40].mxu0 %vm174_vm0, %v5519_v36  ;;  %v4425_v36 = vpack.c.bf16 %v1922_v35, %v1920_v34 }
 0x275   :  { %1580 = vmatprep.mubr.f32.mxu0 %v5053_v0 }
 0x276   :  { %4426 = vmatprep.subr.bf16.mxu1 %v4425_v36 }
 0x278   :  { %3899 = vmatmul.mubr.msk.f32.gmra.mrb[42].mxu0 %vm174_vm0, %v5527_v37  ;;  %v1919_v37 = vld [vmem:[#allocation2 + $0x110] sm:$0xff] }
 0x279   :  { %1586 = vmatprep.mubr.f32.mxu0 %v5053_v0 }
 0x27c   :  { %3900 = vmatmul.mubr.msk.f32.gmra.mrb[44].mxu0 %vm174_vm0, %v5535_v38  ;;  %v1921_v38 = vld [vmem:[#allocation2 + $0x120] sm:$0xff] }
 0x27d   :  { %1592 = vmatprep.mubr.f32.mxu0 %v5053_v0  ;;  %v4427_v15 = vpack.c.bf16 %v1921_v38, %v1919_v37  ;;  %v4435_v37 = vpack.c.bf16 %v1886_v28, %v1884_v27 }
 0x27f   :  { %4428 = vmatpush1.bf16.msra.mxu1 %v4427_v15 }
 0x280   :  { %3901 = vmatmul.mubr.msk.f32.gmra.mrb[46].mxu0 %vm174_vm0, %v5543_v39  ;;  %v1923_v39 = vld [vmem:[#allocation2 + $0x130] sm:$0xff]  ;;  %4430 = vmatprep.subr.bf16.mxu1 %v4429_v42  ;;  %v1888_v42 = vld [vmem:[#allocation2 + $0x20] sm:$0xff] }
 0x281   :  { %1598 = vmatprep.mubr.f32.mxu0 %v5053_v0  ;;  %v4431_v45 = vpack.c.bf16 %v1925_v43, %v1923_v39  ;;  %v1890_v39 = vld [vmem:[#allocation2 + $0x30] sm:$0xff] }
 0x282   :  { %v4439_v50 = vpack.c.bf16 %v1890_v39, %v1888_v42 }
 0x283   :  { %4432 = vmatpush1.bf16.msra.mxu1 %v4431_v45 }
 0x284   :  { %3902 = vmatmul.mubr.msk.f32.gmra.mrb[48].mxu0 %vm174_vm0, %v5551_v40  ;;  %3906 = vmatprep.subr.msk.mxu1 %vm1987_vm1, %v1928_v46  ;;  %v1927_v40 = vld [vmem:[#allocation2 + $0x150] sm:$0xf] }
 0x285   :  { %1604 = vmatprep.mubr.f32.mxu0 %v5053_v0 }
 0x287   :  { %3907 = vmatpush1.msk.msra.mxu1 %vm1987_vm1, %v1927_v40  ;;  %v1893_v40 = vld [vmem:[#allocation2 + $0x48] sm:$0xff] }
 0x288   :  { %3903 = vmatmul.mubr.msk.f32.gmra.mrb[50].mxu0 %vm174_vm0, %v5870_v41  ;;  %v1885_v41 = vld [vmem:[#allocation2 + $0x8] sm:$0xff] }
 0x289   :  { %1610 = vmatprep.mubr.f32.mxu0 %v5053_v0  ;;  %v4433_v49 = vpack.c.bf16 %v1887_v48, %v1885_v41 }
 0x28b   :  { %4434 = vmatprep.subr.bf16.mxu1 %v4433_v49 }
 0x28c   :  { %3904 = vmatmul.mubr.msk.f32.gmra.mrb[52].mxu0 %vm174_vm0, %v6025_v14 }
 0x28d   :  { %1616 = vmatprep.mubr.f32.mxu0 %v5053_v0 }
 0x290   :  { %3905 = vmatmul.mubr.msk.f32.gmra.mrb[54].mxu0 %vm174_vm0, %v124_v47  ;;  %v1895_v47 = vld [vmem:[#allocation2 + $0x58] sm:$0xff] }
 0x2f7   :  { %v1456_v57 = vpop.f32.mrb[0].mxu0 }
 0x2f8   :  { %v1458_v58 = vpop.f32.mrb[1].mxu0  ;;  %v1691_v51 = vadd.f32 %v6126_v56, %v1456_v57 }
 0x2f9   :  { %v1692_v60 = vadd.f32 %v6130_v59, %v1458_v58 }
 0x2fa   :  { %v1747_v3 = vmax.f32 %v1691_v51, 0.0  ;;  %v4441_v51 = vpack.c.bf16 %v1895_v47, %v1893_v40 }
 0x2fb   :  { %v1462_v61 = vpop.f32.mrb[2].mxu0  ;;  %v1748_v4 = vmax.f32 %v1692_v60, 0.0  ;;  %v1892_v60 = vld [vmem:[#allocation2 + $0x40] sm:$0xff] }
 0x2fc   :  { %v1693_v62 = vadd.f32 %v6126_v56, %v1462_v61  ;;  %v1464_v63 = vpop.f32.mrb[3].mxu0  ;;  %v1894_v61 = vld [vmem:[#allocation2 + $0x50] sm:$0xff] }
 0x2fd   :  { %v1694_v1 = vadd.f32 %v6130_v59, %v1464_v63 }
 0x2fe   :  { %v1749_v44 = vmax.f32 %v1693_v62, 0.0 }
 0x2ff   :  { %v1750_v5 = vmax.f32 %v1694_v1, 0.0  ;;  %v1468_v6 = vpop.f32.mrb[4].mxu0 }
 0x300   :  { %v6136_v7 = vmax.f32 %v1747_v3, %v1749_v44  ;;  %v1695_v8 = vadd.f32 %v6126_v56, %v1468_v6  ;;  %v1470_v10 = vpop.f32.mrb[5].mxu0  ;;  %v1897_v3 = vld [vmem:[#allocation2 + $0x68] sm:$0xff] }
 0x301   :  { %v6139_v11 = vmax.f32 %v1748_v4, %v1750_v5  ;;  %v1696_v12 = vadd.f32 %v6130_v59, %v1470_v10 }
 0x302   :  { %v1751_v13 = vmax.f32 %v1695_v8, 0.0  ;;  %v4443_v8 = vpack.c.bf16 %v1894_v61, %v1892_v60 }
 0x303   :  { %v1857_v14 = vmax.f32 %v6136_v7, %v6139_v11  ;;  %v1752_v2 = vmax.f32 %v1696_v12, 0.0  ;;  %v1474_v9 = vpop.f32.mrb[6].mxu0  ;;  %v2342_v7 = vld [vmem:[#allocation2 + $0x1c8] sm:$0xff]  ;;  %v2344_v11 = vld [vmem:[#allocation2 + $0x1d8] sm:$0xff] }
 0x304   :  { %v6144_v16 = vmax.f32 %v1749_v44, %v1751_v13  ;;  %v1697_v19 = vadd.f32 %v6126_v56, %v1474_v9  ;;  %v1476_v20 = vpop.f32.mrb[7].mxu0  ;;  %v1899_v44 = vld [vmem:[#allocation2 + $0x78] sm:$0xff]  ;;  %v1896_v9 = vld [vmem:[#allocation2 + $0x60] sm:$0xff] }
 0x305   :  { %v6147_v21 = vmax.f32 %v1750_v5, %v1752_v2  ;;  %v1698_v22 = vadd.f32 %v6130_v59, %v1476_v20 }
 0x306   :  { %v1753_v23 = vmax.f32 %v1697_v19, 0.0  ;;  %v1898_v19 = vld [vmem:[#allocation2 + $0x70] sm:$0xff] }
 0x307   :  { %v1858_v24 = vmax.f32 %v6144_v16, %v6147_v21  ;;  %v1754_v25 = vmax.f32 %v1698_v22, 0.0  ;;  %v1480_v26 = vpop.f32.mrb[8].mxu0  ;;  %v2346_v16 = vld [vmem:[#allocation2 + $0x1e8] sm:$0xff]  ;;  %v2348_v21 = vld [vmem:[#allocation2 + $0x1f8] sm:$0xff] }
 0x308   :  { %v1807_v29 = vmax.f32 %v1751_v13, %v1753_v23  ;;  %v1699_v30 = vadd.f32 %v6126_v56, %v1480_v26  ;;  %v1482_v31 = vpop.f32.mrb[9].mxu0  ;;  %v1903_v26 = vld [vmem:[#allocation2 + $0x98] sm:$0xff] }
 0x309   :  { %v1808_v34 = vmax.f32 %v1752_v2, %v1754_v25  ;;  %v1700_v35 = vadd.f32 %v6130_v59, %v1482_v31  ;;  %v4445_v2 = vpack.c.bf16 %v1899_v44, %v1897_v3 }
 0x30a   :  { %v1755_v36 = vmax.f32 %v1699_v30, 0.0  ;;  %v4447_v30 = vpack.c.bf16 %v1898_v19, %v1896_v9 }
 0x30b   :  { %v6154_v38 = vmax.f32 %v1807_v29, %v1808_v34  ;;  %v1756_v15 = vmax.f32 %v1700_v35, 0.0  ;;  %v1486_v17 = vpop.f32.mrb[10].mxu0  ;;  %v1900_v35 = vld [vmem:[#allocation2 + $0x80] sm:$0xff] }
 0x30c   :  { %v1809_v43 = vmax.f32 %v1753_v23, %v1755_v36  ;;  %v1701_v45 = vadd.f32 %v6126_v56, %v1486_v17  ;;  %v1488_v46 = vpop.f32.mrb[11].mxu0 }
 0x30d   :  { %v1810_v41 = vmax.f32 %v1754_v25, %v1756_v15  ;;  %v1702_v48 = vadd.f32 %v6130_v59, %v1488_v46  ;;  %3908 = vmatmul.mubr.msk.f32.vlgmr.msra.gmra.mrb[0].mxu1 %vm1929_vm2, %v6154_v38  ;;  %v1901_v25 = vld [vmem:[#allocation2 + $0x88] sm:$0xff] }
 0x30e   :  { %v1757_v49 = vmax.f32 %v1701_v45, 0.0  ;;  %4436 = vmatpush1.bf16.msra.mxu1 %v4435_v37  ;;  %2064 = vmatprep.mubr.f32.mxu1 %v5053_v0  ;;  %v4449_v34 = vpack.c.bf16 %v1903_v26, %v1901_v25 }
 0x30f   :  { %v6161_v54 = vmax.f32 %v1809_v43, %v1810_v41  ;;  %v1758_v57 = vmax.f32 %v1702_v48, 0.0  ;;  %v1492_v58 = vpop.f32.mrb[12].mxu0  ;;  %4438 = vmatprep.subr.bf16.mxu1 %v4437_v18 }
 0x310   :  { %v1811_v62 = vmax.f32 %v1755_v36, %v1757_v49  ;;  %v1703_v63 = vadd.f32 %v6126_v56, %v1492_v58  ;;  %v1494_v1 = vpop.f32.mrb[13].mxu0  ;;  %v1902_v36 = vld [vmem:[#allocation2 + $0x90] sm:$0xff] }
 0x311   :  { %v1812_v4 = vmax.f32 %v1756_v15, %v1758_v57  ;;  %v1704_v5 = vadd.f32 %v6130_v59, %v1494_v1  ;;  %3909 = vmatmul.mubr.msk.f32.gmra.mrb[2].mxu1 %vm1929_vm2, %v6161_v54  ;;  %v4451_v43 = vpack.c.bf16 %v1902_v36, %v1900_v35  ;;  %v1904_v1 = vld [vmem:[#allocation2 + $0xa0] sm:$0xf] }
 0x312   :  { %v1759_v6 = vmax.f32 %v1703_v63, 0.0  ;;  %2068 = vmatprep.mubr.f32.mxu1 %v5053_v0  ;;  %4440 = vmatpush1.bf16.msra.mxu1 %v4439_v50  ;;  %v2330_v50 = vld [vmem:[#allocation2 + $0x168] sm:$0xff] }
 0x313   :  { %v6168_v10 = vmax.f32 %v1811_v62, %v1812_v4  ;;  %v1760_v12 = vmax.f32 %v1704_v5, 0.0  ;;  %v1498_v13 = vpop.f32.mrb[14].mxu0  ;;  %4442 = vmatprep.subr.bf16.mxu1 %v4441_v51 }
 0x314   :  { %v1813_v20 = vmax.f32 %v1757_v49, %v1759_v6  ;;  %v1705_v22 = vadd.f32 %v6126_v56, %v1498_v13  ;;  %v1500_v23 = vpop.f32.mrb[15].mxu0  ;;  %v1905_v49 = vld [vmem:[#allocation2 + $0xa8] sm:$0xf] }
 0x315   :  { %v1814_v27 = vmax.f32 %v1758_v57, %v1760_v12  ;;  %v1706_v28 = vadd.f32 %v6130_v59, %v1500_v23  ;;  %3910 = vmatmul.mubr.msk.f32.gmra.mrb[4].mxu1 %vm1929_vm2, %v6168_v10  ;;  %v2332_v57 = vld [vmem:[#allocation2 + $0x178] sm:$0xff] }
 0x316   :  { %v1761_v29 = vmax.f32 %v1705_v22, 0.0  ;;  %2074 = vmatprep.mubr.f32.mxu1 %v5053_v0  ;;  %4444 = vmatpush1.bf16.msra.mxu1 %v4443_v8  ;;  %v4453_v3 = vpack.c.bf16 %v2332_v57, %v2330_v50 }
 0x317   :  { %v6175_v31 = vmax.f32 %v1813_v20, %v1814_v27  ;;  %v1762_v32 = vmax.f32 %v1706_v28, 0.0  ;;  %v1504_v33 = vpop.f32.mrb[16].mxu0  ;;  %4446 = vmatprep.subr.bf16.mxu1 %v4445_v2 }
 0x318   :  { %v1815_v37 = vmax.f32 %v1759_v6, %v1761_v29  ;;  %v1707_v15 = vadd.f32 %v6126_v56, %v1504_v33  ;;  %v1506_v17 = vpop.f32.mrb[17].mxu0 }
 0x319   :  { %v1816_v18 = vmax.f32 %v1760_v12, %v1762_v32  ;;  %v1708_v42 = vadd.f32 %v6130_v59, %v1506_v17  ;;  %3911 = vmatmul.mubr.msk.f32.gmra.mrb[6].mxu1 %vm1929_vm2, %v6175_v31 }
 0x31a   :  { %v1763_v39 = vmax.f32 %v1707_v15, 0.0  ;;  %2078 = vmatprep.mubr.f32.mxu1 %v5053_v0  ;;  %4448 = vmatpush1.bf16.msra.mxu1 %v4447_v30 }
 0x31b   :  { %v6182_v45 = vmax.f32 %v1815_v37, %v1816_v18  ;;  %v1764_v46 = vmax.f32 %v1708_v42, 0.0  ;;  %v1510_v40 = vpop.f32.mrb[18].mxu0  ;;  %4450 = vmatprep.subr.bf16.mxu1 %v4449_v34 }
 0x31c   :  { %v1817_v47 = vmax.f32 %v1761_v29, %v1763_v39  ;;  %v1709_v41 = vadd.f32 %v6126_v56, %v1510_v40  ;;  %v1512_v48 = vpop.f32.mrb[19].mxu0 }
 0x31d   :  { %v1818_v58 = vmax.f32 %v1762_v32, %v1764_v46  ;;  %v1710_v51 = vadd.f32 %v6130_v59, %v1512_v48  ;;  %3912 = vmatmul.mubr.msk.f32.gmra.mrb[8].mxu1 %vm1929_vm2, %v6182_v45 }
 0x31e   :  { %v1765_v60 = vmax.f32 %v1709_v41, 0.0  ;;  %2084 = vmatprep.mubr.f32.mxu1 %v5053_v0  ;;  %4452 = vmatpush1.bf16.msra.mxu1 %v4451_v43 }
 0x31f   :  { %v6189_v61 = vmax.f32 %v1817_v47, %v1818_v58  ;;  %v1766_v62 = vmax.f32 %v1710_v51, 0.0  ;;  %v1516_v63 = vpop.f32.mrb[20].mxu0  ;;  %3927 = vmatprep.subr.msk.mxu1 %vm1987_vm1, %v1905_v49 }
 0x320   :  { %v1819_v44 = vmax.f32 %v1763_v39, %v1765_v60  ;;  %v1711_v4 = vadd.f32 %v6126_v56, %v1516_v63  ;;  %v1518_v5 = vpop.f32.mrb[21].mxu0 }
 0x321   :  { %v1820_v6 = vmax.f32 %v1764_v46, %v1766_v62  ;;  %v1712_v8 = vadd.f32 %v6130_v59, %v1518_v5  ;;  %3913 = vmatmul.mubr.msk.f32.gmra.mrb[10].mxu1 %vm1929_vm2, %v6189_v61 }
 0x322   :  { %v1767_v12 = vmax.f32 %v1711_v4, 0.0  ;;  %2088 = vmatprep.mubr.f32.mxu1 %v5053_v0  ;;  %3928 = vmatpush1.msk.msra.mxu1 %vm1987_vm1, %v1904_v1 }
 0x323   :  { %v6198_v13 = vmax.f32 %v1819_v44, %v1820_v6  ;;  %v1768_v2 = vmax.f32 %v1712_v8, 0.0  ;;  %v1522_v9 = vpop.f32.mrb[22].mxu0  ;;  %4454 = vmatprep.subr.bf16.mxu1 %v4453_v3 }
 0x324   :  { %v1821_v19 = vmax.f32 %v1765_v60, %v1767_v12  ;;  %v1713_v20 = vadd.f32 %v6126_v56, %v1522_v9  ;;  %v1524_v22 = vpop.f32.mrb[23].mxu0 }
 0x325   :  { %v1822_v23 = vmax.f32 %v1766_v62, %v1768_v2  ;;  %v1714_v25 = vadd.f32 %v6130_v59, %v1524_v22  ;;  %3914 = vmatmul.mubr.msk.f32.gmra.mrb[12].mxu1 %vm1929_vm2, %v6198_v13 }
 0x326   :  { %v1769_v26 = vmax.f32 %v1713_v20, 0.0  ;;  %2094 = vmatprep.mubr.f32.mxu1 %v5053_v0 }
 0x327   :  { %v6205_v27 = vmax.f32 %v1821_v19, %v1822_v23  ;;  %v1770_v28 = vmax.f32 %v1714_v25, 0.0  ;;  %v1528_v29 = vpop.f32.mrb[24].mxu0 }
 0x328   :  { %v1823_v30 = vmax.f32 %v1767_v12, %v1769_v26  ;;  %v1715_v32 = vadd.f32 %v6126_v56, %v1528_v29  ;;  %v1530_v33 = vpop.f32.mrb[25].mxu0 }
 0x329   :  { %v1824_v34 = vmax.f32 %v1768_v2, %v1770_v28  ;;  %v1716_v35 = vadd.f32 %v6130_v59, %v1530_v33  ;;  %3915 = vmatmul.mubr.msk.f32.gmra.mrb[14].mxu1 %vm1929_vm2, %v6205_v27 }
 0x32a   :  { %v1771_v36 = vmax.f32 %v1715_v32, 0.0  ;;  %2098 = vmatprep.mubr.f32.mxu1 %v5053_v0 }
 0x32b   :  { %v6212_v37 = vmax.f32 %v1823_v30, %v1824_v34  ;;  %v1772_v15 = vmax.f32 %v1716_v35, 0.0  ;;  %v1534_v17 = vpop.f32.mrb[26].mxu0 }
 0x32c   :  { %v1825_v18 = vmax.f32 %v1769_v26, %v1771_v36  ;;  %v1717_v42 = vadd.f32 %v6126_v56, %v1534_v17  ;;  %v1536_v39 = vpop.f32.mrb[27].mxu0 }
 0x32d   :  { %v1826_v43 = vmax.f32 %v1770_v28, %v1772_v15  ;;  %v1718_v46 = vadd.f32 %v6130_v59, %v1536_v39  ;;  %3916 = vmatmul.mubr.msk.f32.gmra.mrb[16].mxu1 %vm1929_vm2, %v6212_v37 }
 0x32e   :  { %v1773_v40 = vmax.f32 %v1717_v42, 0.0  ;;  %2104 = vmatprep.mubr.f32.mxu1 %v5053_v0 }
 0x32f   :  { %v6219_v47 = vmax.f32 %v1825_v18, %v1826_v43  ;;  %v1774_v41 = vmax.f32 %v1718_v46, 0.0  ;;  %v1540_v48 = vpop.f32.mrb[28].mxu0 }
 0x330   :  { %v1827_v49 = vmax.f32 %v1771_v36, %v1773_v40  ;;  %v1719_v50 = vadd.f32 %v6126_v56, %v1540_v48  ;;  %v1542_v57 = vpop.f32.mrb[29].mxu0 }
 0x331   :  { %v1828_v58 = vmax.f32 %v1772_v15, %v1774_v41  ;;  %v1720_v51 = vadd.f32 %v6130_v59, %v1542_v57  ;;  %3917 = vmatmul.mubr.msk.f32.gmra.mrb[18].mxu1 %vm1929_vm2, %v6219_v47 }
 0x332   :  { %v1775_v60 = vmax.f32 %v1719_v50, 0.0  ;;  %2108 = vmatprep.mubr.f32.mxu1 %v5053_v0 }
 0x333   :  { %v6226_v62 = vmax.f32 %v1827_v49, %v1828_v58  ;;  %v1776_v63 = vmax.f32 %v1720_v51, 0.0  ;;  %v1546_v1 = vpop.f32.mrb[30].mxu0 }
 0x334   :  { %v1829_v3 = vmax.f32 %v1773_v40, %v1775_v60  ;;  %v1721_v44 = vadd.f32 %v6126_v56, %v1546_v1  ;;  %v1548_v4 = vpop.f32.mrb[31].mxu0 }
 0x335   :  { %v1830_v5 = vmax.f32 %v1774_v41, %v1776_v63  ;;  %v1722_v6 = vadd.f32 %v6130_v59, %v1548_v4  ;;  %3918 = vmatmul.mubr.msk.f32.gmra.mrb[20].mxu1 %vm1929_vm2, %v6226_v62 }
 0x336   :  { %v1777_v8 = vmax.f32 %v1721_v44, 0.0  ;;  %2114 = vmatprep.mubr.f32.mxu1 %v5053_v0 }
 0x337   :  { %v6233_v12 = vmax.f32 %v1829_v3, %v1830_v5  ;;  %v1778_v2 = vmax.f32 %v1722_v6, 0.0  ;;  %v1552_v9 = vpop.f32.mrb[32].mxu0 }
 0x338   :  { %v1831_v19 = vmax.f32 %v1775_v60, %v1777_v8  ;;  %v1723_v20 = vadd.f32 %v6126_v56, %v1552_v9  ;;  %v1554_v22 = vpop.f32.mrb[33].mxu0 }
 0x339   :  { %v1832_v23 = vmax.f32 %v1776_v63, %v1778_v2  ;;  %v1724_v25 = vadd.f32 %v6130_v59, %v1554_v22  ;;  %3919 = vmatmul.mubr.msk.f32.gmra.mrb[22].mxu1 %vm1929_vm2, %v6233_v12 }
 0x33a   :  { %v1779_v26 = vmax.f32 %v1723_v20, 0.0  ;;  %2118 = vmatprep.mubr.f32.mxu1 %v5053_v0 }
 0x33b   :  { %v6240_v28 = vmax.f32 %v1831_v19, %v1832_v23  ;;  %v1780_v29 = vmax.f32 %v1724_v25, 0.0  ;;  %v1558_v30 = vpop.f32.mrb[34].mxu0 }
 0x33c   :  { %v1833_v32 = vmax.f32 %v1777_v8, %v1779_v26  ;;  %v1725_v33 = vadd.f32 %v6126_v56, %v1558_v30  ;;  %v1560_v34 = vpop.f32.mrb[35].mxu0 }
 0x33d   :  { %v1834_v35 = vmax.f32 %v1778_v2, %v1780_v29  ;;  %v1726_v36 = vadd.f32 %v6130_v59, %v1560_v34  ;;  %3920 = vmatmul.mubr.msk.f32.gmra.mrb[24].mxu1 %vm1929_vm2, %v6240_v28 }
 0x33e   :  { %v1781_v15 = vmax.f32 %v1725_v33, 0.0  ;;  %2124 = vmatprep.mubr.f32.mxu1 %v5053_v0 }
 0x33f   :  { %v6247_v17 = vmax.f32 %v1833_v32, %v1834_v35  ;;  %v1782_v18 = vmax.f32 %v1726_v36, 0.0  ;;  %v1564_v42 = vpop.f32.mrb[36].mxu0 }
 0x340   :  { %v1835_v39 = vmax.f32 %v1779_v26, %v1781_v15  ;;  %v1727_v43 = vadd.f32 %v6126_v56, %v1564_v42  ;;  %v1566_v46 = vpop.f32.mrb[37].mxu0 }
 0x341   :  { %v1836_v40 = vmax.f32 %v1780_v29, %v1782_v18  ;;  %v1728_v41 = vadd.f32 %v6130_v59, %v1566_v46  ;;  %3921 = vmatmul.mubr.msk.f32.gmra.mrb[26].mxu1 %vm1929_vm2, %v6247_v17 }
 0x342   :  { %v1783_v48 = vmax.f32 %v1727_v43, 0.0  ;;  %2128 = vmatprep.mubr.f32.mxu1 %v5053_v0 }
 0x343   :  { %v6254_v49 = vmax.f32 %v1835_v39, %v1836_v40  ;;  %v1784_v50 = vmax.f32 %v1728_v41, 0.0  ;;  %v1570_v57 = vpop.f32.mrb[38].mxu0 }
 0x344   :  { %v1837_v58 = vmax.f32 %v1781_v15, %v1783_v48  ;;  %v1729_v51 = vadd.f32 %v6126_v56, %v1570_v57  ;;  %v1572_v60 = vpop.f32.mrb[39].mxu0  ;;  %v2329_v57 = vld [vmem:[#allocation2 + $0x160] sm:$0xff] }
 0x345   :  { %v1838_v63 = vmax.f32 %v1782_v18, %v1784_v50  ;;  %v1730_v1 = vadd.f32 %v6130_v59, %v1572_v60  ;;  %3922 = vmatmul.mubr.msk.f32.gmra.mrb[28].mxu1 %vm1929_vm2, %v6254_v49 }
 0x346   :  { %v1785_v3 = vmax.f32 %v1729_v51, 0.0  ;;  %2134 = vmatprep.mubr.f32.mxu1 %v5053_v0 }
 0x347   :  { %v6261_v44 = vmax.f32 %v1837_v58, %v1838_v63  ;;  %v1786_v4 = vmax.f32 %v1730_v1, 0.0  ;;  %v1576_v5 = vpop.f32.mrb[40].mxu0  ;;  %v2331_v58 = vld [vmem:[#allocation2 + $0x170] sm:$0xff]  ;;  %v2334_v1 = vld [vmem:[#allocation2 + $0x188] sm:$0xff] }
 0x348   :  { %v1839_v6 = vmax.f32 %v1783_v48, %v1785_v3  ;;  %v1731_v8 = vadd.f32 %v6126_v56, %v1576_v5  ;;  %v1578_v2 = vpop.f32.mrb[41].mxu0 }
 0x349   :  { %v1840_v9 = vmax.f32 %v1784_v50, %v1786_v4  ;;  %v1732_v19 = vadd.f32 %v6130_v59, %v1578_v2  ;;  %3923 = vmatmul.mubr.msk.f32.gmra.mrb[30].mxu1 %vm1929_vm2, %v6261_v44 }
 0x34a   :  { %v1787_v20 = vmax.f32 %v1731_v8, 0.0  ;;  %2138 = vmatprep.mubr.f32.mxu1 %v5053_v0  ;;  %v4455_v8 = vpack.c.bf16 %v2331_v58, %v2329_v57 }
 0x34b   :  { %v6268_v22 = vmax.f32 %v1839_v6, %v1840_v9  ;;  %v1788_v23 = vmax.f32 %v1732_v19, 0.0  ;;  %v1582_v25 = vpop.f32.mrb[42].mxu0 }
 0x34c   :  { %v1841_v26 = vmax.f32 %v1785_v3, %v1787_v20  ;;  %v1733_v29 = vadd.f32 %v6126_v56, %v1582_v25  ;;  %v1584_v30 = vpop.f32.mrb[43].mxu0  ;;  %v2336_v3 = vld [vmem:[#allocation2 + $0x198] sm:$0xff]  ;;  %v2335_v25 = vld [vmem:[#allocation2 + $0x190] sm:$0xff] }
 0x34d   :  { %v1842_v32 = vmax.f32 %v1786_v4, %v1788_v23  ;;  %v1734_v33 = vadd.f32 %v6130_v59, %v1584_v30  ;;  %3924 = vmatmul.mubr.msk.f32.gmra.mrb[32].mxu1 %vm1929_vm2, %v6268_v22 }
 0x34e   :  { %v1789_v34 = vmax.f32 %v1733_v29, 0.0  ;;  %2144 = vmatprep.mubr.f32.mxu1 %v5053_v0 }
 0x34f   :  { %v6275_v35 = vmax.f32 %v1841_v26, %v1842_v32  ;;  %v1790_v36 = vmax.f32 %v1734_v33, 0.0  ;;  %v1588_v15 = vpop.f32.mrb[44].mxu0  ;;  %v2338_v32 = vld [vmem:[#allocation2 + $0x1a8] sm:$0xff]  ;;  %v2340_v33 = vld [vmem:[#allocation2 + $0x1b8] sm:$0xff] }
 0x350   :  { %v1843_v18 = vmax.f32 %v1787_v20, %v1789_v34  ;;  %v1735_v42 = vadd.f32 %v6126_v56, %v1588_v15  ;;  %v1590_v39 = vpop.f32.mrb[45].mxu0  ;;  %v4457_v20 = vpack.c.bf16 %v2336_v3, %v2334_v1 }
 0x351   :  { %v1844_v43 = vmax.f32 %v1788_v23, %v1790_v36  ;;  %v1736_v46 = vadd.f32 %v6130_v59, %v1590_v39  ;;  %3925 = vmatmul.mubr.msk.f32.gmra.mrb[34].mxu1 %vm1929_vm2, %v6275_v35  ;;  %v2333_v23 = vld [vmem:[#allocation2 + $0x180] sm:$0xff] }
 0x352   :  { %v1791_v40 = vmax.f32 %v1735_v42, 0.0  ;;  %2148 = vmatprep.mubr.f32.mxu1 %v5053_v0 }
 0x353   :  { %v6282_v41 = vmax.f32 %v1843_v18, %v1844_v43  ;;  %v1792_v48 = vmax.f32 %v1736_v46, 0.0  ;;  %v1594_v50 = vpop.f32.mrb[46].mxu0  ;;  %v4459_v18 = vpack.c.bf16 %v2335_v25, %v2333_v23  ;;  %v4461_v46 = vpack.c.bf16 %v2340_v33, %v2338_v32 }
 0x354   :  { %v1845_v51 = vmax.f32 %v1789_v34, %v1791_v40  ;;  %v1737_v60 = vadd.f32 %v6126_v56, %v1594_v50  ;;  %v1596_v63 = vpop.f32.mrb[47].mxu0  ;;  %v4469_v33 = vpack.c.bf16 %v2348_v21, %v2346_v16  ;;  %v2553_v21 = vld [vmem:[#allocation2 + $0x250] sm:$0xff] }
 0x355   :  { %v1846_v4 = vmax.f32 %v1790_v36, %v1792_v48  ;;  %v1738_v5 = vadd.f32 %v6130_v59, %v1596_v63  ;;  %3926 = vmatmul.mubr.msk.f32.gmra.mrb[36].mxu1 %vm1929_vm2, %v6282_v41 }
 0x356   :  { %v1793_v6 = vmax.f32 %v1737_v60, 0.0  ;;  %2231 = vmatprep.mubr.f32.mxu1 %v5053_v0 }
 0x357   :  { %v6289_v2 = vmax.f32 %v1845_v51, %v1846_v4  ;;  %v1794_v9 = vmax.f32 %v1738_v5, 0.0  ;;  %v1600_v19 = vpop.f32.mrb[48].mxu0  ;;  %v4465_v5 = vpack.c.bf16 %v2344_v11, %v2342_v7  ;;  %v2548_v7 = vld [vmem:[#allocation2 + $0x228] sm:$0xff] }
 0x358   :  { %v1847_v26 = vmax.f32 %v1791_v40, %v1793_v6  ;;  %v1739_v29 = vadd.f32 %v6126_v56, %v1600_v19  ;;  %v1602_v30 = vpop.f32.mrb[49].mxu0  ;;  %v2337_v40 = vld [vmem:[#allocation2 + $0x1a0] sm:$0xff] }
 0x359   :  { %v1848_v34 = vmax.f32 %v1792_v48, %v1794_v9  ;;  %v1740_v36 = vadd.f32 %v6130_v59, %v1602_v30  ;;  %3929 = vmatmul.mubr.msk.f32.vlgmr.msra.gmra.mrb[0].mxu1 %vm1929_vm2, %v1857_v14  ;;  %v2339_v48 = vld [vmem:[#allocation2 + $0x1b0] sm:$0xff] }
 0x35a   :  { %v1795_v15 = vmax.f32 %v1739_v29, 0.0  ;;  %4456 = vmatpush1.bf16.msra.mxu1 %v4455_v8  ;;  %2237 = vmatprep.mubr.f32.mxu1 %v5053_v0  ;;  %v4463_v63 = vpack.c.bf16 %v2339_v48, %v2337_v40  ;;  %v2343_v8 = vld [vmem:[#allocation2 + $0x1d0] sm:$0xff] }
 0x35b   :  { %v6298_v42 = vmax.f32 %v1847_v26, %v1848_v34  ;;  %v1796_v39 = vmax.f32 %v1740_v36, 0.0  ;;  %v1606_v43 = vpop.f32.mrb[50].mxu0  ;;  %4458 = vmatprep.subr.bf16.mxu1 %v4457_v20  ;;  %v2345_v34 = vld [vmem:[#allocation2 + $0x1e0] sm:$0xff]  ;;  %v2347_v36 = vld [vmem:[#allocation2 + $0x1f0] sm:$0xff] }
 0x35c   :  { %v1849_v50 = vmax.f32 %v1793_v6, %v1795_v15  ;;  %v1741_v57 = vadd.f32 %v6126_v56, %v1606_v43  ;;  %v1608_v58 = vpop.f32.mrb[51].mxu0  ;;  %v2341_v6 = vld [vmem:[#allocation2 + $0x1c0] sm:$0xff]  ;;  %v4471_v40 = vpack.c.bf16 %v2347_v36, %v2345_v34  ;;  %v2564_v34 = vld [vmem:[#allocation2 + $0x2a8] sm:$0xff] }
 0x35d   :  { %v1850_v14 = vmax.f32 %v1794_v9, %v1796_v39  ;;  %v1742_v51 = vadd.f32 %v6130_v59, %v1608_v58  ;;  %3930 = vmatmul.mubr.msk.f32.gmra.mrb[38].mxu1 %vm1929_vm2, %v1858_v24  ;;  %v4467_v26 = vpack.c.bf16 %v2343_v8, %v2341_v6  ;;  %v2546_v58 = vld [vmem:[#allocation2 + $0x218] sm:$0xff]  ;;  %v2549_v6 = vld [vmem:[#allocation2 + $0x230] sm:$0xff]  ;;  %v2551_v8 = vld [vmem:[#allocation2 + $0x240] sm:$0xff] }
 0x35e   :  { %v1797_v60 = vmax.f32 %v1741_v57, 0.0  ;;  %2241 = vmatprep.mubr.f32.mxu1 %v5053_v0  ;;  %4460 = vmatpush1.bf16.msra.mxu1 %v4459_v18 }
 0x35f   :  { %v6307_v1 = vmax.f32 %v1849_v50, %v1850_v14  ;;  %v1798_v3 = vmax.f32 %v1742_v51, 0.0  ;;  %v1612_v4 = vpop.f32.mrb[52].mxu0  ;;  %4462 = vmatprep.subr.bf16.mxu1 %v4461_v46  ;;  %v4473_v14 = vpack.c.bf16 %v2548_v7, %v2546_v58  ;;  %v2545_v51 = vld [vmem:[#allocation2 + $0x210] sm:$0xff] }
 0x360   :  { %v1851_v9 = vmax.f32 %v1795_v15, %v1797_v60  ;;  %v1743_v19 = vadd.f32 %v6126_v56, %v1612_v4  ;;  %v1614_v20 = vpop.f32.mrb[53].mxu0 }
 0x361   :  { %v1852_v24 = vmax.f32 %v1796_v39, %v1798_v3  ;;  %v1744_v23 = vadd.f32 %v6130_v59, %v1614_v20  ;;  %3931 = vmatmul.mubr.msk.f32.gmra.mrb[4].mxu1 %vm1929_vm2, %v6154_v38  ;;  %v4479_v20 = vpack.c.bf16 %v2551_v8, %v2549_v6  ;;  %v2765_v8 = vld [vmem:[#allocation2 + $0x2e0] sm:$0xff] }
 0x362   :  { %v1799_v25 = vmax.f32 %v1743_v19, 0.0  ;;  %2247 = vmatprep.mubr.f32.mxu1 %v5053_v0  ;;  %4464 = vmatpush1.bf16.msra.mxu1 %v4463_v63  ;;  %v2550_v63 = vld [vmem:[#allocation2 + $0x238] sm:$0xff]  ;;  %v2556_v19 = vld [vmem:[#allocation2 + $0x268] sm:$0xff] }
 0x363   :  { %v6314_v29 = vmax.f32 %v1851_v9, %v1852_v24  ;;  %v1800_v30 = vmax.f32 %v1744_v23, 0.0  ;;  %v1618_v32 = vpop.f32.mrb[54].mxu0  ;;  %4466 = vmatprep.subr.bf16.mxu1 %v4465_v5  ;;  %v2554_v9 = vld [vmem:[#allocation2 + $0x258] sm:$0xff]  ;;  %v2555_v24 = vld [vmem:[#allocation2 + $0x260] sm:$0xff] }
 0x364   :  { %v6316_v15 = vmax.f32 %v1797_v60, %v1799_v25  ;;  %v1745_v18 = vadd.f32 %v6126_v56, %v1618_v32  ;;  %v1620_v39 = vpop.f32.mrb[55].mxu0  ;;  %v2350_v56 = vld [vmem:[#allocation2 + $0x208] sm:$0xf]  ;;  %v2547_v60 = vld [vmem:[#allocation2 + $0x220] sm:$0xff]  ;;  %v4481_v16 = vpack.c.bf16 %v2556_v19, %v2554_v9  ;;  %v2558_v23 = vld [vmem:[#allocation2 + $0x278] sm:$0xff] }
 0x365   :  { %v6319_v43 = vmax.f32 %v1798_v3, %v1800_v30  ;;  %v1746_v38 = vadd.f32 %v6130_v59, %v1620_v39  ;;  %3932 = vmatmul.mubr.msk.f32.gmra.mrb[40].mxu1 %vm1929_vm2, %v6161_v54  ;;  %v2349_v54 = vld [vmem:[#allocation2 + $0x200] sm:$0xf]  ;;  %v2552_v3 = vld [vmem:[#allocation2 + $0x248] sm:$0xff]  ;;  %v4475_v4 = vpack.c.bf16 %v2547_v60, %v2545_v51  ;;  %v2763_v51 = vld [vmem:[#allocation2 + $0x2d0] sm:$0xff] }
 0x366   :  { %v1801_v46 = vmax.f32 %v1745_v18, 0.0  ;;  %2251 = vmatprep.mubr.f32.mxu1 %v5053_v0  ;;  %4468 = vmatpush1.bf16.msra.mxu1 %v4467_v26  ;;  %v4477_v5 = vpack.c.bf16 %v2552_v3, %v2550_v63  ;;  %v4483_v26 = vpack.c.bf16 %v2555_v24, %v2553_v21  ;;  %v2559_v32 = vld [vmem:[#allocation2 + $0x280] sm:$0xff]  ;;  %v2766_v63 = vld [vmem:[#allocation2 + $0x2e8] sm:$0xff]  ;;  %v2768_v3 = vld [vmem:[#allocation2 + $0x2f8] sm:$0xff] }
 0x367   :  { %v1882_v48 = vmax.f32 %v6316_v15, %v6319_v43  ;;  %v1802_v50 = vmax.f32 %v1746_v38, 0.0  ;;  %4470 = vmatprep.subr.bf16.mxu1 %v4469_v33  ;;  %v2562_v33 = vld [vmem:[#allocation2 + $0x298] sm:$0xff]  ;;  %v2563_v39 = vld [vmem:[#allocation2 + $0x2a0] sm:$0xff]  ;;  %v4497_v6 = vpack.c.bf16 %v2768_v3, %v2766_v63  ;;  %v2767_v9 = vld [vmem:[#allocation2 + $0x2f0] sm:$0xff] }
 0x368   :  { %v6327_v57 = vmax.f32 %v1799_v25, %v1801_v46  ;;  %v2560_v25 = vld [vmem:[#allocation2 + $0x288] sm:$0xff]  ;;  %v4489_v18 = vpack.c.bf16 %v2564_v34, %v2562_v33  ;;  %v2566_v46 = vld [vmem:[#allocation2 + $0x2b8] sm:$0xf]  ;;  %v2769_v24 = vld [vmem:[#allocation2 + $0x300] sm:$0xff] }
 0x369   :  { %v6329_v11 = vmax.f32 %v1800_v30, %v1802_v50  ;;  %3933 = vmatmul.mubr.msk.f32.gmra.mrb[8].mxu1 %vm1929_vm2, %v6168_v10  ;;  %v4485_v30 = vpack.c.bf16 %v2560_v25, %v2558_v23  ;;  %v2764_v50 = vld [vmem:[#allocation2 + $0x2d8] sm:$0xff]  ;;  %v2770_v19 = vld [vmem:[#allocation2 + $0x308] sm:$0xff]  ;;  %v2771_v23 = vld [vmem:[#allocation2 + $0x310] sm:$0xff] }
 0x36a   :  { %2257 = vmatprep.mubr.f32.mxu1 %v5053_v0  ;;  %4472 = vmatpush1.bf16.msra.mxu1 %v4471_v40  ;;  %v2762_v40 = vld [vmem:[#allocation2 + $0x2c8] sm:$0xff]  ;;  %v2773_v33 = vld [vmem:[#allocation2 + $0x320] sm:$0xff]  ;;  %v2775_v34 = vld [vmem:[#allocation2 + $0x330] sm:$0xff] }
 0x36b   :  { %v1883_v59 = vmax.f32 %v6327_v57, %v6329_v11  ;;  %3948 = vmatprep.subr.msk.mxu1 %vm1987_vm1, %v2350_v56  ;;  %v2565_v56 = vld [vmem:[#allocation2 + $0x2b0] sm:$0xf]  ;;  %v4493_v58 = vpack.c.bf16 %v2764_v50, %v2762_v40 }
 0x36d   :  { %3934 = vmatmul.mubr.msk.f32.gmra.mrb[42].mxu1 %vm1929_vm2, %v6175_v31 }
 0x36e   :  { %2261 = vmatprep.mubr.f32.mxu1 %v5053_v0  ;;  %3949 = vmatpush1.msk.msra.mxu1 %vm1987_vm1, %v2349_v54 }
 0x36f   :  { %4474 = vmatprep.subr.bf16.mxu1 %v4473_v14  ;;  %v2761_v14 = vld [vmem:[#allocation2 + $0x2c0] sm:$0xff] }
 0x371   :  { %3935 = vmatmul.mubr.msk.f32.gmra.mrb[12].mxu1 %vm1929_vm2, %v6182_v45 }
 0x372   :  { %2267 = vmatprep.mubr.f32.mxu1 %v5053_v0 }
 0x375   :  { %3936 = vmatmul.mubr.msk.f32.gmra.mrb[44].mxu1 %vm1929_vm2, %v6189_v61 }
 0x376   :  { %2271 = vmatprep.mubr.f32.mxu1 %v5053_v0 }
 0x379   :  { %3937 = vmatmul.mubr.msk.f32.gmra.mrb[16].mxu1 %vm1929_vm2, %v6198_v13 }
 0x37a   :  { %2277 = vmatprep.mubr.f32.mxu1 %v5053_v0 }
 0x37d   :  { %3938 = vmatmul.mubr.msk.f32.gmra.mrb[46].mxu1 %vm1929_vm2, %v6205_v27 }
 0x37e   :  { %2281 = vmatprep.mubr.f32.mxu1 %v5053_v0 }
 0x381   :  { %3939 = vmatmul.mubr.msk.f32.gmra.mrb[20].mxu1 %vm1929_vm2, %v6212_v37 }
 0x382   :  { %2287 = vmatprep.mubr.f32.mxu1 %v5053_v0 }
 0x385   :  { %3940 = vmatmul.mubr.msk.f32.gmra.mrb[48].mxu1 %vm1929_vm2, %v6219_v47 }
 0x386   :  { %2291 = vmatprep.mubr.f32.mxu1 %v5053_v0 }
 0x389   :  { %3941 = vmatmul.mubr.msk.f32.gmra.mrb[24].mxu1 %vm1929_vm2, %v6226_v62 }
 0x38a   :  { %2297 = vmatprep.mubr.f32.mxu1 %v5053_v0 }
 0x38d   :  { %3942 = vmatmul.mubr.msk.f32.gmra.mrb[50].mxu1 %vm1929_vm2, %v6233_v12 }
 0x38e   :  { %2301 = vmatprep.mubr.f32.mxu1 %v5053_v0 }
 0x391   :  { %3943 = vmatmul.mubr.msk.f32.gmra.mrb[28].mxu1 %vm1929_vm2, %v6240_v28 }
 0x392   :  { %2307 = vmatprep.mubr.f32.mxu1 %v5053_v0 }
 0x395   :  { %3944 = vmatmul.mubr.msk.f32.gmra.mrb[52].mxu1 %vm1929_vm2, %v6247_v17 }
 0x396   :  { %2311 = vmatprep.mubr.f32.mxu1 %v5053_v0 }
 0x399   :  { %3945 = vmatmul.mubr.msk.f32.gmra.mrb[32].mxu1 %vm1929_vm2, %v6254_v49 }
 0x39a   :  { %2317 = vmatprep.mubr.f32.mxu1 %v5053_v0 }
 0x39d   :  { %3946 = vmatmul.mubr.msk.f32.gmra.mrb[54].mxu1 %vm1929_vm2, %v6261_v44 }
 0x39e   :  { %2321 = vmatprep.mubr.f32.mxu1 %v5053_v0 }
 0x3a1   :  { %3947 = vmatmul.mubr.msk.f32.gmra.mrb[36].mxu1 %vm1929_vm2, %v6268_v22 }
 0x3a2   :  { %2427 = vmatprep.mubr.f32.mxu1 %v5053_v0 }
 0x3a5   :  { %3950 = vmatmul.mubr.msk.f32.vlgmr.msra.gmra.mrb[0].mxu1 %vm1929_vm2, %v6168_v10  ;;  %v2557_v10 = vld [vmem:[#allocation2 + $0x270] sm:$0xff] }
 0x3a6   :  { %4476 = vmatpush1.bf16.msra.mxu1 %v4475_v4  ;;  %2433 = vmatprep.mubr.f32.mxu1 %v5053_v0  ;;  %v4487_v36 = vpack.c.bf16 %v2559_v32, %v2557_v10  ;;  %v4503_v32 = vpack.c.bf16 %v2771_v23, %v2769_v24 }
 0x3a7   :  { %4478 = vmatprep.subr.bf16.mxu1 %v4477_v5  ;;  %v4495_v5 = vpack.c.bf16 %v2763_v51, %v2761_v14 }
 0x3a9   :  { %3951 = vmatmul.mubr.msk.f32.gmra.mrb[56].mxu1 %vm1929_vm2, %v6175_v31  ;;  %v2561_v31 = vld [vmem:[#allocation2 + $0x290] sm:$0xff] }
 0x3aa   :  { %2437 = vmatprep.mubr.f32.mxu1 %v5053_v0  ;;  %4480 = vmatpush1.bf16.msra.mxu1 %v4479_v20  ;;  %v4491_v38 = vpack.c.bf16 %v2563_v39, %v2561_v31  ;;  %v2772_v20 = vld [vmem:[#allocation2 + $0x318] sm:$0xff]  ;;  %v4507_v31 = vpack.c.bf16 %v2775_v34, %v2773_v33 }
 0x3ab   :  { %4482 = vmatprep.subr.bf16.mxu1 %v4481_v16  ;;  %v4499_v16 = vpack.c.bf16 %v2767_v9, %v2765_v8  ;;  %v4501_v21 = vpack.c.bf16 %v2772_v20, %v2770_v19 }
 0x3ad   :  { %3952 = vmatmul.mubr.msk.f32.gmra.mrb[4].mxu1 %vm1929_vm2, %v6182_v45 }
 0x3ae   :  { %2443 = vmatprep.mubr.f32.mxu1 %v5053_v0  ;;  %4484 = vmatpush1.bf16.msra.mxu1 %v4483_v26  ;;  %v2774_v26 = vld [vmem:[#allocation2 + $0x328] sm:$0xff] }
 0x3af   :  { %4486 = vmatprep.subr.bf16.mxu1 %v4485_v30  ;;  %v2776_v30 = vld [vmem:[#allocation2 + $0x338] sm:$0xff] }
 0x3b1   :  { %3953 = vmatmul.mubr.msk.f32.gmra.mrb[58].mxu1 %vm1929_vm2, %v6189_v61 }
 0x3b2   :  { %2447 = vmatprep.mubr.f32.mxu1 %v5053_v0  ;;  %4488 = vmatpush1.bf16.msra.mxu1 %v4487_v36  ;;  %v2778_v36 = vld [vmem:[#allocation2 + $0x348] sm:$0xff] }
 0x3b3   :  { %4490 = vmatprep.subr.bf16.mxu1 %v4489_v18  ;;  %v2780_v18 = vld [vmem:[#allocation2 + $0x358] sm:$0xff] }
 0x3b4   :  { %v4509_v39 = vpack.c.bf16 %v2780_v18, %v2778_v36  ;;  %v3061_v18 = vld [vmem:[#allocation4 + $0x88] sm:$0xff] }
 0x3b5   :  { %3954 = vmatmul.mubr.msk.f32.gmra.mrb[8].mxu1 %vm1929_vm2, %v6198_v13 }
 0x3b6   :  { %2453 = vmatprep.mubr.f32.mxu1 %v5053_v0  ;;  %4492 = vmatpush1.bf16.msra.mxu1 %v4491_v38  ;;  %v2779_v38 = vld [vmem:[#allocation2 + $0x350] sm:$0xff] }
 0x3b7   :  { %3969 = vmatprep.subr.msk.mxu1 %vm1987_vm1, %v2566_v46 }
 0x3b9   :  { %3955 = vmatmul.mubr.msk.f32.gmra.mrb[60].mxu1 %vm1929_vm2, %v6205_v27 }
 0x3ba   :  { %2457 = vmatprep.mubr.f32.mxu1 %v5053_v0  ;;  %3970 = vmatpush1.msk.msra.mxu1 %vm1987_vm1, %v2565_v56  ;;  %v2782_v56 = vld [vmem:[#allocation2 + $0x368] sm:$0xf] }
 0x3bb   :  { %4494 = vmatprep.subr.bf16.mxu1 %v4493_v58  ;;  %v2781_v58 = vld [vmem:[#allocation2 + $0x360] sm:$0xf] }
 0x3bd   :  { %3956 = vmatmul.mubr.msk.f32.gmra.mrb[12].mxu1 %vm1929_vm2, %v6212_v37 }
 0x3be   :  { %2463 = vmatprep.mubr.f32.mxu1 %v5053_v0 }
 0x3c1   :  { %3957 = vmatmul.mubr.msk.f32.gmra.mrb[62].mxu1 %vm1929_vm2, %v6219_v47 }
 0x3c2   :  { %2467 = vmatprep.mubr.f32.mxu1 %v5053_v0 }
 0x3c5   :  { %3958 = vmatmul.mubr.msk.f32.gmra.mrb[16].mxu1 %vm1929_vm2, %v6226_v62 }
 0x3c6   :  { %2473 = vmatprep.mubr.f32.mxu1 %v5053_v0 }
 0x3c9   :  { %3959 = vmatmul.mubr.msk.f32.gmra.mrb[64].mxu1 %vm1929_vm2, %v6233_v12 }
 0x3ca   :  { %2477 = vmatprep.mubr.f32.mxu1 %v5053_v0 }
 0x3cd   :  { %3960 = vmatmul.mubr.msk.f32.gmra.mrb[20].mxu1 %vm1929_vm2, %v6240_v28 }
 0x3ce   :  { %2483 = vmatprep.mubr.f32.mxu1 %v5053_v0 }
 0x3d1   :  { %3961 = vmatmul.mubr.msk.f32.gmra.mrb[66].mxu1 %vm1929_vm2, %v6247_v17 }
 0x3d2   :  { %2487 = vmatprep.mubr.f32.mxu1 %v5053_v0 }
 0x3d5   :  { %3962 = vmatmul.mubr.msk.f32.gmra.mrb[24].mxu1 %vm1929_vm2, %v6254_v49 }
 0x3d6   :  { %2493 = vmatprep.mubr.f32.mxu1 %v5053_v0 }
 0x3d9   :  { %3963 = vmatmul.mubr.msk.f32.gmra.mrb[68].mxu1 %vm1929_vm2, %v6261_v44 }
 0x3da   :  { %2497 = vmatprep.mubr.f32.mxu1 %v5053_v0 }
 0x3dd   :  { %3964 = vmatmul.mubr.msk.f32.gmra.mrb[28].mxu1 %vm1929_vm2, %v6268_v22 }
 0x3de   :  { %2503 = vmatprep.mubr.f32.mxu1 %v5053_v0 }
 0x3e1   :  { %3965 = vmatmul.mubr.msk.f32.gmra.mrb[70].mxu1 %vm1929_vm2, %v6275_v35 }
 0x3e2   :  { %2507 = vmatprep.mubr.f32.mxu1 %v5053_v0 }
 0x3e4   :  { %v2066_v7 = vpop.f32.mrb[2].mxu1 }
 0x3e5   :  { %v2067_v54 = vpop.f32.mrb[3].mxu1  ;;  %3966 = vmatmul.mubr.msk.f32.gmra.mrb[32].mxu1 %vm1929_vm2, %v6282_v41 }
 0x3e6   :  { %2513 = vmatprep.mubr.f32.mxu1 %v5053_v0 }
 0x3e9   :  { %3967 = vmatmul.mubr.msk.f32.gmra.mrb[72].mxu1 %vm1929_vm2, %v6289_v2 }
 0x3ea   :  { %2517 = vmatprep.mubr.f32.mxu1 %v5053_v0 }
 0x3ec   :  { %v2076_v60 = vpop.f32.mrb[6].mxu1 }
 0x3ed   :  { %v2077_v4 = vpop.f32.mrb[7].mxu1  ;;  %3968 = vmatmul.mubr.msk.f32.gmra.mrb[36].mxu1 %vm1929_vm2, %v6298_v42 }
 0x3ee   :  { %2643 = vmatprep.mubr.f32.mxu1 %v5053_v0 }
 0x3f1   :  { %3971 = vmatmul.mubr.msk.f32.vlgmr.msra.gmra.mrb[0].mxu1 %vm1929_vm2, %v6182_v45  ;;  %v4505_v45 = vpack.c.bf16 %v2776_v30, %v2774_v26  ;;  %v5054_v26 = vmov 0.0|0.0  }
 0x3f2   :  { %4496 = vmatpush1.bf16.msra.mxu1 %v4495_v5  ;;  %2649 = vmatprep.mubr.f32.mxu1 %v5053_v0 }
 0x3f3   :  { %4498 = vmatprep.subr.bf16.mxu1 %v4497_v6 }
 0x3f4   :  { %v2086_v25 = vpop.f32.mrb[10].mxu1 }
 0x3f5   :  { %v2087_v10 = vpop.f32.mrb[11].mxu1  ;;  %3972 = vmatmul.mubr.msk.f32.gmra.mrb[74].mxu1 %vm1929_vm2, %v6189_v61  ;;  %v2777_v61 = vld [vmem:[#allocation2 + $0x340] sm:$0xff]  ;;  %v3055_v25 = vld [vmem:[#allocation4 + $0x58] sm:$0xff] }
 0x3f6   :  { %2653 = vmatprep.mubr.f32.mxu1 %v5053_v0  ;;  %4500 = vmatpush1.bf16.msra.mxu1 %v4499_v16  ;;  %v4511_v50 = vpack.c.bf16 %v2779_v38, %v2777_v61 }
 0x3f7   :  { %4502 = vmatprep.subr.bf16.mxu1 %v4501_v21 }
 0x3f9   :  { %3973 = vmatmul.mubr.msk.f32.gmra.mrb[4].mxu1 %vm1929_vm2, %v6198_v13 }
 0x3fa   :  { %2659 = vmatprep.mubr.f32.mxu1 %v5053_v0  ;;  %4504 = vmatpush1.bf16.msra.mxu1 %v4503_v32  ;;  %v3057_v32 = vld [vmem:[#allocation4 + $0x68] sm:$0xff] }
 0x3fb   :  { %4506 = vmatprep.subr.bf16.mxu1 %v4505_v45 }
 0x3fc   :  { %v2096_v46 = vpop.f32.mrb[14].mxu1 }
 0x3fd   :  { %v2097_v40 = vpop.f32.mrb[15].mxu1  ;;  %3974 = vmatmul.mubr.msk.f32.gmra.mrb[76].mxu1 %vm1929_vm2, %v6205_v27  ;;  %v3062_v46 = vld [vmem:[#allocation4 + $0x90] sm:$0xff] }
 0x3fe   :  { %2663 = vmatprep.mubr.f32.mxu1 %v5053_v0  ;;  %4508 = vmatpush1.bf16.msra.mxu1 %v4507_v31  ;;  %v3063_v40 = vld [vmem:[#allocation4 + $0x98] sm:$0xff] }
 0x3ff   :  { %4510 = vmatprep.subr.bf16.mxu1 %v4509_v39  ;;  %v4526_v11 = vpack.c.bf16 %v3063_v40, %v3062_v46 }
 0x401   :  { %3975 = vmatmul.mubr.msk.f32.gmra.mrb[8].mxu1 %vm1929_vm2, %v6212_v37 }
 0x402   :  { %2669 = vmatprep.mubr.f32.mxu1 %v5053_v0  ;;  %4512 = vmatpush1.bf16.msra.mxu1 %v4511_v50 }
 0x403   :  { %3990 = vmatprep.subr.msk.mxu1 %vm1987_vm1, %v2782_v56 }
 0x404   :  { %v2106_v7 = vpop.f32.mrb[18].mxu1 }
 0x405   :  { %v2107_v54 = vpop.f32.mrb[19].mxu1  ;;  %3976 = vmatmul.mubr.msk.f32.gmra.mrb[78].mxu1 %vm1929_vm2, %v6219_v47 }
 0x406   :  { %2673 = vmatprep.mubr.f32.mxu1 %v5053_v0  ;;  %3991 = vmatpush1.msk.msra.mxu1 %vm1987_vm1, %v2781_v58 }
 0x407   :  { %4513 = vmatprep.subr.bf16.mxu1 %v5054_v26 }
 0x409   :  { %3977 = vmatmul.mubr.msk.f32.gmra.mrb[12].mxu1 %vm1929_vm2, %v6226_v62 }
 0x40a   :  { %2679 = vmatprep.mubr.f32.mxu1 %v5053_v0 }
 0x40c   :  { %v2116_v14 = vpop.f32.mrb[22].mxu1 }
 0x40d   :  { %v2117_v51 = vpop.f32.mrb[23].mxu1  ;;  %3978 = vmatmul.mubr.msk.f32.gmra.mrb[80].mxu1 %vm1929_vm2, %v6233_v12 }
 0x40e   :  { %2683 = vmatprep.mubr.f32.mxu1 %v5053_v0 }
 0x411   :  { %3979 = vmatmul.mubr.msk.f32.gmra.mrb[16].mxu1 %vm1929_vm2, %v6240_v28 }
 0x412   :  { %2689 = vmatprep.mubr.f32.mxu1 %v5053_v0 }
 0x414   :  { %v2126_v60 = vpop.f32.mrb[26].mxu1 }
 0x415   :  { %v2127_v63 = vpop.f32.mrb[27].mxu1  ;;  %3980 = vmatmul.mubr.msk.f32.gmra.mrb[82].mxu1 %vm1929_vm2, %v6247_v17 }
 0x416   :  { %2693 = vmatprep.mubr.f32.mxu1 %v5053_v0 }
 0x419   :  { %3981 = vmatmul.mubr.msk.f32.gmra.mrb[20].mxu1 %vm1929_vm2, %v6254_v49 }
 0x41a   :  { %2699 = vmatprep.mubr.f32.mxu1 %v5053_v0 }
 0x41c   :  { %v2136_v3 = vpop.f32.mrb[30].mxu1 }
 0x41d   :  { %v2137_v4 = vpop.f32.mrb[31].mxu1  ;;  %3982 = vmatmul.mubr.msk.f32.gmra.mrb[84].mxu1 %vm1929_vm2, %v6261_v44 }
 0x41e   :  { %2703 = vmatprep.mubr.f32.mxu1 %v5053_v0 }
 0x421   :  { %3983 = vmatmul.mubr.msk.f32.gmra.mrb[24].mxu1 %vm1929_vm2, %v6268_v22 }
 0x422   :  { %2709 = vmatprep.mubr.f32.mxu1 %v5053_v0 }
 0x424   :  { %v2146_v5 = vpop.f32.mrb[34].mxu1 }
 0x425   :  { %v2147_v6 = vpop.f32.mrb[35].mxu1  ;;  %3984 = vmatmul.mubr.msk.f32.gmra.mrb[86].mxu1 %vm1929_vm2, %v6275_v35 }
 0x426   :  { %2713 = vmatprep.mubr.f32.mxu1 %v5053_v0 }
 0x429   :  { %3985 = vmatmul.mubr.msk.f32.gmra.mrb[28].mxu1 %vm1929_vm2, %v6282_v41 }
 0x42a   :  { %2719 = vmatprep.mubr.f32.mxu1 %v5053_v0 }
 0x42d   :  { %3986 = vmatmul.mubr.msk.f32.gmra.mrb[88].mxu1 %vm1929_vm2, %v6289_v2 }
 0x42e   :  { %2723 = vmatprep.mubr.f32.mxu1 %v5053_v0 }
 0x430   :  { %v2239_v8 = vpop.f32.mrb[38].mxu1 }
 0x431   :  { %v2240_v9 = vpop.f32.mrb[39].mxu1  ;;  %3987 = vmatmul.mubr.msk.f32.gmra.mrb[32].mxu1 %vm1929_vm2, %v6298_v42 }
 0x432   :  { %2729 = vmatprep.mubr.f32.mxu1 %v5053_v0 }
 0x435   :  { %3988 = vmatmul.mubr.msk.f32.gmra.mrb[90].mxu1 %vm1929_vm2, %v6307_v1 }
 0x436   :  { %2733 = vmatprep.mubr.f32.mxu1 %v5053_v0 }
 0x438   :  { %v2249_v19 = vpop.f32.mrb[40].mxu1 }
 0x439   :  { %v2250_v20 = vpop.f32.mrb[41].mxu1  ;;  %3989 = vmatmul.mubr.msk.f32.gmra.mrb[36].mxu1 %vm1929_vm2, %v6314_v29 }
 0x43a   :  { %2859 = vmatprep.mubr.f32.mxu1 %v5053_v0 }
 0x43d   :  { %3992 = vmatmul.mubr.msk.f32.vlgmr.msra.gmra.mrb[0].mxu1 %vm1929_vm2, %v6198_v13 }
 0x43e   :  { %2865 = vmatprep.mubr.f32.mxu1 %v5053_v0 }
 0x440   :  { %v2259_v16 = vpop.f32.mrb[42].mxu1 }
 0x441   :  { %v2260_v21 = vpop.f32.mrb[43].mxu1  ;;  %3993 = vmatmul.mubr.msk.f32.gmra.mrb[92].mxu1 %vm1929_vm2, %v6205_v27 }
 0x442   :  { %2869 = vmatprep.mubr.f32.mxu1 %v5053_v0 }
 0x445   :  { %3994 = vmatmul.mubr.msk.f32.gmra.mrb[4].mxu1 %vm1929_vm2, %v6212_v37 }
 0x446   :  { %2875 = vmatprep.mubr.f32.mxu1 %v5053_v0 }
 0x448   :  { %v2269_v24 = vpop.f32.mrb[44].mxu1 }
 0x449   :  { %v2270_v23 = vpop.f32.mrb[45].mxu1  ;;  %3995 = vmatmul.mubr.msk.f32.gmra.mrb[94].mxu1 %vm1929_vm2, %v6219_v47 }
 0x44a   :  { %2879 = vmatprep.mubr.f32.mxu1 %v5053_v0 }
 0x44d   :  { %3996 = vmatmul.mubr.msk.f32.gmra.mrb[8].mxu1 %vm1929_vm2, %v6226_v62 }
 0x44e   :  { %2885 = vmatprep.mubr.f32.mxu1 %v5053_v0 }
 0x450   :  { %v2279_v13 = vpop.f32.mrb[46].mxu1 }
 0x451   :  { %v2280_v27 = vpop.f32.mrb[47].mxu1  ;;  %3997 = vmatmul.mubr.msk.f32.gmra.mrb[96].mxu1 %vm1929_vm2, %v6233_v12 }
 0x452   :  { %2889 = vmatprep.mubr.f32.mxu1 %v5053_v0 }
 0x455   :  { %3998 = vmatmul.mubr.msk.f32.gmra.mrb[12].mxu1 %vm1929_vm2, %v6240_v28  ;;  %v3054_v28 = vld [vmem:[#allocation4 + $0x50] sm:$0xff] }
 0x456   :  { %2895 = vmatprep.mubr.f32.mxu1 %v5053_v0 }
 0x458   :  { %v2289_v37 = vpop.f32.mrb[48].mxu1 }
 0x459   :  { %v2290_v47 = vpop.f32.mrb[49].mxu1  ;;  %3999 = vmatmul.mubr.msk.f32.gmra.mrb[98].mxu1 %vm1929_vm2, %v6247_v17  ;;  %v4514_v17 = vpack.c.bf16 %v3055_v25, %v3054_v28 }
 0x45a   :  { %2899 = vmatprep.mubr.f32.mxu1 %v5053_v0  ;;  %v2976_v47 = vld [vmem:[%s6686_s4] sm:$0x3] }
 0x45b   :  { %4515 = vmatpush3.bf16.msra.mxu1 %v4514_v17  ;;  %v6575_v28 = vrot.slane %v2976_v47, %v1687_v55 }
 0x45c   :  { %4516 = vmatprep.subr.bf16.mxu1 %v5054_v26 }
 0x45d   :  { %4000 = vmatmul.mubr.msk.f32.gmra.mrb[16].mxu1 %vm1929_vm2, %v6254_v49 }
 0x45e   :  { %2905 = vmatprep.mubr.f32.mxu1 %v5053_v0 }
 0x460   :  { %v2299_v62 = vpop.f32.mrb[50].mxu1 }
 0x461   :  { %v2300_v12 = vpop.f32.mrb[51].mxu1  ;;  %4001 = vmatmul.mubr.msk.f32.gmra.mrb[100].mxu1 %vm1929_vm2, %v6261_v44 }
 0x462   :  { %2909 = vmatprep.mubr.f32.mxu1 %v5053_v0  ;;  %v6571_v12 = vrot.slane %v2976_v47, %v1683_v53 }
 0x465   :  { %4002 = vmatmul.mubr.msk.f32.gmra.mrb[20].mxu1 %vm1929_vm2, %v6268_v22  ;;  %v3056_v22 = vld [vmem:[#allocation4 + $0x60] sm:$0xff] }
 0x466   :  { %2915 = vmatprep.mubr.f32.mxu1 %v5053_v0  ;;  %v4517_v45 = vpack.c.bf16 %v3057_v32, %v3056_v22 }
 0x468   :  { %v2309_v49 = vpop.f32.mrb[52].mxu1  ;;  %4518 = vmatpush3.bf16.msra.mxu1 %v4517_v45 }
 0x469   :  { %v2310_v30 = vpop.f32.mrb[53].mxu1  ;;  %4003 = vmatmul.mubr.msk.f32.gmra.mrb[102].mxu1 %vm1929_vm2, %v6275_v35  ;;  %4519 = vmatprep.subr.bf16.mxu1 %v5054_v26 }
 0x46a   :  { %2919 = vmatprep.mubr.f32.mxu1 %v5053_v0 }
 0x46d   :  { %4004 = vmatmul.mubr.msk.f32.gmra.mrb[24].mxu1 %vm1929_vm2, %v6282_v41 }
 0x46e   :  { %2925 = vmatprep.mubr.f32.mxu1 %v5053_v0 }
 0x470   :  { %v2319_v44 = vpop.f32.mrb[54].mxu1 }
 0x471   :  { %v2320_v10 = vpop.f32.mrb[55].mxu1  ;;  %4005 = vmatmul.mubr.msk.f32.gmra.mrb[104].mxu1 %vm1929_vm2, %v6289_v2  ;;  %v3058_v2 = vld [vmem:[#allocation4 + $0x70] sm:$0xff] }
 0x472   :  { %2929 = vmatprep.mubr.f32.mxu1 %v5053_v0 }
 0x475   :  { %4006 = vmatmul.mubr.msk.f32.gmra.mrb[28].mxu1 %vm1929_vm2, %v6298_v42  ;;  %v3059_v42 = vld [vmem:[#allocation4 + $0x78] sm:$0xff] }
 0x476   :  { %2935 = vmatprep.mubr.f32.mxu1 %v5053_v0  ;;  %v4520_v33 = vpack.c.bf16 %v3059_v42, %v3058_v2 }
 0x478   :  { %4521 = vmatpush3.bf16.msra.mxu1 %v4520_v33 }
 0x479   :  { %4007 = vmatmul.mubr.msk.f32.gmra.mrb[106].mxu1 %vm1929_vm2, %v6307_v1  ;;  %4522 = vmatprep.subr.bf16.mxu1 %v5054_v26 }
 0x47a   :  { %2939 = vmatprep.mubr.f32.mxu1 %v5053_v0 }
 0x47c   :  { %v2435_v35 = vpop.f32.mrb[56].mxu1 }
 0x47d   :  { %v2436_v41 = vpop.f32.mrb[57].mxu1  ;;  %4008 = vmatmul.mubr.msk.f32.gmra.mrb[32].mxu1 %vm1929_vm2, %v6314_v29 }
 0x47e   :  { %2945 = vmatprep.mubr.f32.mxu1 %v5053_v0 }
 0x481   :  { %4009 = vmatmul.mubr.msk.f32.gmra.mrb[108].mxu1 %vm1929_vm2, %v1882_v48  ;;  %v3060_v48 = vld [vmem:[#allocation4 + $0x80] sm:$0xff] }
 0x482   :  { %2949 = vmatprep.mubr.f32.mxu1 %v5053_v0  ;;  %v4523_v31 = vpack.c.bf16 %v3061_v18, %v3060_v48 }
 0x484   :  { %v2445_v1 = vpop.f32.mrb[58].mxu1  ;;  %4524 = vmatpush3.bf16.msra.mxu1 %v4523_v31 }
 0x485   :  { %v2446_v34 = vpop.f32.mrb[59].mxu1  ;;  %4010 = vmatmul.mubr.msk.f32.gmra.mrb[36].mxu1 %vm1929_vm2, %v1883_v59  ;;  %4525 = vmatprep.subr.bf16.mxu1 %v5054_v26 }
 0x486   :  { %4128 = vmatprep.mubr.msk.f32.mxu1 %vm5055_vm3, %v5053_v0 }
 0x488   :  { %4527 = vmatpush3.bf16.msra.mxu1 %v4526_v11  ;;  %v3043_v11 = vld [vmem:[#allocation4] sm:$0xff] }
 0x489   :  { %4528 = vmatprep.subr.bf16.mxu1 %v5054_v26 }
 0x48c   :  { %v2455_v29 = vpop.f32.mrb[60].mxu1 }
 0x48d   :  { %v2456_v36 = vpop.f32.mrb[61].mxu1 }
 0x494   :  { %v2465_v15 = vpop.f32.mrb[62].mxu1 }
 0x495   :  { %v2466_v43 = vpop.f32.mrb[63].mxu1 }
 0x49c   :  { %v2475_v39 = vpop.f32.mrb[64].mxu1 }
 0x49d   :  { %v2476_v61 = vpop.f32.mrb[65].mxu1 }
 0x4a4   :  { %v2485_v38 = vpop.f32.mrb[66].mxu1 }
 0x4a5   :  { %v2486_v57 = vpop.f32.mrb[67].mxu1 }
 0x4ac   :  { %v2495_v59 = vpop.f32.mrb[68].mxu1 }
 0x4ad   :  { %v2496_v50 = vpop.f32.mrb[69].mxu1  ;;  %v3044_v59 = vld [vmem:[#allocation4 + $0x8] sm:$0xff] }
 0x4b4   :  { %v2505_v56 = vpop.f32.mrb[70].mxu1 }
 0x4b5   :  { %v2506_v58 = vpop.f32.mrb[71].mxu1 }
 0x4bc   :  { %v2515_v7 = vpop.f32.mrb[72].mxu1 }
 0x4bd   :  { %v2516_v54 = vpop.f32.mrb[73].mxu1  ;;  %v4529_v7 = vpack.c.bf16 %v3044_v59, %v3043_v11 }
 0x4c8   :  { %v2651_v14 = vpop.f32.mrb[74].mxu1 }
 0x4c9   :  { %v2652_v51 = vpop.f32.mrb[75].mxu1 }
 0x4ca   :  { %v3045_v51 = vld [vmem:[#allocation4 + $0x10] sm:$0xff] }
 0x4d0   :  { %v2661_v60 = vpop.f32.mrb[76].mxu1 }
 0x4d1   :  { %v2662_v63 = vpop.f32.mrb[77].mxu1  ;;  %v3046_v60 = vld [vmem:[#allocation4 + $0x18] sm:$0xff] }
 0x4d8   :  { %v2671_v3 = vpop.f32.mrb[78].mxu1 }
 0x4d9   :  { %v2672_v4 = vpop.f32.mrb[79].mxu1  ;;  %v4532_v3 = vpack.c.bf16 %v3046_v60, %v3045_v51 }
 0x4e0   :  { %v2681_v5 = vpop.f32.mrb[80].mxu1 }
 0x4e1   :  { %v2682_v6 = vpop.f32.mrb[81].mxu1  ;;  %v3047_v5 = vld [vmem:[#allocation4 + $0x20] sm:$0xff] }
 0x4e2   :  { %v3048_v6 = vld [vmem:[#allocation4 + $0x28] sm:$0xff] }
 0x4e8   :  { %v2691_v8 = vpop.f32.mrb[82].mxu1 }
 0x4e9   :  { %v2692_v9 = vpop.f32.mrb[83].mxu1 }
 0x4f0   :  { %v2701_v19 = vpop.f32.mrb[84].mxu1 }
 0x4f1   :  { %v2702_v20 = vpop.f32.mrb[85].mxu1  ;;  %v4535_v19 = vpack.c.bf16 %v3048_v6, %v3047_v5 }
 0x4f8   :  { %v2711_v16 = vpop.f32.mrb[86].mxu1 }
 0x4f9   :  { %v2712_v21 = vpop.f32.mrb[87].mxu1 }
 0x4fa   :  { %v3049_v21 = vld [vmem:[#allocation4 + $0x30] sm:$0xff] }
 0x500   :  { %v2721_v24 = vpop.f32.mrb[88].mxu1 }
 0x501   :  { %v2722_v23 = vpop.f32.mrb[89].mxu1  ;;  %v3050_v24 = vld [vmem:[#allocation4 + $0x38] sm:$0xff] }
 0x508   :  { %v2731_v13 = vpop.f32.mrb[90].mxu1 }
 0x509   :  { %v2732_v27 = vpop.f32.mrb[91].mxu1 }
 0x510   :  { %v2861_v37 = vpop.f32.mrb[0].mxu1 }
 0x511   :  { %v2863_v62 = vpop.f32.mrb[1].mxu1  ;;  %v2988_v49 = vadd.f32 %v6571_v12, %v2861_v37 }
 0x512   :  { %v2989_v30 = vadd.f32 %v6575_v28, %v2863_v62  ;;  %v4538_v62 = vpack.c.bf16 %v3050_v24, %v3049_v21 }
 0x513   :  { %v3008_v45 = vmax.f32 %v2988_v49, 0.0 }
 0x514   :  { %v2867_v25 = vpop.f32.mrb[92].mxu1  ;;  %v3009_v53 = vmax.f32 %v2989_v30, 0.0  ;;  %v3051_v30 = vld [vmem:[#allocation4 + $0x40] sm:$0xff] }
 0x515   :  { %v2868_v17 = vpop.f32.mrb[93].mxu1 }
 0x518   :  { %v2871_v44 = vpop.f32.mrb[4].mxu1 }
 0x519   :  { %v2990_v10 = vadd.f32 %v6571_v12, %v2871_v44  ;;  %v2873_v22 = vpop.f32.mrb[5].mxu1  ;;  %v3052_v44 = vld [vmem:[#allocation4 + $0x48] sm:$0xff] }
 0x51a   :  { %v2991_v32 = vadd.f32 %v6575_v28, %v2873_v22 }
 0x51b   :  { %v3010_v35 = vmax.f32 %v2990_v10, 0.0 }
 0x51c   :  { %v3011_v41 = vmax.f32 %v2991_v32, 0.0  ;;  %v2877_v2 = vpop.f32.mrb[94].mxu1 }
 0x51d   :  { %v6581_v52 = vmax.f32 %v3008_v45, %v3010_v35  ;;  %v2878_v55 = vpop.f32.mrb[95].mxu1  ;;  %v4541_v45 = vpack.c.bf16 %v3052_v44, %v3051_v30  ;;  %v3213_v2 = vld [vmem:[#allocation4 + $0xa8] sm:$0xff]  ;;  %v3302_v44 = vld [vmem:[#allocation4 + $0x118] sm:$0xff] }
 0x51e   :  { %v6583_v42 = vmax.f32 %v3009_v53, %v3011_v41  ;;  %v3212_v41 = vld [vmem:[#allocation4 + $0xa0] sm:$0xff] }
 0x520   :  { %v3038_v33 = vmax.f32 %v6581_v52, %v6583_v42  ;;  %v2881_v1 = vpop.f32.mrb[8].mxu1 }
 0x521   :  { %v2883_v34 = vpop.f32.mrb[9].mxu1  ;;  %v2992_v15 = vadd.f32 %v6571_v12, %v2881_v1  ;;  %v4544_v1 = vpack.c.bf16 %v3213_v2, %v3212_v41  ;;  %v3305_v41 = vld [vmem:[#allocation4 + $0x130] sm:$0xff]  ;;  %v3306_v2 = vld [vmem:[#allocation4 + $0x138] sm:$0xff] }
 0x522   :  { %v2993_v43 = vadd.f32 %v6575_v28, %v2883_v34 }
 0x523   :  { %v3012_v61 = vmax.f32 %v2992_v15, 0.0 }
 0x524   :  { %v2887_v29 = vpop.f32.mrb[96].mxu1  ;;  %v3013_v46 = vmax.f32 %v2993_v43, 0.0 }
 0x525   :  { %v2888_v36 = vpop.f32.mrb[97].mxu1  ;;  %v3214_v29 = vld [vmem:[#allocation4 + $0xb0] sm:$0xff] }
 0x526   :  { %v3215_v36 = vld [vmem:[#allocation4 + $0xb8] sm:$0xff] }
 0x528   :  { %v2891_v48 = vpop.f32.mrb[12].mxu1 }
 0x529   :  { %v2994_v18 = vadd.f32 %v6571_v12, %v2891_v48  ;;  %v2893_v31 = vpop.f32.mrb[13].mxu1  ;;  %v4547_v48 = vpack.c.bf16 %v3215_v36, %v3214_v29  ;;  %v3384_v36 = vld [vmem:[#allocation4 + $0x150] sm:$0xff] }
 0x52a   :  { %v2995_v39 = vadd.f32 %v6575_v28, %v2893_v31 }
 0x52b   :  { %v3014_v38 = vmax.f32 %v2994_v18, 0.0 }
 0x52c   :  { %v3015_v40 = vmax.f32 %v2995_v39, 0.0  ;;  %v2897_v57 = vpop.f32.mrb[98].mxu1  ;;  %v3216_v39 = vld [vmem:[#allocation4 + $0xc0] sm:$0xff] }
 0x52d   :  { %v3030_v50 = vmax.f32 %v3012_v61, %v3014_v38  ;;  %v2898_v56 = vpop.f32.mrb[99].mxu1  ;;  %v3217_v61 = vld [vmem:[#allocation4 + $0xc8] sm:$0xff] }
 0x52e   :  { %v3031_v58 = vmax.f32 %v3013_v46, %v3015_v40  ;;  %v4550_v40 = vpack.c.bf16 %v3217_v61, %v3216_v39  ;;  %v3219_v56 = vld [vmem:[#allocation4 + $0xd8] sm:$0xff]  ;;  %v3388_v39 = vld [vmem:[#allocation4 + $0x170] sm:$0xff] }
 0x52f   :  { %v3389_v61 = vld [vmem:[#allocation4 + $0x178] sm:$0xff] }
 0x530   :  { %v3039_v54 = vmax.f32 %v3030_v50, %v3031_v58  ;;  %v2901_v14 = vpop.f32.mrb[16].mxu1  ;;  %v3218_v50 = vld [vmem:[#allocation4 + $0xd0] sm:$0xff] }
 0x531   :  { %v2903_v63 = vpop.f32.mrb[17].mxu1  ;;  %v2996_v9 = vadd.f32 %v6571_v12, %v2901_v14  ;;  %v4553_v14 = vpack.c.bf16 %v3219_v56, %v3218_v50  ;;  %v3479_v56 = vld [vmem:[#allocation6 + $0x20] sm:$0xff] }
 0x532   :  { %4129 = vmatmul.mubr.msk.f32.vlgmr.msra.gmra.mrb[110].mxu1 %vm3064_vm4, %v3039_v54  ;;  %v2997_v20 = vadd.f32 %v6575_v28, %v2903_v63  ;;  %v3220_v63 = vld [vmem:[#allocation4 + $0xe0] sm:$0xff] }
 0x533   :  { %4530 = vmatpush3.bf16.msra.mxu1 %v4529_v7  ;;  %4151 = vmatprep.mubr.msk.f32.mxu1 %vm5055_vm3, %v5053_v0  ;;  %v3016_v37 = vmax.f32 %v2996_v9, 0.0  ;;  %v3298_v9 = vld [vmem:[#allocation4 + $0xf8] sm:$0xff] }
 0x534   :  { %v2907_v4 = vpop.f32.mrb[100].mxu1  ;;  %4531 = vmatprep.subr.bf16.mxu1 %v5054_v26  ;;  %v3017_v25 = vmax.f32 %v2997_v20, 0.0 }
 0x535   :  { %v2908_v8 = vpop.f32.mrb[101].mxu1 }
 0x536   :  { %v3297_v8 = vld [vmem:[#allocation4 + $0xf0] sm:$0xff] }
 0x537   :  { %4533 = vmatpush3.bf16.msra.mxu1 %v4532_v3  ;;  %v3221_v3 = vld [vmem:[#allocation4 + $0xe8] sm:$0xff] }
 0x538   :  { %v2911_v16 = vpop.f32.mrb[20].mxu1  ;;  %4534 = vmatprep.subr.bf16.mxu1 %v5054_v26  ;;  %v4556_v5 = vpack.c.bf16 %v3221_v3, %v3220_v63  ;;  %v3484_v63 = vld [vmem:[#allocation6 + $0x48] sm:$0xff] }
 0x539   :  { %v2998_v23 = vadd.f32 %v6571_v12, %v2911_v16  ;;  %v2913_v13 = vpop.f32.mrb[21].mxu1  ;;  %v4559_v16 = vpack.c.bf16 %v3298_v9, %v3297_v8  ;;  %v3487_v8 = vld [vmem:[#allocation6 + $0x60] sm:$0xff]  ;;  %v3488_v9 = vld [vmem:[#allocation6 + $0x68] sm:$0xff] }
 0x53a   :  { %v2999_v27 = vadd.f32 %v6575_v28, %v2913_v13  ;;  %v3300_v13 = vld [vmem:[#allocation4 + $0x108] sm:$0xff] }
 0x53b   :  { %v3018_v47 = vmax.f32 %v2998_v23, 0.0  ;;  %4536 = vmatpush3.bf16.msra.mxu1 %v4535_v19  ;;  %v3299_v23 = vld [vmem:[#allocation4 + $0x100] sm:$0xff] }
 0x53c   :  { %v3019_v17 = vmax.f32 %v2999_v27, 0.0  ;;  %v2917_v49 = vpop.f32.mrb[102].mxu1  ;;  %4537 = vmatprep.subr.bf16.mxu1 %v5054_v26 }
 0x53d   :  { %v6601_v10 = vmax.f32 %v3016_v37, %v3018_v47  ;;  %v2918_v22 = vpop.f32.mrb[103].mxu1 }
 0x53e   :  { %v6603_v32 = vmax.f32 %v3017_v25, %v3019_v17  ;;  %v4562_v17 = vpack.c.bf16 %v3300_v13, %v3299_v23 }
 0x53f   :  { %4539 = vmatpush3.bf16.msra.mxu1 %v4538_v62 }
 0x540   :  { %v3040_v35 = vmax.f32 %v6601_v10, %v6603_v32  ;;  %v2921_v53 = vpop.f32.mrb[24].mxu1  ;;  %4540 = vmatprep.subr.bf16.mxu1 %v5054_v26  ;;  %v3303_v32 = vld [vmem:[#allocation4 + $0x120] sm:$0xff] }
 0x541   :  { %v2923_v55 = vpop.f32.mrb[25].mxu1  ;;  %v3000_v43 = vadd.f32 %v6571_v12, %v2921_v53 }
 0x542   :  { %v3001_v18 = vadd.f32 %v6575_v28, %v2923_v55  ;;  %v4571_v55 = vpack.c.bf16 %v3306_v2, %v3305_v41  ;;  %v3571_v41 = vld [vmem:[#allocation7 + $0x10] sm:$0xff]  ;;  %v3572_v2 = vld [vmem:[#allocation7 + $0x18] sm:$0xff] }
 0x543   :  { %4542 = vmatpush3.bf16.msra.mxu1 %v4541_v45  ;;  %v3020_v42 = vmax.f32 %v3000_v43, 0.0 }
 0x544   :  { %v2927_v34 = vpop.f32.mrb[104].mxu1  ;;  %4543 = vmatprep.subr.bf16.mxu1 %v5054_v26  ;;  %v3021_v57 = vmax.f32 %v3001_v18, 0.0  ;;  %v3387_v18 = vld [vmem:[#allocation4 + $0x168] sm:$0xff] }
 0x545   :  { %v2928_v15 = vpop.f32.mrb[105].mxu1  ;;  %v3383_v34 = vld [vmem:[#allocation4 + $0x148] sm:$0xff] }
 0x546   :  { %4152 = vmatmul.mubr.msk.f32.vlgmr.msra.gmra.mrb[112].mxu1 %vm3064_vm4, %v3038_v33  ;;  %v3385_v15 = vld [vmem:[#allocation4 + $0x158] sm:$0xff] }
 0x547   :  { %4545 = vmatpush3.bf16.msra.mxu1 %v4544_v1  ;;  %4174 = vmatprep.mubr.msk.f32.mxu1 %vm5055_vm3, %v5053_v0  ;;  %v3382_v1 = vld [vmem:[#allocation4 + $0x140] sm:$0xff]  ;;  %v4577_v43 = vpack.c.bf16 %v3385_v15, %v3384_v36  ;;  %v3576_v15 = vld [vmem:[#allocation7 + $0x38] sm:$0xff] }
 0x548   :  { %v2931_v31 = vpop.f32.mrb[28].mxu1  ;;  %4546 = vmatprep.subr.bf16.mxu1 %v5054_v26  ;;  %v4574_v29 = vpack.c.bf16 %v3383_v34, %v3382_v1  ;;  %v3573_v1 = vld [vmem:[#allocation7 + $0x20] sm:$0xff]  ;;  %v3574_v34 = vld [vmem:[#allocation7 + $0x28] sm:$0xff]  ;;  %v3575_v36 = vld [vmem:[#allocation7 + $0x30] sm:$0xff] }
 0x549   :  { %v3002_v38 = vadd.f32 %v6571_v12, %v2931_v31  ;;  %v2933_v46 = vpop.f32.mrb[29].mxu1 }
 0x54a   :  { %v3003_v52 = vadd.f32 %v6575_v28, %v2933_v46  ;;  %v3390_v46 = vld [vmem:[#allocation4 + $0x180] sm:$0xff] }
 0x54b   :  { %v3022_v33 = vmax.f32 %v3002_v38, 0.0  ;;  %4548 = vmatpush3.bf16.msra.mxu1 %v4547_v48  ;;  %v3386_v48 = vld [vmem:[#allocation4 + $0x160] sm:$0xff]  ;;  %v4583_v38 = vpack.c.bf16 %v3389_v61, %v3388_v39  ;;  %v3580_v39 = vld [vmem:[#allocation7 + $0x58] sm:$0xff] }
 0x54c   :  { %v3023_v11 = vmax.f32 %v3003_v52, 0.0  ;;  %v2937_v59 = vpop.f32.mrb[106].mxu1  ;;  %4549 = vmatprep.subr.bf16.mxu1 %v5054_v26  ;;  %v4580_v31 = vpack.c.bf16 %v3387_v18, %v3386_v48  ;;  %v3391_v52 = vld [vmem:[#allocation4 + $0x188] sm:$0xff]  ;;  %v3577_v48 = vld [vmem:[#allocation7 + $0x40] sm:$0xff]  ;;  %v3578_v18 = vld [vmem:[#allocation7 + $0x48] sm:$0xff] }
 0x54d   :  { %v6621_v58 = vmax.f32 %v3020_v42, %v3022_v33  ;;  %v2938_v7 = vpop.f32.mrb[107].mxu1  ;;  %v4586_v42 = vpack.c.bf16 %v3391_v52, %v3390_v46  ;;  %v3475_v33 = vld [vmem:[#allocation6] sm:$0xff]  ;;  %v3478_v59 = vld [vmem:[#allocation6 + $0x18] sm:$0xff]  ;;  %v3582_v46 = vld [vmem:[#allocation7 + $0x68] sm:$0xff] }
 0x54e   :  { %v3035_v54 = vmax.f32 %v3021_v57, %v3023_v11  ;;  %v3477_v11 = vld [vmem:[#allocation6 + $0x10] sm:$0xff] }
 0x54f   :  { %4551 = vmatpush3.bf16.msra.mxu1 %v4550_v40  ;;  %v3476_v40 = vld [vmem:[#allocation6 + $0x8] sm:$0xff]  ;;  %v4592_v50 = vpack.c.bf16 %v3478_v59, %v3477_v11  ;;  %v3481_v7 = vld [vmem:[#allocation6 + $0x30] sm:$0xff] }
 0x550   :  { %v3041_v51 = vmax.f32 %v6621_v58, %v3035_v54  ;;  %v2941_v60 = vpop.f32.mrb[32].mxu1  ;;  %4552 = vmatprep.subr.bf16.mxu1 %v5054_v26  ;;  %v4589_v57 = vpack.c.bf16 %v3476_v40, %v3475_v33  ;;  %v3480_v58 = vld [vmem:[#allocation6 + $0x28] sm:$0xff]  ;;  %v3584_v33 = vld [vmem:[#allocation7 + $0x78] sm:$0xff] }
 0x551   :  { %v2943_v4 = vpop.f32.mrb[33].mxu1  ;;  %v3004_v20 = vadd.f32 %v6571_v12, %v2941_v60  ;;  %v4595_v54 = vpack.c.bf16 %v3480_v58, %v3479_v56  ;;  %v3483_v60 = vld [vmem:[#allocation6 + $0x40] sm:$0xff] }
 0x552   :  { %v3005_v21 = vadd.f32 %v6575_v28, %v2943_v4  ;;  %v4601_v3 = vpack.c.bf16 %v3484_v63, %v3483_v60  ;;  %v3485_v4 = vld [vmem:[#allocation6 + $0x50] sm:$0xff]  ;;  %v4018_v58 = vld [vmem:[%s6692_s10] ss:$0 sm:$0xff] }
 0x553   :  { %4554 = vmatpush3.bf16.msra.mxu1 %v4553_v14  ;;  %v3024_v62 = vmax.f32 %v3004_v20, 0.0  ;;  %v3482_v14 = vld [vmem:[#allocation6 + $0x38] sm:$0xff]  ;;  %v3489_v20 = vld [vmem:[#allocation6 + $0x70] sm:$0xff] }
 0x554   :  { %v2947_v6 = vpop.f32.mrb[108].mxu1  ;;  %4555 = vmatprep.subr.bf16.mxu1 %v5054_v26  ;;  %v3025_v49 = vmax.f32 %v3005_v21, 0.0 }
 0x555   :  { %v2948_v19 = vpop.f32.mrb[109].mxu1 }
 0x556   :  { %v4607_v19 = vpack.c.bf16 %v3488_v9, %v3487_v8 }
 0x557   :  { %4557 = vmatpush3.bf16.msra.mxu1 %v4556_v5  ;;  %v3486_v5 = vld [vmem:[#allocation6 + $0x58] sm:$0xff] }
 0x558   :  { %v2951_v24 = vpop.f32.mrb[36].mxu1  ;;  %4558 = vmatprep.subr.bf16.mxu1 %v5054_v26  ;;  %v4604_v6 = vpack.c.bf16 %v3486_v5, %v3485_v4 }
 0x559   :  { %v3006_v27 = vadd.f32 %v6571_v12, %v2951_v24  ;;  %v2953_v37 = vpop.f32.mrb[37].mxu1  ;;  %v3301_v12 = vld [vmem:[#allocation4 + $0x110] sm:$0xff] }
 0x55a   :  { %v3007_v47 = vadd.f32 %v6575_v28, %v2953_v37  ;;  %4175 = vmatmul.mubr.msk.f32.vlgmr.msra.gmra.mrb[114].mxu1 %vm3064_vm4, %v3040_v35  ;;  %v4565_v45 = vpack.c.bf16 %v3302_v44, %v3301_v12  ;;  %v3304_v35 = vld [vmem:[#allocation4 + $0x128] sm:$0xff]  ;;  %v4016_v44 = vld [vmem:[%s6688_s6] ss:$0 sm:$0xff] }
 0x55b   :  { %v3026_v25 = vmax.f32 %v3006_v27, 0.0  ;;  %4560 = vmatpush3.bf16.msra.mxu1 %v4559_v16  ;;  %4197 = vmatprep.mubr.msk.f32.mxu1 %vm5055_vm3, %v5053_v0  ;;  %v4568_v53 = vpack.c.bf16 %v3304_v35, %v3303_v32  ;;  %v3490_v16 = vld [vmem:[#allocation6 + $0x78] sm:$0xff] }
 0x55c   :  { %v3027_v30 = vmax.f32 %v3007_v47, 0.0  ;;  %4561 = vmatprep.subr.bf16.mxu1 %v5054_v26  ;;  %v4610_v21 = vpack.c.bf16 %v3490_v16, %v3489_v20 }
 0x55d   :  { %v3036_v22 = vmax.f32 %v3024_v62, %v3026_v25 }
 0x55e   :  { %v3037_v28 = vmax.f32 %v3025_v49, %v3027_v30 }
 0x55f   :  { %4563 = vmatpush3.bf16.msra.mxu1 %v4562_v17 }
 0x560   :  { %v3042_v10 = vmax.f32 %v3036_v22, %v3037_v28  ;;  %4564 = vmatprep.subr.bf16.mxu1 %v5054_v26 }
 0x563   :  { %4566 = vmatpush3.bf16.msra.mxu1 %v4565_v45  ;;  %v3569_v45 = vld [vmem:[#allocation7] sm:$0xff] }
 0x564   :  { %4567 = vmatprep.subr.bf16.mxu1 %v5054_v26 }
 0x567   :  { %4569 = vmatpush3.bf16.msra.mxu1 %v4568_v53 }
 0x568   :  { %4570 = vmatprep.subr.bf16.mxu1 %v5054_v26 }
 0x56b   :  { %4572 = vmatpush3.bf16.msra.mxu1 %v4571_v55  ;;  %v4616_v55 = vpack.c.bf16 %v3572_v2, %v3571_v41 }
 0x56c   :  { %4573 = vmatprep.subr.bf16.mxu1 %v5054_v26 }
 0x56e   :  { %4198 = vmatmul.mubr.msk.f32.vlgmr.msra.gmra.mrb[116].mxu1 %vm3064_vm4, %v3041_v51  ;;  %v4598_v51 = vpack.c.bf16 %v3482_v14, %v3481_v7 }
 0x56f   :  { %4575 = vmatpush3.bf16.msra.mxu1 %v4574_v29  ;;  %4220 = vmatprep.mubr.msk.f32.mxu1 %vm5055_vm3, %v5053_v0  ;;  %v4619_v29 = vpack.c.bf16 %v3574_v34, %v3573_v1 }
 0x570   :  { %4576 = vmatprep.subr.bf16.mxu1 %v5054_v26 }
 0x573   :  { %4578 = vmatpush3.bf16.msra.mxu1 %v4577_v43  ;;  %v4622_v43 = vpack.c.bf16 %v3576_v15, %v3575_v36 }
 0x574   :  { %4579 = vmatprep.subr.bf16.mxu1 %v5054_v26 }
 0x577   :  { %4581 = vmatpush3.bf16.msra.mxu1 %v4580_v31  ;;  %v4625_v31 = vpack.c.bf16 %v3578_v18, %v3577_v48 }
 0x578   :  { %4582 = vmatprep.subr.bf16.mxu1 %v5054_v26 }
 0x57b   :  { %4584 = vmatpush3.bf16.msra.mxu1 %v4583_v38  ;;  %v3581_v38 = vld [vmem:[#allocation7 + $0x60] sm:$0xff] }
 0x57c   :  { %4585 = vmatprep.subr.bf16.mxu1 %v5054_v26  ;;  %v4631_v52 = vpack.c.bf16 %v3582_v46, %v3581_v38 }
 0x57f   :  { %4587 = vmatpush3.bf16.msra.mxu1 %v4586_v42  ;;  %v3583_v42 = vld [vmem:[#allocation7 + $0x70] sm:$0xff] }
 0x580   :  { %4588 = vmatprep.subr.bf16.mxu1 %v5054_v26  ;;  %v4634_v40 = vpack.c.bf16 %v3584_v33, %v3583_v42 }
 0x582   :  { %4221 = vmatmul.mubr.msk.f32.vlgmr.msra.gmra.mrb[118].mxu1 %vm3064_vm4, %v3042_v10  ;;  %v3570_v10 = vld [vmem:[#allocation7 + $0x8] sm:$0xff] }
 0x583   :  { %4255 = vmatprep.mubr.msk.f32.mxu1 %vm5055_vm3, %v5053_v0  ;;  %4590 = vmatpush3.bf16.msra.mxu1 %v4589_v57  ;;  %v4613_v35 = vpack.c.bf16 %v3570_v10, %v3569_v45  ;;  %v4017_v57 = vld [vmem:[%s6690_s8] ss:$0 sm:$0xff] }
 0x584   :  { %4591 = vmatprep.subr.bf16.mxu1 %v5054_v26 }
 0x587   :  { %4593 = vmatpush3.bf16.msra.mxu1 %v4592_v50 }
 0x588   :  { %4594 = vmatprep.subr.bf16.mxu1 %v5054_v26 }
 0x58b   :  { %4596 = vmatpush3.bf16.msra.mxu1 %v4595_v54 }
 0x58c   :  { %4597 = vmatprep.subr.bf16.mxu1 %v5054_v26 }
 0x58f   :  { %4599 = vmatpush3.bf16.msra.mxu1 %v4598_v51 }
 0x590   :  { %4600 = vmatprep.subr.bf16.mxu1 %v5054_v26 }
 0x593   :  { %4602 = vmatpush3.bf16.msra.mxu1 %v4601_v3 }
 0x594   :  { %4603 = vmatprep.subr.bf16.mxu1 %v5054_v26 }
 0x597   :  { %4605 = vmatpush3.bf16.msra.mxu1 %v4604_v6 }
 0x598   :  { %4606 = vmatprep.subr.bf16.mxu1 %v5054_v26 }
 0x59b   :  { %4608 = vmatpush3.bf16.msra.mxu1 %v4607_v19 }
 0x59c   :  { %4609 = vmatprep.subr.bf16.mxu1 %v5054_v26 }
 0x59f   :  { %4611 = vmatpush3.bf16.msra.mxu1 %v4610_v21 }
 0x5a0   :  { %4612 = vmatprep.subr.bf16.mxu1 %v5054_v26 }
 0x605   :  { %v3134_v24 = vpop.f32.mrb[110].mxu1 }
 0x606   :  { %v4130_v23 = vpop.f32.mrb[111].mxu1 }
 0x619   :  { %v3207_v13 = vpop.f32.mrb[112].mxu1 }
 0x61a   :  { %v3208_v27 = vadd.f32 %v3207_v13, %v3134_v24  ;;  %v4153_v37 = vpop.f32.mrb[113].mxu1 }
 0x62d   :  { %v3291_v47 = vpop.f32.mrb[114].mxu1 }
 0x62e   :  { %v3295_v62 = vadd.f32 %v3291_v47, %v3208_v27  ;;  %v4176_v25 = vpop.f32.mrb[115].mxu1 }
 0x641   :  { %v3376_v17 = vpop.f32.mrb[116].mxu1 }
 0x642   :  { %v3380_v49 = vadd.f32 %v3376_v17, %v3295_v62  ;;  %v4199_v30 = vpop.f32.mrb[117].mxu1 }
 0x655   :  { %v3461_v12 = vpop.f32.mrb[118].mxu1 }
 0x656   :  { %v3465_v22 = vadd.f32 %v3461_v12, %v3380_v49  ;;  %v4222_v28 = vpop.f32.mrb[119].mxu1 }
 0x658   :  { %v3473_v32 = vadd.f32 %v4016_v44, %v3465_v22 }
 0x65a   :  { %v3474_v53 = vmax.f32 %v3473_v32, 0.0 }
 0x65c   :  { %4256 = vmatmul.mubr.f32.vlgmr.msra.gmra.mrb[120].mxu1 %v3474_v53 }
 0x65d   :  { %4614 = vmatpush3.bf16.msra.mxu1 %v4613_v35  ;;  %4290 = vmatprep.mubr.msk.f32.mxu1 %vm5055_vm3, %v5053_v0  ;;  %v3579_v0 = vld [vmem:[#allocation7 + $0x50] sm:$0xff] }
 0x65e   :  { %4615 = vmatprep.subr.bf16.mxu1 %v5054_v26  ;;  %v4628_v61 = vpack.c.bf16 %v3580_v39, %v3579_v0 }
 0x661   :  { %4617 = vmatpush3.bf16.msra.mxu1 %v4616_v55 }
 0x662   :  { %4618 = vmatprep.subr.bf16.mxu1 %v5054_v26 }
 0x665   :  { %4620 = vmatpush3.bf16.msra.mxu1 %v4619_v29 }
 0x666   :  { %4621 = vmatprep.subr.bf16.mxu1 %v5054_v26 }
 0x669   :  { %4623 = vmatpush3.bf16.msra.mxu1 %v4622_v43 }
 0x66a   :  { %4624 = vmatprep.subr.bf16.mxu1 %v5054_v26 }
 0x66d   :  { %4626 = vmatpush3.bf16.msra.mxu1 %v4625_v31 }
 0x66e   :  { %4627 = vmatprep.subr.bf16.mxu1 %v5054_v26 }
 0x671   :  { %4629 = vmatpush3.bf16.msra.mxu1 %v4628_v61 }
 0x672   :  { %4630 = vmatprep.subr.bf16.mxu1 %v5054_v26 }
 0x675   :  { %4632 = vmatpush3.bf16.msra.mxu1 %v4631_v52 }
 0x676   :  { %4633 = vmatprep.subr.bf16.mxu1 %v5054_v26 }
 0x679   :  { %4635 = vmatpush3.bf16.msra.mxu1 %v4634_v40 }
 0x72f   :  { %v3564_v11 = vpop.f32.mrb[120].mxu1 }
 0x730   :  { %v3565_v59 = vadd.f32 %v4017_v57, %v3564_v11  ;;  %v4257_v50 = vpop.f32.mrb[121].mxu1 }
 0x732   :  { %v3568_v56 = vmax.f32 %v3565_v59, 0.0 }
 0x734   :  { %4291 = vmatmul.mubr.f32.vlgmr.msra.gmra.mrb[122].mxu1 %v3568_v56 }
 0x807   :  { %v3658_v7 = vpop.f32.mrb[122].mxu1 }
 0x808   :  { %v3659_v54 = vadd.f32 %v4018_v58, %v3658_v7  ;;  %v4292_v26 = vpop.f32.mrb[123].mxu1 }
 0x80a   :  { %3662 = vst [vmem:[%s6693_s11] sm:$0xff] %v3659_v54 }
 0x80b   :  { %3667 = vsyncpa [#allocation3], 1 }
 0x80c   :  { %3668 = vsyncpa [#allocation5], 1 }
 0x80d   :  { %3669 = vsyncpa [#allocation8], 1 }

</bundles_post_ra>
